<compile_context>
chip_gen: v7x
topology: tpu7x:2x2x1
jax: 0.10.0
libtpu: 0.0.40
codegen_flags: <defaults>
</compile_context>

<pallas_src>
import jax
import jax.numpy as jnp
import numpy as np
from jax.experimental import pallas as pl
from jax.experimental.pallas import tpu as pltpu

CHANNELS = 32          # embed dim (must be divisible by NUM_HEADS)
SIZE = 8               # spatial size -> seq len = SIZE*SIZE
NUM_HEADS = 2
HEAD_DIM = CHANNELS // NUM_HEADS
SEQ = SIZE * SIZE
EPS = 1e-5             # nn.LayerNorm default eps


def _layernorm(x, w, b):
    mean = jnp.mean(x, axis=-1, keepdims=True)
    var = jnp.mean((x - mean) ** 2, axis=-1, keepdims=True)
    return (x - mean) * jax.lax.rsqrt(var + EPS) * w + b


def _gelu_exact(x):
    # PyTorch nn.GELU() default: exact erf formulation.
    return 0.5 * x * (1.0 + jax.lax.erf(x * (1.0 / jnp.sqrt(jnp.float32(2.0)))))


def self_attention_kernel(x_ref, in_wt_ref, in_b_ref, w_pack_ref, vec_ref, o_ref):
    """One grid step = BT batch images.

    x_ref      : (BT, C, S)  NCHW-contiguous activation block
    in_wt_ref  : (C, 3C)     qkv in_proj weight, pre-transposed
    in_b_ref   : (1, 3C)     qkv in_proj bias
    w_pack_ref : (C, 3C)     [out_proj^T | ff1^T | ff2^T] packed along lanes
    vec_ref    : (8, C)      rows: ln1_w, ln1_b, ln2_w, ln2_b, out_b, ff1_b, ff2_b, pad
    o_ref      : (BT, C, S)
    """
    BT, C, S = x_ref.shape
    f32 = jnp.float32

    # ---- (BT, C, S) -> (BT*S, C): per-batch 2D transpose + sublane concat ----
    x = jnp.concatenate([x_ref[b].astype(f32).T for b in range(BT)], axis=0)

    # ---- LayerNorm (self.ln) ----
    x_ln = _layernorm(x, vec_ref[0:1, :].astype(f32), vec_ref[1:2, :].astype(f32))

    # ---- MultiheadAttention in_proj: one (BT*S, C) @ (C, 3C) matmul ----
    qkv = jnp.dot(x_ln, in_wt_ref[...].astype(f32),
                  preferred_element_type=f32) + in_b_ref[...].astype(f32)
    scale = 1.0 / jnp.sqrt(jnp.float32(HEAD_DIM))
    q = qkv[:, 0 * C:1 * C] * scale
    k = qkv[:, 1 * C:2 * C]
    v = qkv[:, 2 * C:3 * C]
    q3 = q.reshape(BT, S, C)      # leading-dim split: free
    k3 = k.reshape(BT, S, C)
    v3 = v.reshape(BT, S, C)

    w_out_t = w_pack_ref[:, 0 * C:1 * C].astype(f32)    # (C, C), pre-transposed

    # ---- attention: batched over BT, statically unrolled over the 2 heads.
    # Heads are merged by summing per-head partial out_proj matmuls
    # (oh @ out_w_T[h*D:(h+1)*D, :]) -> no lane concatenate needed.
    attn = vec_ref[4:5, :].astype(f32)                  # out_proj bias
    for h in range(NUM_HEADS):
        sl = slice(h * HEAD_DIM, (h + 1) * HEAD_DIM)
        qh, kh, vh = q3[..., sl], k3[..., sl], v3[..., sl]
        s = jnp.einsum('bqd,bkd->bqk', qh, kh, preferred_element_type=f32)
        s = s - jnp.max(s, axis=-1, keepdims=True)
        p = jnp.exp(s)
        # EUP approx reciprocal instead of a VPU divide.
        p = p * pl.reciprocal(jnp.sum(p, axis=-1, keepdims=True), approx=True)
        oh = jnp.einsum('bqk,bkd->bqd', p, vh, preferred_element_type=f32)
        attn = attn + jnp.dot(oh.reshape(BT * S, HEAD_DIM), w_out_t[sl, :],
                              preferred_element_type=f32)

    # ---- residual ----
    h1 = attn + x

    # ---- ff_self: LayerNorm -> Linear -> GELU -> Linear, + residual ----
    g = _layernorm(h1, vec_ref[2:3, :].astype(f32), vec_ref[3:4, :].astype(f32))
    g = jnp.dot(g, w_pack_ref[:, 1 * C:2 * C].astype(f32),
                preferred_element_type=f32) + vec_ref[5:6, :].astype(f32)
    g = _gelu_exact(g)
    g = jnp.dot(g, w_pack_ref[:, 2 * C:3 * C].astype(f32),
                preferred_element_type=f32) + vec_ref[6:7, :].astype(f32)
    y = g + h1                                           # (BT*S, C)

    # ---- (BT*S, C) -> (BT, C, S) stores ----
    for b in range(BT):
        o_ref[b] = y[b * S:(b + 1) * S, :].T.astype(o_ref.dtype)


def _pick_batch_tile(B):
    # BT images per grid step; keep >=2 grid steps when possible so both
    # TensorCores on v7x get work.
    if B >= 16:
        return 8
    return max(1, B // 2)


def self_attention_pallas(x_nchw, params, batch_tile=None):
    B, C, H, W = x_nchw.shape
    S = H * W
    assert C == CHANNELS and S == SEQ

    BT = batch_tile if batch_tile is not None else _pick_batch_tile(B)
    n_blk = -(-B // BT)
    Bp = n_blk * BT

    # NCHW -> (B, C, S) is a free, contiguous reshape (no HBM transpose pass).
    x = x_nchw.reshape(B, C, S)
    if Bp != B:
        x = jnp.pad(x, ((0, Bp - B), (0, 0), (0, 0)))

    f32 = jnp.float32
    # Pre-transpose weights once outside the kernel; pack the tiny params.
    in_wt = params["in_w"].astype(f32).T                           # (C, 3C)
    in_b = params["in_b"].astype(f32).reshape(1, 3 * C)            # (1, 3C)
    w_pack = jnp.concatenate([params["out_w"].astype(f32).T,
                              params["ff1_w"].astype(f32).T,
                              params["ff2_w"].astype(f32).T], axis=1)   # (C, 3C)
    vec_pack = jnp.concatenate([params["ln1_w"], params["ln1_b"],
                                params["ln2_w"], params["ln2_b"],
                                params["out_b"], params["ff1_b"],
                                params["ff2_b"],
                                jnp.zeros((1, C), f32)], axis=0).astype(f32)  # (8, C)

    def full_spec(shape):
        nd = len(shape)
        return pl.BlockSpec(shape, lambda b, _nd=nd: (0,) * _nd)

    out = pl.pallas_call(
        self_attention_kernel,
        out_shape=jax.ShapeDtypeStruct((Bp, C, S), x_nchw.dtype),
        grid_spec=pltpu.PrefetchScalarGridSpec(
            num_scalar_prefetch=0,
            grid=(n_blk,),
            in_specs=[pl.BlockSpec((BT, C, S), lambda b: (b, 0, 0)),
                      full_spec(in_wt.shape),
                      full_spec(in_b.shape),
                      full_spec(w_pack.shape),
                      full_spec(vec_pack.shape)],
            out_specs=pl.BlockSpec((BT, C, S), lambda b: (b, 0, 0)),
        ),
        compiler_params=pltpu.CompilerParams(
            dimension_semantics=("parallel",)),
    )(x, in_wt, in_b, w_pack, vec_pack)

    out = out[:B]
    return out.reshape(B, C, H, W)


def self_attention_ref(x_nchw, params):
    """Pure-JAX reference reproducing the PyTorch forward semantics."""
    B, C, H, W = x_nchw.shape
    S = H * W
    x = jnp.transpose(x_nchw.reshape(B, C, S), (0, 2, 1)).astype(jnp.float32)

    def ln(v, w, b):
        m = jnp.mean(v, axis=-1, keepdims=True)
        var = jnp.mean((v - m) ** 2, axis=-1, keepdims=True)
        return (v - m) * jax.lax.rsqrt(var + EPS) * w + b

    x_ln = ln(x, params["ln1_w"], params["ln1_b"])
    qkv = jnp.einsum("bsc,dc->bsd", x_ln, params["in_w"]) + params["in_b"]
    q, k, v = qkv[..., :C], qkv[..., C:2 * C], qkv[..., 2 * C:]
    q = q.reshape(B, S, NUM_HEADS, HEAD_DIM) / jnp.sqrt(jnp.float32(HEAD_DIM))
    k = k.reshape(B, S, NUM_HEADS, HEAD_DIM)
    v = v.reshape(B, S, NUM_HEADS, HEAD_DIM)
    s = jnp.einsum("bqhd,bkhd->bhqk", q, k)
    p = jax.nn.softmax(s, axis=-1)
    a = jnp.einsum("bhqk,bkhd->bqhd", p, v).reshape(B, S, C)
    a = jnp.einsum("bsc,dc->bsd", a, params["out_w"]) + params["out_b"]
    h1 = a + x
    g = ln(h1, params["ln2_w"], params["ln2_b"])
    g = jnp.einsum("bsc,dc->bsd", g, params["ff1_w"]) + params["ff1_b"]
    g = 0.5 * g * (1.0 + jax.lax.erf(g / jnp.sqrt(jnp.float32(2.0))))
    g = jnp.einsum("bsc,dc->bsd", g, params["ff2_w"]) + params["ff2_b"]
    out = g + h1
    return jnp.transpose(out, (0, 2, 1)).reshape(B, C, H, W)


def make_params(key):
    C = CHANNELS
    ks = jax.random.split(key, 6)
    f32 = jnp.float32
    return {
        # self.ln
        "ln1_w": jnp.ones((1, C), f32),
        "ln1_b": jnp.zeros((1, C), f32),
        # mha in_proj (3C, C) weight, (1, 3C) bias; out_proj (C, C), (1, C)
        "in_w": 0.05 * jax.random.normal(ks[0], (3 * C, C), f32),
        "in_b": 0.01 * jax.random.normal(ks[1], (1, 3 * C), f32),
        "out_w": 0.05 * jax.random.normal(ks[2], (C, C), f32),
        "out_b": jnp.zeros((1, C), f32),
        # ff_self: LayerNorm, Linear(C,C), GELU, Linear(C,C)
        "ln2_w": jnp.ones((1, C), f32),
        "ln2_b": jnp.zeros((1, C), f32),
        "ff1_w": 0.05 * jax.random.normal(ks[3], (C, C), f32),
        "ff1_b": 0.01 * jax.random.normal(ks[4], (1, C), f32),
        "ff2_w": 0.05 * jax.random.normal(ks[5], (C, C), f32),
        "ff2_b": jnp.zeros((1, C), f32),
    }


if __name__ == "__main__":
    key = jax.random.PRNGKey(0)
    k_x, k_p = jax.random.split(key)
    B = 8                                         # -> BT=4, grid of 2 steps
    x = jax.random.normal(k_x, (B, CHANNELS, SIZE, SIZE), jnp.float32)
    params = make_params(k_p)

    out = self_attention_pallas(x, params)
    out = jax.block_until_ready(out)

    ref = jax.block_until_ready(self_attention_ref(x, params))
    # 1e-3 tolerance: the only approximation vs. the f32 reference is the EUP
    # approx reciprocal in the softmax normalization (error << 1e-3 here).
    np.testing.assert_allclose(np.asarray(out), np.asarray(ref),
                               rtol=1e-3, atol=1e-3)
    assert out.shape == (B, CHANNELS, SIZE, SIZE)
    print("KERNEL_OK")
</pallas_src>

<mosaic_0001>
module attributes {stable_mosaic.version = 11 : i64} {
  func.func @self_attention_kernel(%arg0: i32, %arg1: memref<4x32x64xf32, #tpu.memory_space<vmem>>, %arg2: memref<32x96xf32, #tpu.memory_space<vmem>>, %arg3: memref<1x96xf32, #tpu.memory_space<vmem>>, %arg4: memref<32x96xf32, #tpu.memory_space<vmem>>, %arg5: memref<8x32xf32, #tpu.memory_space<vmem>>, %arg6: memref<4x32x64xf32, #tpu.memory_space<vmem>>) attributes {dimension_semantics = [#tpu.dimension_semantics<parallel>], iteration_bounds = array<i64: 2>, scalar_prefetch = 0 : i64, scratch_operands = 0 : i64, tpu.core_type = #tpu.core_type<tc>, window_params = [{transform_indices = @transform_0, window_bounds = array<i64: 4, 32, 64>}, {pipeline_mode = #tpu.pipeline_mode<synchronous>, transform_indices = @transform_1, window_bounds = array<i64: 32, 96>}, {pipeline_mode = #tpu.pipeline_mode<synchronous>, transform_indices = @transform_2, window_bounds = array<i64: 1, 96>}, {pipeline_mode = #tpu.pipeline_mode<synchronous>, transform_indices = @transform_3, window_bounds = array<i64: 32, 96>}, {pipeline_mode = #tpu.pipeline_mode<synchronous>, transform_indices = @transform_4, window_bounds = array<i64: 8, 32>}, {transform_indices = @transform_5, window_bounds = array<i64: 4, 32, 64>}]} {
    %c0 = arith.constant 0 : index
    %c0_0 = arith.constant 0 : index
    %c0_1 = arith.constant 0 : index
    %0 = vector.load %arg1[%c0, %c0_0, %c0_1] : memref<4x32x64xf32, #tpu.memory_space<vmem>>, vector<1x32x64xf32>
    %1 = vector.shape_cast %0 : vector<1x32x64xf32> to vector<32x64xf32>
    %2 = tpu.transpose %1, [1, 0] : vector<32x64xf32> -> vector<64x32xf32>
    %c1 = arith.constant 1 : index
    %c0_2 = arith.constant 0 : index
    %c0_3 = arith.constant 0 : index
    %3 = vector.load %arg1[%c1, %c0_2, %c0_3] : memref<4x32x64xf32, #tpu.memory_space<vmem>>, vector<1x32x64xf32>
    %4 = vector.shape_cast %3 : vector<1x32x64xf32> to vector<32x64xf32>
    %5 = tpu.transpose %4, [1, 0] : vector<32x64xf32> -> vector<64x32xf32>
    %c2 = arith.constant 2 : index
    %c0_4 = arith.constant 0 : index
    %c0_5 = arith.constant 0 : index
    %6 = vector.load %arg1[%c2, %c0_4, %c0_5] : memref<4x32x64xf32, #tpu.memory_space<vmem>>, vector<1x32x64xf32>
    %7 = vector.shape_cast %6 : vector<1x32x64xf32> to vector<32x64xf32>
    %8 = tpu.transpose %7, [1, 0] : vector<32x64xf32> -> vector<64x32xf32>
    %c3 = arith.constant 3 : index
    %c0_6 = arith.constant 0 : index
    %c0_7 = arith.constant 0 : index
    %9 = vector.load %arg1[%c3, %c0_6, %c0_7] : memref<4x32x64xf32, #tpu.memory_space<vmem>>, vector<1x32x64xf32>
    %10 = vector.shape_cast %9 : vector<1x32x64xf32> to vector<32x64xf32>
    %11 = tpu.transpose %10, [1, 0] : vector<32x64xf32> -> vector<64x32xf32>
    %12 = tpu.concatenate %2, %5, %8, %11 in 0 : vector<64x32xf32>, vector<64x32xf32>, vector<64x32xf32>, vector<64x32xf32> -> vector<256x32xf32>
    %c0_8 = arith.constant 0 : index
    %c0_9 = arith.constant 0 : index
    %13 = vector.load %arg5[%c0_8, %c0_9] : memref<8x32xf32, #tpu.memory_space<vmem>>, vector<1x32xf32>
    %c1_10 = arith.constant 1 : index
    %c0_11 = arith.constant 0 : index
    %14 = vector.load %arg5[%c1_10, %c0_11] : memref<8x32xf32, #tpu.memory_space<vmem>>, vector<1x32xf32>
    %cst = arith.constant dense<0.000000e+00> : vector<256xf32>
    %15 = vector.multi_reduction <add>, %12, %cst [1] : vector<256x32xf32> to vector<256xf32>
    %16 = vector.shape_cast %15 : vector<256xf32> to vector<256x1xf32>
    %cst_12 = arith.constant 3.200000e+01 : f32
    %17 = vector.broadcast %cst_12 : f32 to vector<256x1xf32>
    %18 = arith.divf %16, %17 : vector<256x1xf32>
    %19 = vector.broadcast %18 : vector<256x1xf32> to vector<256x32xf32>
    %20 = arith.subf %12, %19 : vector<256x32xf32>
    %21 = arith.mulf %20, %20 : vector<256x32xf32>
    %cst_13 = arith.constant dense<0.000000e+00> : vector<256xf32>
    %22 = vector.multi_reduction <add>, %21, %cst_13 [1] : vector<256x32xf32> to vector<256xf32>
    %23 = vector.shape_cast %22 : vector<256xf32> to vector<256x1xf32>
    %cst_14 = arith.constant 3.200000e+01 : f32
    %24 = vector.broadcast %cst_14 : f32 to vector<256x1xf32>
    %25 = arith.divf %23, %24 : vector<256x1xf32>
    %26 = vector.broadcast %18 : vector<256x1xf32> to vector<256x32xf32>
    %27 = arith.subf %12, %26 : vector<256x32xf32>
    %cst_15 = arith.constant 9.99999974E-6 : f32
    %28 = vector.broadcast %cst_15 : f32 to vector<256x1xf32>
    %29 = arith.addf %25, %28 : vector<256x1xf32>
    %30 = math.rsqrt %29 : vector<256x1xf32>
    %31 = vector.broadcast %30 : vector<256x1xf32> to vector<256x32xf32>
    %32 = arith.mulf %27, %31 : vector<256x32xf32>
    %33 = vector.broadcast %13 : vector<1x32xf32> to vector<256x32xf32>
    %34 = arith.mulf %32, %33 : vector<256x32xf32>
    %35 = vector.broadcast %14 : vector<1x32xf32> to vector<256x32xf32>
    %36 = arith.addf %34, %35 : vector<256x32xf32>
    %c0_16 = arith.constant 0 : index
    %c0_17 = arith.constant 0 : index
    %37 = vector.load %arg2[%c0_16, %c0_17] : memref<32x96xf32, #tpu.memory_space<vmem>>, vector<32x96xf32>
    %cst_18 = arith.constant dense<0.000000e+00> : vector<256x96xf32>
    %38 = tpu.matmul %36, %37, %cst_18 {dimension_numbers = #tpu.dot_dimension_numbers<[1], [0], [0], [1], [0, 0, 1, 1], [], []>} : vector<256x32xf32>, vector<32x96xf32>, vector<256x96xf32> -> vector<256x96xf32>
    %c0_19 = arith.constant 0 : index
    %c0_20 = arith.constant 0 : index
    %39 = vector.load %arg3[%c0_19, %c0_20] : memref<1x96xf32, #tpu.memory_space<vmem>>, vector<1x96xf32>
    %40 = vector.broadcast %39 : vector<1x96xf32> to vector<256x96xf32>
    %41 = arith.addf %38, %40 : vector<256x96xf32>
    %cst_21 = arith.constant 1.600000e+01 : f32
    %42 = math.sqrt %cst_21 : f32
    %cst_22 = arith.constant 1.000000e+00 : f32
    %43 = arith.divf %cst_22, %42 : f32
    %44 = vector.extract_strided_slice %41 {offsets = [0, 0], sizes = [256, 32], strides = [1, 1]} : vector<256x96xf32> to vector<256x32xf32>
    %45 = vector.broadcast %43 : f32 to vector<256x32xf32>
    %46 = arith.mulf %44, %45 : vector<256x32xf32>
    %47 = vector.extract_strided_slice %41 {offsets = [0, 32], sizes = [256, 32], strides = [1, 1]} : vector<256x96xf32> to vector<256x32xf32>
    %48 = vector.extract_strided_slice %41 {offsets = [0, 64], sizes = [256, 32], strides = [1, 1]} : vector<256x96xf32> to vector<256x32xf32>
    %49 = vector.shape_cast %46 : vector<256x32xf32> to vector<4x64x32xf32>
    %50 = vector.shape_cast %47 : vector<256x32xf32> to vector<4x64x32xf32>
    %51 = vector.shape_cast %48 : vector<256x32xf32> to vector<4x64x32xf32>
    %c0_23 = arith.constant 0 : index
    %c0_24 = arith.constant 0 : index
    %52 = vector.load %arg4[%c0_23, %c0_24] : memref<32x96xf32, #tpu.memory_space<vmem>>, vector<32x32xf32>
    %c4 = arith.constant 4 : index
    %c0_25 = arith.constant 0 : index
    %53 = vector.load %arg5[%c4, %c0_25] : memref<8x32xf32, #tpu.memory_space<vmem>>, vector<1x32xf32>
    %54 = vector.extract_strided_slice %49 {offsets = [0, 0, 0], sizes = [4, 64, 16], strides = [1, 1, 1]} : vector<4x64x32xf32> to vector<4x64x16xf32>
    %55 = vector.extract_strided_slice %50 {offsets = [0, 0, 0], sizes = [4, 64, 16], strides = [1, 1, 1]} : vector<4x64x32xf32> to vector<4x64x16xf32>
    %56 = vector.extract_strided_slice %51 {offsets = [0, 0, 0], sizes = [4, 64, 16], strides = [1, 1, 1]} : vector<4x64x32xf32> to vector<4x64x16xf32>
    "tpu.trace_start"() <{level = 10 : i32, message = "bqd,bkd->bqk"}> : () -> ()
    %cst_26 = arith.constant dense<0.000000e+00> : vector<4x64x64xf32>
    %57 = tpu.matmul %54, %55, %cst_26 {dimension_numbers = #tpu.dot_dimension_numbers<[2], [2], [1], [1], [0, 0, 0, 1, 1, 1], [0], [0]>} : vector<4x64x16xf32>, vector<4x64x16xf32>, vector<4x64x64xf32> -> vector<4x64x64xf32>
    "tpu.trace_stop"() : () -> ()
    %cst_27 = arith.constant dense<0xFF800000> : vector<4x64xf32>
    %58 = vector.multi_reduction <maximumf>, %57, %cst_27 [2] : vector<4x64x64xf32> to vector<4x64xf32>
    %59 = vector.shape_cast %58 : vector<4x64xf32> to vector<4x64x1xf32>
    %60 = vector.broadcast %59 : vector<4x64x1xf32> to vector<4x64x64xf32>
    %61 = arith.subf %57, %60 : vector<4x64x64xf32>
    %62 = math.exp %61 : vector<4x64x64xf32>
    %cst_28 = arith.constant dense<0.000000e+00> : vector<4x64xf32>
    %63 = vector.multi_reduction <add>, %62, %cst_28 [2] : vector<4x64x64xf32> to vector<4x64xf32>
    %64 = vector.shape_cast %63 : vector<4x64xf32> to vector<4x64x1xf32>
    %65 = tpu.reciprocal %64 {approx = true} : vector<4x64x1xf32> -> vector<4x64x1xf32>
    %66 = vector.broadcast %65 : vector<4x64x1xf32> to vector<4x64x64xf32>
    %67 = arith.mulf %62, %66 : vector<4x64x64xf32>
    "tpu.trace_start"() <{level = 10 : i32, message = "bqk,bkd->bqd"}> : () -> ()
    %cst_29 = arith.constant dense<0.000000e+00> : vector<4x64x16xf32>
    %68 = tpu.matmul %67, %56, %cst_29 {dimension_numbers = #tpu.dot_dimension_numbers<[2], [1], [1], [2], [0, 0, 0, 1, 1, 2], [0], [0]>} : vector<4x64x64xf32>, vector<4x64x16xf32>, vector<4x64x16xf32> -> vector<4x64x16xf32>
    "tpu.trace_stop"() : () -> ()
    %69 = vector.shape_cast %68 : vector<4x64x16xf32> to vector<256x16xf32>
    %70 = vector.extract_strided_slice %52 {offsets = [0, 0], sizes = [16, 32], strides = [1, 1]} : vector<32x32xf32> to vector<16x32xf32>
    %cst_30 = arith.constant dense<0.000000e+00> : vector<256x32xf32>
    %71 = tpu.matmul %69, %70, %cst_30 {dimension_numbers = #tpu.dot_dimension_numbers<[1], [0], [0], [1], [0, 0, 1, 1], [], []>} : vector<256x16xf32>, vector<16x32xf32>, vector<256x32xf32> -> vector<256x32xf32>
    %72 = vector.broadcast %53 : vector<1x32xf32> to vector<256x32xf32>
    %73 = arith.addf %72, %71 : vector<256x32xf32>
    %74 = vector.extract_strided_slice %49 {offsets = [0, 0, 16], sizes = [4, 64, 16], strides = [1, 1, 1]} : vector<4x64x32xf32> to vector<4x64x16xf32>
    %75 = vector.extract_strided_slice %50 {offsets = [0, 0, 16], sizes = [4, 64, 16], strides = [1, 1, 1]} : vector<4x64x32xf32> to vector<4x64x16xf32>
    %76 = vector.extract_strided_slice %51 {offsets = [0, 0, 16], sizes = [4, 64, 16], strides = [1, 1, 1]} : vector<4x64x32xf32> to vector<4x64x16xf32>
    "tpu.trace_start"() <{level = 10 : i32, message = "bqd,bkd->bqk"}> : () -> ()
    %cst_31 = arith.constant dense<0.000000e+00> : vector<4x64x64xf32>
    %77 = tpu.matmul %74, %75, %cst_31 {dimension_numbers = #tpu.dot_dimension_numbers<[2], [2], [1], [1], [0, 0, 0, 1, 1, 1], [0], [0]>} : vector<4x64x16xf32>, vector<4x64x16xf32>, vector<4x64x64xf32> -> vector<4x64x64xf32>
    "tpu.trace_stop"() : () -> ()
    %cst_32 = arith.constant dense<0xFF800000> : vector<4x64xf32>
    %78 = vector.multi_reduction <maximumf>, %77, %cst_32 [2] : vector<4x64x64xf32> to vector<4x64xf32>
    %79 = vector.shape_cast %78 : vector<4x64xf32> to vector<4x64x1xf32>
    %80 = vector.broadcast %79 : vector<4x64x1xf32> to vector<4x64x64xf32>
    %81 = arith.subf %77, %80 : vector<4x64x64xf32>
    %82 = math.exp %81 : vector<4x64x64xf32>
    %cst_33 = arith.constant dense<0.000000e+00> : vector<4x64xf32>
    %83 = vector.multi_reduction <add>, %82, %cst_33 [2] : vector<4x64x64xf32> to vector<4x64xf32>
    %84 = vector.shape_cast %83 : vector<4x64xf32> to vector<4x64x1xf32>
    %85 = tpu.reciprocal %84 {approx = true} : vector<4x64x1xf32> -> vector<4x64x1xf32>
    %86 = vector.broadcast %85 : vector<4x64x1xf32> to vector<4x64x64xf32>
    %87 = arith.mulf %82, %86 : vector<4x64x64xf32>
    "tpu.trace_start"() <{level = 10 : i32, message = "bqk,bkd->bqd"}> : () -> ()
    %cst_34 = arith.constant dense<0.000000e+00> : vector<4x64x16xf32>
    %88 = tpu.matmul %87, %76, %cst_34 {dimension_numbers = #tpu.dot_dimension_numbers<[2], [1], [1], [2], [0, 0, 0, 1, 1, 2], [0], [0]>} : vector<4x64x64xf32>, vector<4x64x16xf32>, vector<4x64x16xf32> -> vector<4x64x16xf32>
    "tpu.trace_stop"() : () -> ()
    %89 = vector.shape_cast %88 : vector<4x64x16xf32> to vector<256x16xf32>
    %90 = vector.extract_strided_slice %52 {offsets = [16, 0], sizes = [16, 32], strides = [1, 1]} : vector<32x32xf32> to vector<16x32xf32>
    %cst_35 = arith.constant dense<0.000000e+00> : vector<256x32xf32>
    %91 = tpu.matmul %89, %90, %cst_35 {dimension_numbers = #tpu.dot_dimension_numbers<[1], [0], [0], [1], [0, 0, 1, 1], [], []>} : vector<256x16xf32>, vector<16x32xf32>, vector<256x32xf32> -> vector<256x32xf32>
    %92 = arith.addf %73, %91 : vector<256x32xf32>
    %93 = arith.addf %92, %12 : vector<256x32xf32>
    %c2_36 = arith.constant 2 : index
    %c0_37 = arith.constant 0 : index
    %94 = vector.load %arg5[%c2_36, %c0_37] : memref<8x32xf32, #tpu.memory_space<vmem>>, vector<1x32xf32>
    %c3_38 = arith.constant 3 : index
    %c0_39 = arith.constant 0 : index
    %95 = vector.load %arg5[%c3_38, %c0_39] : memref<8x32xf32, #tpu.memory_space<vmem>>, vector<1x32xf32>
    %cst_40 = arith.constant dense<0.000000e+00> : vector<256xf32>
    %96 = vector.multi_reduction <add>, %93, %cst_40 [1] : vector<256x32xf32> to vector<256xf32>
    %97 = vector.shape_cast %96 : vector<256xf32> to vector<256x1xf32>
    %cst_41 = arith.constant 3.200000e+01 : f32
    %98 = vector.broadcast %cst_41 : f32 to vector<256x1xf32>
    %99 = arith.divf %97, %98 : vector<256x1xf32>
    %100 = vector.broadcast %99 : vector<256x1xf32> to vector<256x32xf32>
    %101 = arith.subf %93, %100 : vector<256x32xf32>
    %102 = arith.mulf %101, %101 : vector<256x32xf32>
    %cst_42 = arith.constant dense<0.000000e+00> : vector<256xf32>
    %103 = vector.multi_reduction <add>, %102, %cst_42 [1] : vector<256x32xf32> to vector<256xf32>
    %104 = vector.shape_cast %103 : vector<256xf32> to vector<256x1xf32>
    %cst_43 = arith.constant 3.200000e+01 : f32
    %105 = vector.broadcast %cst_43 : f32 to vector<256x1xf32>
    %106 = arith.divf %104, %105 : vector<256x1xf32>
    %107 = vector.broadcast %99 : vector<256x1xf32> to vector<256x32xf32>
    %108 = arith.subf %93, %107 : vector<256x32xf32>
    %cst_44 = arith.constant 9.99999974E-6 : f32
    %109 = vector.broadcast %cst_44 : f32 to vector<256x1xf32>
    %110 = arith.addf %106, %109 : vector<256x1xf32>
    %111 = math.rsqrt %110 : vector<256x1xf32>
    %112 = vector.broadcast %111 : vector<256x1xf32> to vector<256x32xf32>
    %113 = arith.mulf %108, %112 : vector<256x32xf32>
    %114 = vector.broadcast %94 : vector<1x32xf32> to vector<256x32xf32>
    %115 = arith.mulf %113, %114 : vector<256x32xf32>
    %116 = vector.broadcast %95 : vector<1x32xf32> to vector<256x32xf32>
    %117 = arith.addf %115, %116 : vector<256x32xf32>
    %c0_45 = arith.constant 0 : index
    %c32 = arith.constant 32 : index
    %118 = vector.load %arg4[%c0_45, %c32] : memref<32x96xf32, #tpu.memory_space<vmem>>, vector<32x32xf32>
    %cst_46 = arith.constant dense<0.000000e+00> : vector<256x32xf32>
    %119 = tpu.matmul %117, %118, %cst_46 {dimension_numbers = #tpu.dot_dimension_numbers<[1], [0], [0], [1], [0, 0, 1, 1], [], []>} : vector<256x32xf32>, vector<32x32xf32>, vector<256x32xf32> -> vector<256x32xf32>
    %c5 = arith.constant 5 : index
    %c0_47 = arith.constant 0 : index
    %120 = vector.load %arg5[%c5, %c0_47] : memref<8x32xf32, #tpu.memory_space<vmem>>, vector<1x32xf32>
    %121 = vector.broadcast %120 : vector<1x32xf32> to vector<256x32xf32>
    %122 = arith.addf %119, %121 : vector<256x32xf32>
    %cst_48 = arith.constant 5.000000e-01 : f32
    %123 = vector.broadcast %cst_48 : f32 to vector<256x32xf32>
    %124 = arith.mulf %123, %122 : vector<256x32xf32>
    %cst_49 = arith.constant 2.000000e+00 : f32
    %125 = math.sqrt %cst_49 : f32
    %cst_50 = arith.constant 1.000000e+00 : f32
    %126 = arith.divf %cst_50, %125 : f32
    %127 = vector.broadcast %126 : f32 to vector<256x32xf32>
    %128 = arith.mulf %122, %127 : vector<256x32xf32>
    %129 = math.erf %128 : vector<256x32xf32>
    %cst_51 = arith.constant 1.000000e+00 : f32
    %130 = vector.broadcast %cst_51 : f32 to vector<256x32xf32>
    %131 = arith.addf %130, %129 : vector<256x32xf32>
    %132 = arith.mulf %124, %131 : vector<256x32xf32>
    %c0_52 = arith.constant 0 : index
    %c64 = arith.constant 64 : index
    %133 = vector.load %arg4[%c0_52, %c64] : memref<32x96xf32, #tpu.memory_space<vmem>>, vector<32x32xf32>
    %cst_53 = arith.constant dense<0.000000e+00> : vector<256x32xf32>
    %134 = tpu.matmul %132, %133, %cst_53 {dimension_numbers = #tpu.dot_dimension_numbers<[1], [0], [0], [1], [0, 0, 1, 1], [], []>} : vector<256x32xf32>, vector<32x32xf32>, vector<256x32xf32> -> vector<256x32xf32>
    %c6 = arith.constant 6 : index
    %c0_54 = arith.constant 0 : index
    %135 = vector.load %arg5[%c6, %c0_54] : memref<8x32xf32, #tpu.memory_space<vmem>>, vector<1x32xf32>
    %136 = vector.broadcast %135 : vector<1x32xf32> to vector<256x32xf32>
    %137 = arith.addf %134, %136 : vector<256x32xf32>
    %138 = arith.addf %137, %93 : vector<256x32xf32>
    %139 = vector.extract_strided_slice %138 {offsets = [0, 0], sizes = [64, 32], strides = [1, 1]} : vector<256x32xf32> to vector<64x32xf32>
    %140 = tpu.transpose %139, [1, 0] : vector<64x32xf32> -> vector<32x64xf32>
    %c0_55 = arith.constant 0 : index
    %c0_56 = arith.constant 0 : index
    %c0_57 = arith.constant 0 : index
    %141 = vector.load %arg6[%c0_55, %c0_56, %c0_57] : memref<4x32x64xf32, #tpu.memory_space<vmem>>, vector<1x32x64xf32>
    %142 = vector.shape_cast %141 : vector<1x32x64xf32> to vector<32x64xf32>
    %143 = vector.shape_cast %140 : vector<32x64xf32> to vector<1x32x64xf32>
    tpu.vector_store %arg6[%c0_55, %c0_56, %c0_57], %143 {strides = array<i32>} : memref<4x32x64xf32, #tpu.memory_space<vmem>>, vector<1x32x64xf32>,
    %144 = vector.extract_strided_slice %138 {offsets = [64, 0], sizes = [64, 32], strides = [1, 1]} : vector<256x32xf32> to vector<64x32xf32>
    %145 = tpu.transpose %144, [1, 0] : vector<64x32xf32> -> vector<32x64xf32>
    %c1_58 = arith.constant 1 : index
    %c0_59 = arith.constant 0 : index
    %c0_60 = arith.constant 0 : index
    %146 = vector.load %arg6[%c1_58, %c0_59, %c0_60] : memref<4x32x64xf32, #tpu.memory_space<vmem>>, vector<1x32x64xf32>
    %147 = vector.shape_cast %146 : vector<1x32x64xf32> to vector<32x64xf32>
    %148 = vector.shape_cast %145 : vector<32x64xf32> to vector<1x32x64xf32>
    tpu.vector_store %arg6[%c1_58, %c0_59, %c0_60], %148 {strides = array<i32>} : memref<4x32x64xf32, #tpu.memory_space<vmem>>, vector<1x32x64xf32>,
    %149 = vector.extract_strided_slice %138 {offsets = [128, 0], sizes = [64, 32], strides = [1, 1]} : vector<256x32xf32> to vector<64x32xf32>
    %150 = tpu.transpose %149, [1, 0] : vector<64x32xf32> -> vector<32x64xf32>
    %c2_61 = arith.constant 2 : index
    %c0_62 = arith.constant 0 : index
    %c0_63 = arith.constant 0 : index
    %151 = vector.load %arg6[%c2_61, %c0_62, %c0_63] : memref<4x32x64xf32, #tpu.memory_space<vmem>>, vector<1x32x64xf32>
    %152 = vector.shape_cast %151 : vector<1x32x64xf32> to vector<32x64xf32>
    %153 = vector.shape_cast %150 : vector<32x64xf32> to vector<1x32x64xf32>
    tpu.vector_store %arg6[%c2_61, %c0_62, %c0_63], %153 {strides = array<i32>} : memref<4x32x64xf32, #tpu.memory_space<vmem>>, vector<1x32x64xf32>,
    %154 = vector.extract_strided_slice %138 {offsets = [192, 0], sizes = [64, 32], strides = [1, 1]} : vector<256x32xf32> to vector<64x32xf32>
    %155 = tpu.transpose %154, [1, 0] : vector<64x32xf32> -> vector<32x64xf32>
    %c3_64 = arith.constant 3 : index
    %c0_65 = arith.constant 0 : index
    %c0_66 = arith.constant 0 : index
    %156 = vector.load %arg6[%c3_64, %c0_65, %c0_66] : memref<4x32x64xf32, #tpu.memory_space<vmem>>, vector<1x32x64xf32>
    %157 = vector.shape_cast %156 : vector<1x32x64xf32> to vector<32x64xf32>
    %158 = vector.shape_cast %155 : vector<32x64xf32> to vector<1x32x64xf32>
    tpu.vector_store %arg6[%c3_64, %c0_65, %c0_66], %158 {strides = array<i32>} : memref<4x32x64xf32, #tpu.memory_space<vmem>>, vector<1x32x64xf32>,
    return
  }
  func.func @transform_0(%arg0: i32) -> (i32, i32, i32) {
    %c0_i32 = arith.constant 0 : i32
    %c0_i32_0 = arith.constant 0 : i32
    %c0_i32_1 = arith.constant 0 : i32
    return %arg0, %c0_i32, %c0_i32_0 : i32, i32, i32
  }
  func.func @transform_1(%arg0: i32) -> (i32, i32) {
    %c0_i32 = arith.constant 0 : i32
    %c0_i32_0 = arith.constant 0 : i32
    %c0_i32_1 = arith.constant 0 : i32
    return %c0_i32, %c0_i32_0 : i32, i32
  }
  func.func @transform_2(%arg0: i32) -> (i32, i32) {
    %c0_i32 = arith.constant 0 : i32
    %c0_i32_0 = arith.constant 0 : i32
    %c0_i32_1 = arith.constant 0 : i32
    return %c0_i32, %c0_i32_0 : i32, i32
  }
  func.func @transform_3(%arg0: i32) -> (i32, i32) {
    %c0_i32 = arith.constant 0 : i32
    %c0_i32_0 = arith.constant 0 : i32
    %c0_i32_1 = arith.constant 0 : i32
    return %c0_i32, %c0_i32_0 : i32, i32
  }
  func.func @transform_4(%arg0: i32) -> (i32, i32) {
    %c0_i32 = arith.constant 0 : i32
    %c0_i32_0 = arith.constant 0 : i32
    %c0_i32_1 = arith.constant 0 : i32
    return %c0_i32, %c0_i32_0 : i32, i32
  }
  func.func @transform_5(%arg0: i32) -> (i32, i32, i32) {
    %c0_i32 = arith.constant 0 : i32
    %c0_i32_0 = arith.constant 0 : i32
    %c0_i32_1 = arith.constant 0 : i32
    return %arg0, %c0_i32, %c0_i32_0 : i32, i32, i32
  }
}

</mosaic_0001>

<bundles_post_ra>
// kernel: tpu_custom_call.1
= control target key start
LH: loop header
LB: loop body
LE: loop exit
PB: predicated region body
PF: predicated region fallthrough
CT: control target
= control target key end

     0   :  { %10 = vsyncpa [#allocation3], 0  ;;  %s13069_s0 = inlined_call_operand.hbm [shape: f32[8,32,64], index: 0, kind: input, shape index: {}]   ;;  %s13070_s1 = inlined_call_operand.hbm [shape: f32[32,96], index: 1, kind: input, shape index: {}]   ;;  %s13071_s2 = inlined_call_operand.vmem [shape: f32[1,96], index: 2, kind: input, shape index: {}]   ;;  %s13072_s3 = inlined_call_operand.hbm [shape: f32[32,96], index: 3, kind: input, shape index: {}]   ;;  %s13073_s4 = inlined_call_operand.vmem [shape: f32[8,32], index: 4, kind: input, shape index: {}]   ;;  %s13074_s5 = inlined_call_operand.hbm [shape: f32[8,32,64], index: 5, kind: output, shape index: {}]  }
   0x1   :  { %12 = vsyncpa [#allocation3 + $0x1], 0 }
   0x2   :  { %13 = vsyncpa [#allocation6], 0 }
   0x3   :  { %14 = vsyncpa [#allocation4], 0 }
   0x4   :  { %16 = vsyncpa [#allocation4 + $0x1], 0  ;;  %s9977_s18 = smov 0   ;;  %s9979_s19 = smov 0  }
   0x5   :  { %s9981_s20 = smov 0   ;;  %s9983_s21 = smov 0  }
   0x6 LB: > { %s9998_s22 = sadd.s32 4294967295, %s9932_s21   ;;  %s6927_s23 = sadd.s32 4294967294, %s9932_s21   ;;  %s9932_s21 = sphi %s9983_s21, %s13386_s21   ;;  %s9928_s20 = sphi %s9981_s20, %s13385_s20   ;;  %s9924_s19 = sphi %s9979_s19, %s13384_s19   ;;  %s9920_s18 = sphi %s9977_s18, %s13383_s18  }
   0x7   : > { %p42_p0 = scmp.ne.s32.totalorder %s9924_s19, %s9920_s18  ;;  %p13075_p1 = scmp.eq.s32.totalorder %s9998_s22, 0 }
   0x8   : > { %p156_p3 = scmp.eq.s32.totalorder %s6927_s23, 1  ;;  %p6928_p5 = scmp.ge.s32.totalorder %s9932_s21, 1 }
   0x9   : > { %p10007_p4 = por %p13075_p1, %p42_p0  ;;  %p163_p7 = scmp.lt.s32.totalorder %s9932_s21, 3 }
   0xa   : > { %p10012_p6 = por %p156_p3, %p42_p0  ;;  %s9934_s27 = smov [#allocation5]  }
   0xb   : > { %s13178_s24 = scalar_select %p10007_p4, 1, 0 }
   0xc   : > { %s13179_s25 = scalar_select %p10012_p6, 1, 0 }
   0xd   : > { %p10017_p8 = pnand %p6928_p5, %p163_p7  ;;  %s175_s28 = sshll.u32 %s9934_s27, 4  ;;  %s10021_s28 = int_to_ptr.vmem [resolvable:$true] %s175_s28 }
   0xe   : > { %s9935_s30 = smov [#allocation7]   ;;  %s9776_s9 = scalar_lea.hbm %s13070_s1, 512 }
   0xf   : > { %p8923_p9 = pneg %p10017_p8  ;;  %s191_s6 = sshll.u32 %s9935_s30, 4  ;;  %s10032_s6 = int_to_ptr.vmem [resolvable:$true] %s191_s6 }
  0x10   : > { %p9777_p12 = scmp.ne.s32.totalorder %s13070_s1, %s9776_s9  ;;  %p9783_p5 = scmp.lt.u32.totalorder %s9776_s9, %s13070_s1 }
  0x11   : > { %p10028_p11 = pnand %p8923_p9, %p13075_p1 }
  0x13   : > { %p9778_p13 = pneg %p10028_p11 }
  0x15   : > { %p9779_p0 = pnand %p9778_p13, %p9777_p12 }
  0x17   : > { %p9780_p3 = pneg %p9779_p0 }
  0x19   : > { %p9785_p7 = pnand %p9783_p5, %p9780_p3 }
  0x1b   : > { %9788 = shalt.err (!%p9785_p7)
}
  0x1c   : > { %s9789_s14 = scalar_lea.vmem %s10021_s28, 512  ;;  %p9797_p2 = scmp.lt.s32.totalorder %s10021_s28, %s10021_s28 }
  0x1d   : > { %p9790_p9 = scmp.ne.s32.totalorder %s10021_s28, %s9789_s14  ;;  %p9798_p12 = scmp.lt.s32.totalorder %s9789_s14, %s9789_s14 }
  0x1f   : > { %p9792_p10 = pnand %p9790_p9, %p9778_p13  ;;  %p9799_p0 = por %p9798_p12, %p9797_p2 }
  0x21   : > { %p9793_p1 = pneg %p9792_p10 }
  0x23   : > { %p9800_p6 = pnand %p9799_p0, %p9793_p1 }
  0x25   : > { %9803 = shalt.err (!%p9800_p6)
}
  0x26   : > { %s9936_s15 = smov 128   ;;  %s9937_s16 = smov 8  }
  0x27   : > { %8926 = dma.hbm_to_vmem [thread:$0]  (!%p10028_p11), %s13070_s1, 512, %s10021_s28, [#allocation6], %s9936_s15, %s9936_s15, %s9937_s16  }
  0x28   : > { %s9804_s7 = scalar_lea.hbm %s13072_s3, 512 }
  0x29   : > { %p9805_p1 = scmp.ne.s32.totalorder %s13072_s3, %s9804_s7  ;;  %p9811_p10 = scmp.lt.u32.totalorder %s9804_s7, %s13072_s3 }
  0x2b   : > { %p9807_p2 = pnand %p9805_p1, %p9778_p13 }
  0x2d   : > { %p9808_p6 = pneg %p9807_p2 }
  0x2f   : > { %p9813_p3 = pnand %p9811_p10, %p9808_p6 }
  0x31   : > { %9816 = shalt.err (!%p9813_p3)
}
  0x32   : > { %s9817_s28 = scalar_lea.vmem %s10032_s6, 512  ;;  %p9825_p12 = scmp.lt.s32.totalorder %s10032_s6, %s10032_s6 }
  0x33   : > { %p9818_p5 = scmp.ne.s32.totalorder %s10032_s6, %s9817_s28  ;;  %p9826_p0 = scmp.lt.s32.totalorder %s9817_s28, %s9817_s28 }
  0x35   : > { %p9820_p7 = pnand %p9818_p5, %p9778_p13  ;;  %p9827_p1 = por %p9826_p0, %p9825_p12 }
  0x37   : > { %p9821_p9 = pneg %p9820_p7 }
  0x39   : > { %p9828_p2 = pnand %p9827_p1, %p9821_p9 }
  0x3b   : > { %9831 = shalt.err (!%p9828_p2)
}
  0x3c   : > { %8929 = dma.hbm_to_vmem [thread:$0]  (!%p10028_p11), %s13072_s3, 512, %s10032_s6, [#allocation6], %s9936_s15, %s9936_s15, %s9937_s16  }
  0x3d   : > { %s10093_s29 = sadd.s32 1, %s9932_s21   ;;  %s29_s14 = sadd.s32 1, %s9928_s20 }
  0x3e   : > { %s26_s17 = ssub.s32 %s9932_s21, %s10093_s29  ;;  %p36_p13 = scmp.ne.s32.totalorder %s9928_s20, %s9924_s19 }
  0x3f   : > { %p27_p6 = scmp.eq.s32.totalorder %s26_s17, 0  ;;  %p37_p10 = scmp.eq.s32.totalorder %s9932_s21, 0 }
  0x40   : > { %p13182_p3 = scmp.eq.s32.totalorder %s9998_s22, 1  ;;  %p8940_p7 = scmp.lt.s32.totalorder %s9932_s21, 2 }
  0x41   : > { %s10109_s27 = scalar_select %p27_p6, %s9928_s20, %s29_s14  }
  0x42   : > { %p10103_p5 = por %p13182_p3, %p36_p13  ;;  %p38_p9 = por %p37_p10, %p36_p13 }
  0x43   : > { %s208_s30 = sand.u32 1, %s9928_s20   ;;  %s7332_s6 = sshll.u32 %s9932_s21, 11 }
  0x44   : > { %s13183_s23 = scalar_select %p10103_p5, 1, 0 }
  0x45   : > { %s6932_s7 = sshll.u32 %s208_s30, 7  ;;  %s10116_s10 = scalar_lea.hbm %s13069_s0, %s7332_s6 }
  0x46   : > { %s212_s11 = scalar_lea.vmem [#allocation2], %s6932_s7  ;;  %p10120_p11 = pnand %p8940_p7, %p38_p9 }
  0x47   : > { %s220_s28 = sshll.u32 %s212_s11, 4  ;;  %s10124_s13 = scalar_lea.sflag [#allocation3], %s208_s30  ;;  %s10118_s28 = int_to_ptr.vmem [resolvable:$true] %s220_s28 }
  0x48   : > { %s9832_s14 = scalar_lea.hbm %s10116_s10, 2048  ;;  %p9834_p0 = pneg %p10120_p11 }
  0x49   : > { %p9833_p12 = scmp.ne.s32.totalorder %s10116_s10, %s9832_s14  ;;  %s9837_s6 = scalar_lea.hbm %s13069_s0, 4096 }
  0x4a   : > { %p9838_p13 = scmp.lt.u32.totalorder %s10116_s10, %s13069_s0  ;;  %p9839_p6 = scmp.lt.u32.totalorder %s9837_s6, %s9832_s14 }
  0x4b   : > { %p9835_p1 = pnand %p9834_p0, %p9833_p12  ;;  %p9841_p3 = scmp.lt.u32.totalorder %s9832_s14, %s10116_s10 }
  0x4c   : > { %p9840_p10 = por %p9839_p6, %p9838_p13 }
  0x4d   : > { %p9836_p2 = pneg %p9835_p1 }
  0x4e   : > { %p9842_p7 = por %p9841_p3, %p9840_p10 }
  0x50   : > { %p9843_p9 = pnand %p9842_p7, %p9836_p2 }
  0x52   : > { %9846 = shalt.err (!%p9843_p9)
}
  0x53   : > { %s9847_s30 = scalar_lea.vmem %s10118_s28, 2048  ;;  %s9938_s11 = smov [#allocation2]  }
  0x54   : > { %p9848_p12 = scmp.ne.s32.totalorder %s10118_s28, %s9847_s30  ;;  %s9852_s17 = sshll.u32 %s9938_s11, 4  ;;  %s9853_s17 = int_to_ptr.vmem [resolvable:$false] %s9852_s17 }
  0x55   : > { %s9854_s7 = scalar_lea.vmem %s9853_s17, 4096  ;;  %p9855_p4 = scmp.lt.s32.totalorder %s10118_s28, %s9853_s17 }
  0x56   : > { %p9850_p1 = pnand %p9848_p12, %p9834_p0  ;;  %p9856_p13 = scmp.lt.s32.totalorder %s9854_s7, %s9847_s30 }
  0x58   : > { %p9851_p5 = pneg %p9850_p1  ;;  %p9857_p6 = por %p9856_p13, %p9855_p4 }
  0x5a   : > { %p9858_p10 = pnand %p9857_p6, %p9851_p5 }
  0x5c   : > { %9861 = shalt.err (!%p9858_p10)
}
  0x5d   : > { %8933 = dma.hbm_to_vmem [thread:$0]  (!%p10120_p11), %s10116_s10, 2048, %s10118_s28, %s10124_s13, %s9936_s15, %s9936_s15, %s9937_s16  }
  0x5e   : > { %232 = sbr.rel (%p10017_p8) target bundleno = 3886 (0xf2e), region = 40 }
  0x65   : > { %s10158_s14 = sand.u32 1, %s9924_s19   ;;  %p13185_p4 = scmp.ne.s32.totalorder %s13178_s24, 0 }
  0x66   : > { %s6937_s6 = sshll.u32 %s10158_s14, 7  ;;  %s235_s8 = scalar_lea.sflag [#allocation3], %s10158_s14 }
  0x67   : > { %s10164_s12 = scalar_lea.vmem [#allocation2], %s6937_s6 }
  0x68   : > { %9907 = dma.done.wait (%p13185_p4), %s235_s8, 2048  }
  0x69   : > { %9909 = vsyncadd (%p13185_p4), %s235_s8, 4294965248  ;;  %p13186_p5 = scmp.eq.s32.totalorder %s9998_s22, 0 }
  0x6b   : > { %9911 = dma.done.wait (%p13186_p5), [#allocation6], 1024   ;;  %p13187_p8 = pmov %p13186_p5 }
  0x6c   : > { %v275_v0 = vld [vmem:[%s10164_s12] sm:$0xff]  ;;  %v276_v2 = vld [vmem:[%s10164_s12 + $0x8] sm:$0xff]  ;;  %v277_v4 = vld [vmem:[%s10164_s12 + $0x10] sm:$0xff]  ;;  %vm424_vm0 = vcmask 261120   ;;  %vm1307_vm1 = vcmask 130048   ;;  %s9939_s13 = smov 96  }
  0x6d   : > { %9913 = vsyncadd (%p13187_p8), [#allocation6], 4294966272  ;;  %279 = vxpose.xlu0.b32.start [1/4] (short) (narrow) %v275_v0, 64  ;;  %v6941_v1 = vld [vmem:[%s10164_s12 + $0x20] sm:$0xff]  ;;  %v6942_v3 = vld [vmem:[%s10164_s12 + $0x28] sm:$0xff]  ;;  %s9940_s9 = smov 64  }
  0x6e   : > { %316 = vxpose.xlu1.b32.start [1/4] (short) (narrow) %v6941_v1, 64  ;;  %v6943_v5 = vld [vmem:[%s10164_s12 + $0x30] sm:$0xff]  ;;  %v278_v6 = vld [vmem:[%s10164_s12 + $0x18] sm:$0xff]  ;;  %v6945_v24 = vld [vmem:[%s10164_s12 + $0x40] sm:$0xff]  ;;  %vm1960_vm3 = vcmask 523264   ;;  %s9941_s30 = smov 80  }
  0x6f   : > { %v6944_v7 = vld [vmem:[%s10164_s12 + $0x38] sm:$0xff]  ;;  %v6946_v25 = vld [vmem:[%s10164_s12 + $0x48] sm:$0xff]  ;;  %v6947_v26 = vld [vmem:[%s10164_s12 + $0x50] sm:$0xff]  ;;  %s9942_s11 = smov 112   ;;  %s9943_s17 = smov 48  }
  0x70   : > { %v6948_v27 = vld [vmem:[%s10164_s12 + $0x58] sm:$0xff]  ;;  %v6949_v28 = vld [vmem:[%s10164_s12 + $0x60] sm:$0xff]  ;;  %v6950_v29 = vld [vmem:[%s10164_s12 + $0x68] sm:$0xff]  ;;  %s6821_s8 = scalar_lea.sflag [#allocation4], %s10158_s14  ;;  %p13380_p0 = scmp.ne.s32.totalorder %s13183_s23, 0 }
  0x71   : > { %280 = vxpose.xlu0.b32.cont [2/4] (short) (narrow) %v276_v2, 64  ;;  %v6951_v30 = vld [vmem:[%s10164_s12 + $0x70] sm:$0xff]  ;;  %v6952_v31 = vld [vmem:[%s10164_s12 + $0x78] sm:$0xff]  ;;  %vm10783_vm2 = vmpackc.low %vm1307_vm1, %vm1307_vm1 }
  0x72   : > { %317 = vxpose.xlu1.b32.cont [2/4] (short) (narrow) %v6942_v3, 64 }
  0x75   : > { %281 = vxpose.xlu0.b32.cont [3/4] (short) (narrow) %v277_v4, 64 }
  0x76   : > { %318 = vxpose.xlu1.b32.cont [3/4] (short) (narrow) %v6943_v5, 64 }
  0x79   : > { %282 = vxpose.xlu0.b32.end [4/4] (short) (narrow) %v278_v6, 64 }
  0x7a   : > { %319 = vxpose.xlu1.b32.end [4/4] (short) (narrow) %v6944_v7, 64 }
  0xed   : > { %v10182_v8 = vpop.trf.xlu0 }
  0xee   : > { %13188 = vst [vmem:[#allocation12_spill] sm:$0xff] %v10182_v8  ;;  %v425_v9 = vsel %vm424_vm0, %v10182_v8, 0.0  ;;  %v10222_v32 = vpop.trf.xlu1 }
  0xef   : > { %426 = vadd.xlane.f32.xlu0 %v425_v9  ;;  %13196 = vst [vmem:[#allocation20_spill] sm:$0xff] %v10222_v32  ;;  %v449_v35 = vsel %vm424_vm0, %v10222_v32, 0.0 }
  0xf1   : > { %v10186_v10 = vpop.trf.xlu0 }
  0xf2   : > { %13189 = vst [vmem:[#allocation13_spill] sm:$0xff] %v10186_v10  ;;  %v428_v11 = vsel %vm424_vm0, %v10186_v10, 0.0  ;;  %v10224_v33 = vpop.trf.xlu1 }
  0xf3   : > { %429 = vadd.xlane.f32.xlu1 %v428_v11  ;;  %13197 = vst [vmem:[#allocation21_spill] sm:$0xff] %v10224_v33  ;;  %v452_v41 = vsel %vm424_vm0, %v10224_v33, 0.0 }
  0xf5   : > { %v10190_v12 = vpop.trf.xlu0 }
  0xf6   : > { %13190 = vst [vmem:[#allocation14_spill] sm:$0xff] %v10190_v12  ;;  %v431_v13 = vsel %vm424_vm0, %v10190_v12, 0.0  ;;  %v10226_v34 = vpop.trf.xlu1 }
  0xf7   : > { %432 = vadd.xlane.f32.xlu1 %v431_v13  ;;  %13198 = vst [vmem:[#allocation22_spill] sm:$0xff] %v10226_v34  ;;  %v455_v37 = vsel %vm424_vm0, %v10226_v34, 0.0 }
  0xf9   : > { %v10194_v14 = vpop.trf.xlu0 }
  0xfa   : > { %13191 = vst [vmem:[#allocation15_spill] sm:$0xff] %v10194_v14  ;;  %v434_v15 = vsel %vm424_vm0, %v10194_v14, 0.0  ;;  %v10230_v36 = vpop.trf.xlu1 }
  0xfb   : > { %435 = vadd.xlane.f32.xlu1 %v434_v15  ;;  %13199 = vst [vmem:[#allocation23_spill] sm:$0xff] %v10230_v36  ;;  %v458_v38 = vsel %vm424_vm0, %v10230_v36, 0.0 }
  0xfd   : > { %v10198_v16 = vpop.trf.xlu0 }
  0xfe   : > { %13192 = vst [vmem:[#allocation16_spill] sm:$0xff] %v10198_v16  ;;  %v437_v17 = vsel %vm424_vm0, %v10198_v16, 0.0  ;;  %v10236_v39 = vpop.trf.xlu1 }
  0xff   : > { %438 = vadd.xlane.f32.xlu1 %v437_v17  ;;  %13200 = vst [vmem:[#allocation24_spill] sm:$0xff] %v10236_v39  ;;  %v461_v40 = vsel %vm424_vm0, %v10236_v39, 0.0 }
 0x101   : > { %v10202_v18 = vpop.trf.xlu0 }
 0x102   : > { %13193 = vst [vmem:[#allocation17_spill] sm:$0xff] %v10202_v18  ;;  %v440_v19 = vsel %vm424_vm0, %v10202_v18, 0.0  ;;  %v10242_v42 = vpop.trf.xlu1 }
 0x103   : > { %441 = vadd.xlane.f32.xlu1 %v440_v19  ;;  %13201 = vst [vmem:[#allocation25_spill] sm:$0xff] %v10242_v42  ;;  %v464_v50 = vsel %vm424_vm0, %v10242_v42, 0.0 }
 0x105   : > { %v10206_v20 = vpop.trf.xlu0 }
 0x106   : > { %13194 = vst [vmem:[#allocation18_spill] sm:$0xff] %v10206_v20  ;;  %v443_v21 = vsel %vm424_vm0, %v10206_v20, 0.0  ;;  %v10244_v43 = vpop.trf.xlu1 }
 0x107   : > { %444 = vadd.xlane.f32.xlu1 %v443_v21  ;;  %13202 = vst [vmem:[#allocation26_spill] sm:$0xff] %v10244_v43  ;;  %v467_v56 = vsel %vm424_vm0, %v10244_v43, 0.0 }
 0x109   : > { %v10210_v22 = vpop.trf.xlu0 }
 0x10a   : > { %13195 = vst [vmem:[#allocation19_spill] sm:$0xff] %v10210_v22  ;;  %v446_v23 = vsel %vm424_vm0, %v10210_v22, 0.0  ;;  %v10246_v44 = vpop.trf.xlu1 }
 0x10b   : > { %447 = vadd.xlane.f32.xlu1 %v446_v23  ;;  %13203 = vst [vmem:[#allocation27_spill] sm:$0xff] %v10246_v44  ;;  %v470_v60 = vsel %vm424_vm0, %v10246_v44, 0.0 }
 0x11c   : > { %353 = vxpose.xlu0.b32.start [1/4] (short) (narrow) %v6945_v24, 64 }
 0x120   : > { %354 = vxpose.xlu0.b32.cont [2/4] (short) (narrow) %v6946_v25, 64 }
 0x124   : > { %355 = vxpose.xlu0.b32.cont [3/4] (short) (narrow) %v6947_v26, 64 }
 0x128   : > { %356 = vxpose.xlu0.b32.end [4/4] (short) (narrow) %v6948_v27, 64 }
 0x13e   : > { %390 = vxpose.xlu1.b32.start [1/4] (short) (narrow) %v6949_v28, 64 }
 0x142   : > { %391 = vxpose.xlu1.b32.cont [2/4] (short) (narrow) %v6950_v29, 64 }
 0x146   : > { %392 = vxpose.xlu1.b32.cont [3/4] (short) (narrow) %v6951_v30, 64 }
 0x14a   : > { %393 = vxpose.xlu1.b32.end [4/4] (short) (narrow) %v6952_v31, 64 }
 0x165   : > { %450 = vadd.xlane.f32.xlu0 %v449_v35 }
 0x169   : > { %456 = vadd.xlane.f32.xlu0 %v455_v37 }
 0x16d   : > { %459 = vadd.xlane.f32.xlu0 %v458_v38 }
 0x171   : > { %462 = vadd.xlane.f32.xlu0 %v461_v40 }
 0x17c   : > { %v427_v46 = vpop.xlane.xlu0 %426 }
 0x17d   : > { %v522_v11 = vmul.f32 0.03125, %v427_v46 }
 0x17f   : > { %v10293_v17 = vsub.f32 %v10182_v8, %v522_v11 }
 0x180   : > { %v430_v45 = vpop.xlane.xlu1 %429 }
 0x181   : > { %453 = vadd.xlane.f32.xlu1 %v452_v41  ;;  %v523_v19 = vmul.f32 0.03125, %v430_v45  ;;  %v586_v27 = vmul.f32 %v10293_v17, %v10293_v17 }
 0x183   : > { %v10300_v24 = vsub.f32 %v10186_v10, %v523_v19  ;;  %v618_v31 = vsel %vm424_vm0, %v586_v27, 0.0 }
 0x184   : > { %v433_v47 = vpop.xlane.xlu1 %432 }
 0x185   : > { %v524_v25 = vmul.f32 0.03125, %v433_v47  ;;  %v587_v37 = vmul.f32 %v10300_v24, %v10300_v24 }
 0x187   : > { %v10309_v30 = vsub.f32 %v10190_v12, %v524_v25  ;;  %v621_v45 = vsel %vm424_vm0, %v587_v37, 0.0 }
 0x188   : > { %v436_v53 = vpop.xlane.xlu1 %435 }
 0x189   : > { %v525_v28 = vmul.f32 0.03125, %v436_v53  ;;  %v588_v47 = vmul.f32 %v10309_v30, %v10309_v30 }
 0x18b   : > { %v10317_v38 = vsub.f32 %v10194_v14, %v525_v28 }
 0x18c   : > { %v439_v57 = vpop.xlane.xlu1 %438 }
 0x18d   : > { %v526_v40 = vmul.f32 0.03125, %v439_v57 }
 0x190   : > { %v442_v63 = vpop.xlane.xlu1 %441 }
 0x191   : > { %v527_v53 = vmul.f32 0.03125, %v442_v63 }
 0x194   : > { %v445_v2 = vpop.xlane.xlu1 %444 }
 0x198   : > { %v448_v7 = vpop.xlane.xlu1 %447 }
 0x19c   : > { %v10248_v48 = vpop.trf.xlu0 }
 0x19d   : > { %13204 = vst [vmem:[#allocation28_spill] sm:$0xff] %v10248_v48  ;;  %v473_v49 = vsel %vm424_vm0, %v10248_v48, 0.0 }
 0x19e   : > { %474 = vadd.xlane.f32.xlu0 %v473_v49  ;;  %v10327_v49 = vsub.f32 %v10198_v16, %v526_v40  ;;  %v916_v40 = vld [vmem:[#allocation5 + $0x10] sm:$0xff] }
 0x1a0   : > { %v10254_v51 = vpop.trf.xlu0 }
 0x1a1   : > { %13205 = vst [vmem:[#allocation29_spill] sm:$0xff] %v10254_v51  ;;  %v476_v52 = vsel %vm424_vm0, %v10254_v51, 0.0 }
 0x1a2   : > { %465 = vadd.xlane.f32.xlu0 %v464_v50  ;;  %477 = vadd.xlane.f32.xlu1 %v476_v52  ;;  %v589_v52 = vmul.f32 %v10317_v38, %v10317_v38 }
 0x1a4   : > { %v10258_v54 = vpop.trf.xlu0 }
 0x1a5   : > { %13206 = vst [vmem:[#allocation30_spill] sm:$0xff] %v10258_v54  ;;  %v479_v55 = vsel %vm424_vm0, %v10258_v54, 0.0 }
 0x1a6   : > { %480 = vadd.xlane.f32.xlu0 %v479_v55  ;;  %v528_v55 = vmul.f32 0.03125, %v445_v2  ;;  %v529_v2 = vmul.f32 0.03125, %v448_v7 }
 0x1a8   : > { %v10264_v58 = vpop.trf.xlu0  ;;  %v10345_v63 = vsub.f32 %v10206_v20, %v528_v55 }
 0x1a9   : > { %13207 = vst [vmem:[#allocation31_spill] sm:$0xff] %v10264_v58  ;;  %v482_v59 = vsel %vm424_vm0, %v10264_v58, 0.0 }
 0x1aa   : > { %468 = vadd.xlane.f32.xlu0 %v467_v56  ;;  %483 = vadd.xlane.f32.xlu1 %v482_v59  ;;  %v624_v56 = vsel %vm424_vm0, %v588_v47, 0.0 }
 0x1ac   : > { %v10270_v61 = vpop.trf.xlu0 }
 0x1ad   : > { %13208 = vst [vmem:[#allocation32_spill] sm:$0xff] %v10270_v61  ;;  %v485_v62 = vsel %vm424_vm0, %v10270_v61, 0.0 }
 0x1ae   : > { %471 = vadd.xlane.f32.xlu0 %v470_v60  ;;  %486 = vadd.xlane.f32.xlu1 %v485_v62  ;;  %v627_v60 = vsel %vm424_vm0, %v589_v52, 0.0  ;;  %v590_v62 = vmul.f32 %v10327_v49, %v10327_v49 }
 0x1b0   : > { %v10274_v0 = vpop.trf.xlu0  ;;  %v630_v11 = vsel %vm424_vm0, %v590_v62, 0.0 }
 0x1b1   : > { %13209 = vst [vmem:[#allocation33_spill] sm:$0xff] %v10274_v0  ;;  %v488_v1 = vsel %vm424_vm0, %v10274_v0, 0.0 }
 0x1b2   : > { %489 = vadd.xlane.f32.xlu1 %v488_v1  ;;  %v10342_v1 = vsub.f32 %v10202_v18, %v527_v53 }
 0x1b4   : > { %v10278_v3 = vpop.trf.xlu0  ;;  %v591_v7 = vmul.f32 %v10342_v1, %v10342_v1 }
 0x1b5   : > { %13210 = vst [vmem:[#allocation34_spill] sm:$0xff] %v10278_v3  ;;  %v491_v4 = vsel %vm424_vm0, %v10278_v3, 0.0 }
 0x1b6   : > { %492 = vadd.xlane.f32.xlu0 %v491_v4 }
 0x1b8   : > { %v10282_v5 = vpop.trf.xlu0 }
 0x1b9   : > { %13211 = vst [vmem:[#allocation35_spill] sm:$0xff] %v10282_v5  ;;  %v494_v6 = vsel %vm424_vm0, %v10282_v5, 0.0 }
 0x1ba   : > { %495 = vadd.xlane.f32.xlu1 %v494_v6 }
 0x1be   : > { %v10286_v9 = vpop.trf.xlu1 }
 0x1bf   : > { %13212 = vst [vmem:[#allocation36_spill] sm:$0xff] %v10286_v9  ;;  %v497_v13 = vsel %vm424_vm0, %v10286_v9, 0.0 }
 0x1c0   : > { %498 = vadd.xlane.f32.xlu0 %v497_v13  ;;  %v10353_v13 = vsub.f32 %v10210_v22, %v529_v2 }
 0x1c2   : > { %v10290_v15 = vpop.trf.xlu1  ;;  %v593_v27 = vmul.f32 %v10353_v13, %v10353_v13 }
 0x1c3   : > { %13213 = vst [vmem:[#allocation37_spill] sm:$0xff] %v10290_v15  ;;  %v500_v21 = vsel %vm424_vm0, %v10290_v15, 0.0 }
 0x1c4   : > { %501 = vadd.xlane.f32.xlu1 %v500_v21  ;;  %v592_v21 = vmul.f32 %v10345_v63, %v10345_v63  ;;  %v639_v28 = vsel %vm424_vm0, %v593_v27, 0.0 }
 0x1c6   : > { %v10297_v23 = vpop.trf.xlu1  ;;  %v636_v25 = vsel %vm424_vm0, %v592_v21, 0.0 }
 0x1c7   : > { %13214 = vst [vmem:[#allocation38_spill] sm:$0xff] %v10297_v23  ;;  %v503_v26 = vsel %vm424_vm0, %v10297_v23, 0.0 }
 0x1c8   : > { %504 = vadd.xlane.f32.xlu0 %v503_v26  ;;  %v633_v26 = vsel %vm424_vm0, %v591_v7, 0.0 }
 0x1ca   : > { %v10306_v29 = vpop.trf.xlu1 }
 0x1cb   : > { %13215 = vst [vmem:[#allocation39_spill] sm:$0xff] %v10306_v29  ;;  %v506_v35 = vsel %vm424_vm0, %v10306_v29, 0.0 }
 0x1cc   : > { %619 = vadd.xlane.f32.xlu0 %v618_v31  ;;  %507 = vadd.xlane.f32.xlu1 %v506_v35  ;;  %v914_v31 = vld [vmem:[#allocation5] sm:$0xff]  ;;  %v915_v35 = vld [vmem:[#allocation5 + $0x8] sm:$0xff] }
 0x1cd   : > { %v8487_v37 = vpack.c.bf16 %v915_v35, %v914_v31 }
 0x1ce   : > { %v10319_v41 = vpop.trf.xlu1 }
 0x1cf   : > { %13216 = vst [vmem:[#allocation40_spill] sm:$0xff] %v10319_v41  ;;  %v509_v46 = vsel %vm424_vm0, %v10319_v41, 0.0  ;;  %8488 = vmatprep.subr.bf16.mxu0 %v8487_v37  ;;  %8839 = vmatprep.subr.bf16.mxu1 %v8487_v37 }
 0x1d0   : > { %622 = vadd.xlane.f32.xlu0 %v621_v45  ;;  %510 = vadd.xlane.f32.xlu1 %v509_v46  ;;  %v917_v45 = vld [vmem:[#allocation5 + $0x18] sm:$0xff] }
 0x1d1   : > { %8490 = vmatpush3.bf16.msra.mxu0 %v8487_v37  ;;  %8841 = vmatpush3.bf16.msra.mxu1 %v8487_v37  ;;  %v8491_v46 = vpack.c.bf16 %v917_v45, %v916_v40 }
 0x1d2   : > { %v10329_v50 = vpop.trf.xlu1 }
 0x1d3   : > { %13217 = vst [vmem:[#allocation41_spill] sm:$0xff] %v10329_v50  ;;  %v512_v57 = vsel %vm424_vm0, %v10329_v50, 0.0  ;;  %8492 = vmatprep.subr.bf16.mxu0 %v8491_v46  ;;  %8840 = vmatprep.subr.bf16.mxu1 %v8491_v46 }
 0x1d4   : > { %625 = vadd.xlane.f32.xlu0 %v624_v56  ;;  %513 = vadd.xlane.f32.xlu1 %v512_v57 }
 0x1d5   : > { %8494 = vmatpush3.bf16.msra.mxu0 %v8491_v46  ;;  %8842 = vmatpush3.bf16.msra.mxu1 %v8491_v46 }
 0x1d6   : > { %v10336_v59 = vpop.trf.xlu1 }
 0x1d7   : > { %13218 = vst [vmem:[#allocation42_spill] sm:$0xff] %v10336_v59  ;;  %v515_v4 = vsel %vm424_vm0, %v10336_v59, 0.0 }
 0x1d8   : > { %628 = vadd.xlane.f32.xlu0 %v627_v60  ;;  %516 = vadd.xlane.f32.xlu1 %v515_v4 }
 0x1da   : > { %v10349_v6 = vpop.trf.xlu1 }
 0x1db   : > { %13219 = vst [vmem:[#allocation43_spill] sm:$0xff] %v10349_v6  ;;  %v518_v19 = vsel %vm424_vm0, %v10349_v6, 0.0 }
 0x1dc   : > { %631 = vadd.xlane.f32.xlu0 %v630_v11  ;;  %519 = vadd.xlane.f32.xlu1 %v518_v19 }
 0x1e0   : > { %637 = vadd.xlane.f32.xlu0 %v636_v25  ;;  %634 = vadd.xlane.f32.xlu1 %v633_v26 }
 0x1e4   : > { %640 = vadd.xlane.f32.xlu1 %v639_v28 }
 0x1f2   : > { %v451_v47 = vpop.xlane.xlu0 %450 }
 0x1f3   : > { %v530_v52 = vmul.f32 0.03125, %v451_v47 }
 0x1f5   : > { %v10367_v53 = vsub.f32 %v10222_v32, %v530_v52 }
 0x1f6   : > { %v457_v55 = vpop.xlane.xlu0 %456 }
 0x1f7   : > { %v532_v56 = vmul.f32 0.03125, %v457_v55  ;;  %v594_v57 = vmul.f32 %v10367_v53, %v10367_v53 }
 0x1f9   : > { %v10372_v60 = vsub.f32 %v10226_v34, %v532_v56  ;;  %v642_v62 = vsel %vm424_vm0, %v594_v57, 0.0 }
 0x1fa   : > { %643 = vadd.xlane.f32.xlu0 %v642_v62  ;;  %v460_v2 = vpop.xlane.xlu0 %459 }
 0x1fb   : > { %v596_v4 = vmul.f32 %v10372_v60, %v10372_v60  ;;  %v533_v27 = vmul.f32 0.03125, %v460_v2 }
 0x1fd   : > { %v648_v11 = vsel %vm424_vm0, %v596_v4, 0.0  ;;  %v10385_v35 = vsub.f32 %v10230_v36, %v533_v27 }
 0x1fe   : > { %649 = vadd.xlane.f32.xlu0 %v648_v11  ;;  %v463_v19 = vpop.xlane.xlu0 %462 }
 0x1ff   : > { %v534_v21 = vmul.f32 0.03125, %v463_v19  ;;  %v597_v46 = vmul.f32 %v10385_v35, %v10385_v35 }
 0x201   : > { %v10379_v7 = vsub.f32 %v10236_v39, %v534_v21  ;;  %v651_v47 = vsel %vm424_vm0, %v597_v46, 0.0 }
 0x203   : > { %v598_v25 = vmul.f32 %v10379_v7, %v10379_v7 }
 0x205   : > { %v654_v26 = vsel %vm424_vm0, %v598_v25, 0.0 }
 0x206   : > { %655 = vadd.xlane.f32.xlu0 %v654_v26 }
 0x20e   : > { %v454_v28 = vpop.xlane.xlu1 %453 }
 0x20f   : > { %v531_v31 = vmul.f32 0.03125, %v454_v28 }
 0x211   : > { %v10388_v37 = vsub.f32 %v10224_v33, %v531_v31 }
 0x213   : > { %v595_v40 = vmul.f32 %v10388_v37, %v10388_v37 }
 0x215   : > { %v645_v45 = vsel %vm424_vm0, %v595_v40, 0.0 }
 0x216   : > { %646 = vadd.xlane.f32.xlu1 %v645_v45 }
 0x21a   : > { %652 = vadd.xlane.f32.xlu1 %v651_v47 }
 0x22b   : > { %v475_v52 = vpop.xlane.xlu0 %474 }
 0x22c   : > { %v538_v55 = vmul.f32 0.03125, %v475_v52 }
 0x22e   : > { %v10397_v56 = vsub.f32 %v10248_v48, %v538_v55 }
 0x22f   : > { %v478_v57 = vpop.xlane.xlu1 %477  ;;  %v466_v62 = vpop.xlane.xlu0 %465 }
 0x230   : > { %v539_v2 = vmul.f32 0.03125, %v478_v57  ;;  %v535_v4 = vmul.f32 0.03125, %v466_v62  ;;  %v602_v11 = vmul.f32 %v10397_v56, %v10397_v56 }
 0x232   : > { %v10402_v19 = vsub.f32 %v10254_v51, %v539_v2  ;;  %v10405_v21 = vsub.f32 %v10242_v42, %v535_v4  ;;  %v666_v25 = vsel %vm424_vm0, %v602_v11, 0.0 }
 0x233   : > { %667 = vadd.xlane.f32.xlu1 %v666_v25  ;;  %v481_v26 = vpop.xlane.xlu0 %480 }
 0x234   : > { %v540_v27 = vmul.f32 0.03125, %v481_v26  ;;  %v603_v28 = vmul.f32 %v10402_v19, %v10402_v19  ;;  %v599_v31 = vmul.f32 %v10405_v21, %v10405_v21 }
 0x236   : > { %v10413_v40 = vsub.f32 %v10258_v54, %v540_v27  ;;  %v669_v45 = vsel %vm424_vm0, %v603_v28, 0.0  ;;  %v657_v46 = vsel %vm424_vm0, %v599_v31, 0.0 }
 0x237   : > { %v484_v47 = vpop.xlane.xlu1 %483  ;;  %670 = vadd.xlane.f32.xlu1 %v669_v45  ;;  %658 = vadd.xlane.f32.xlu0 %v657_v46  ;;  %v469_v52 = vpop.xlane.xlu0 %468 }
 0x238   : > { %v541_v55 = vmul.f32 0.03125, %v484_v47  ;;  %v536_v57 = vmul.f32 0.03125, %v469_v52  ;;  %v604_v62 = vmul.f32 %v10413_v40, %v10413_v40 }
 0x23a   : > { %v10420_v2 = vsub.f32 %v10264_v58, %v541_v55  ;;  %v10423_v4 = vsub.f32 %v10244_v43, %v536_v57  ;;  %v672_v11 = vsel %vm424_vm0, %v604_v62, 0.0 }
 0x23b   : > { %v487_v25 = vpop.xlane.xlu1 %486  ;;  %673 = vadd.xlane.f32.xlu0 %v672_v11  ;;  %v472_v26 = vpop.xlane.xlu0 %471 }
 0x23c   : > { %v542_v27 = vmul.f32 0.03125, %v487_v25  ;;  %v537_v28 = vmul.f32 0.03125, %v472_v26  ;;  %v605_v31 = vmul.f32 %v10420_v2, %v10420_v2  ;;  %v600_v45 = vmul.f32 %v10423_v4, %v10423_v4 }
 0x23e   : > { %v10431_v46 = vsub.f32 %v10270_v61, %v542_v27  ;;  %v10434_v47 = vsub.f32 %v10246_v44, %v537_v28  ;;  %v675_v52 = vsel %vm424_vm0, %v605_v31, 0.0  ;;  %v660_v55 = vsel %vm424_vm0, %v600_v45, 0.0 }
 0x23f   : > { %v490_v57 = vpop.xlane.xlu1 %489  ;;  %676 = vadd.xlane.f32.xlu1 %v675_v52  ;;  %661 = vadd.xlane.f32.xlu0 %v660_v55 }
 0x240   : > { %v543_v62 = vmul.f32 0.03125, %v490_v57  ;;  %v606_v11 = vmul.f32 %v10431_v46, %v10431_v46  ;;  %v601_v25 = vmul.f32 %v10434_v47, %v10434_v47 }
 0x242   : > { %v10443_v26 = vsub.f32 %v10274_v0, %v543_v62  ;;  %v678_v27 = vsel %vm424_vm0, %v606_v11, 0.0  ;;  %v663_v28 = vsel %vm424_vm0, %v601_v25, 0.0 }
 0x243   : > { %679 = vadd.xlane.f32.xlu1 %v678_v27  ;;  %664 = vadd.xlane.f32.xlu0 %v663_v28  ;;  %v493_v31 = vpop.xlane.xlu0 %492 }
 0x244   : > { %v544_v45 = vmul.f32 0.03125, %v493_v31  ;;  %v607_v52 = vmul.f32 %v10443_v26, %v10443_v26 }
 0x246   : > { %v10450_v55 = vsub.f32 %v10278_v3, %v544_v45  ;;  %v681_v57 = vsel %vm424_vm0, %v607_v52, 0.0 }
 0x247   : > { %v496_v61 = vpop.xlane.xlu1 %495  ;;  %682 = vadd.xlane.f32.xlu1 %v681_v57 }
 0x248   : > { %v545_v62 = vmul.f32 0.03125, %v496_v61  ;;  %v608_v11 = vmul.f32 %v10450_v55, %v10450_v55 }
 0x24a   : > { %v10456_v25 = vsub.f32 %v10282_v5, %v545_v62  ;;  %v684_v27 = vsel %vm424_vm0, %v608_v11, 0.0 }
 0x24b   : > { %685 = vadd.xlane.f32.xlu0 %v684_v27 }
 0x24c   : > { %v609_v28 = vmul.f32 %v10456_v25, %v10456_v25 }
 0x24d   : > { %v499_v31 = vpop.xlane.xlu0 %498 }
 0x24e   : > { %v546_v45 = vmul.f32 0.03125, %v499_v31  ;;  %v687_v3 = vsel %vm424_vm0, %v609_v28, 0.0 }
 0x24f   : > { %688 = vadd.xlane.f32.xlu1 %v687_v3 }
 0x250   : > { %v10463_v52 = vsub.f32 %v10286_v9, %v546_v45 }
 0x251   : > { %v502_v61 = vpop.xlane.xlu1 %501 }
 0x252   : > { %v547_v57 = vmul.f32 0.03125, %v502_v61  ;;  %v610_v62 = vmul.f32 %v10463_v52, %v10463_v52 }
 0x254   : > { %v10468_v5 = vsub.f32 %v10290_v15, %v547_v57  ;;  %v690_v11 = vsel %vm424_vm0, %v610_v62, 0.0 }
 0x255   : > { %691 = vadd.xlane.f32.xlu0 %v690_v11  ;;  %v505_v27 = vpop.xlane.xlu0 %504 }
 0x256   : > { %v548_v0 = vmul.f32 0.03125, %v505_v27  ;;  %v611_v28 = vmul.f32 %v10468_v5, %v10468_v5 }
 0x258   : > { %v10474_v3 = vsub.f32 %v10297_v23, %v548_v0  ;;  %v693_v31 = vsel %vm424_vm0, %v611_v28, 0.0 }
 0x259   : > { %v508_v45 = vpop.xlane.xlu1 %507  ;;  %694 = vadd.xlane.f32.xlu1 %v693_v31  ;;  %v620_v61 = vpop.xlane.xlu0 %619 }
 0x25a   : > { %v549_v9 = vmul.f32 0.03125, %v508_v45  ;;  %v714_v54 = vmul.f32 0.03125, %v620_v61  ;;  %v612_v57 = vmul.f32 %v10474_v3, %v10474_v3 }
 0x25c   : > { %v10480_v62 = vsub.f32 %v10306_v29, %v549_v9  ;;  %v746_v11 = vadd.f32 1e-05, %v714_v54  ;;  %v696_v27 = vsel %vm424_vm0, %v612_v57, 0.0 }
 0x25d   : > { %v511_v15 = vpop.xlane.xlu1 %510  ;;  %697 = vadd.xlane.f32.xlu0 %v696_v27  ;;  %v623_v0 = vpop.xlane.xlu0 %622 }
 0x25e   : > { %9328 = vrsqrt.f32 %v746_v11  ;;  %v550_v23 = vmul.f32 0.03125, %v511_v15  ;;  %v715_v28 = vmul.f32 0.03125, %v623_v0  ;;  %v613_v31 = vmul.f32 %v10480_v62, %v10480_v62 }
 0x260   : > { %v10486_v45 = vsub.f32 %v10319_v41, %v550_v23  ;;  %v747_v61 = vadd.f32 1e-05, %v715_v28  ;;  %v699_v58 = vsel %vm424_vm0, %v613_v31, 0.0 }
 0x261   : > { %v514_v9 = vpop.xlane.xlu1 %513  ;;  %700 = vadd.xlane.f32.xlu1 %v699_v58  ;;  %v626_v54 = vpop.xlane.xlu0 %625 }
 0x262   : > { %9330 = vrsqrt.f32 %v747_v61  ;;  %v551_v57 = vmul.f32 0.03125, %v514_v9  ;;  %v716_v29 = vmul.f32 0.03125, %v626_v54  ;;  %v614_v11 = vmul.f32 %v10486_v45, %v10486_v45 }
 0x264   : > { %v10492_v15 = vsub.f32 %v10329_v50, %v551_v57  ;;  %v748_v27 = vadd.f32 1e-05, %v716_v29  ;;  %v702_v0 = vsel %vm424_vm0, %v614_v11, 0.0  ;;  %v10504_v29 = vld [vmem:[%s13073_s4] ss:$0 sm:$0xff] }
 0x265   : > { %v517_v23 = vpop.xlane.xlu1 %516  ;;  %703 = vadd.xlane.f32.xlu0 %v702_v0  ;;  %v629_v28 = vpop.xlane.xlu0 %628 }
 0x266   : > { %9332 = vrsqrt.f32 %v748_v27  ;;  %v552_v31 = vmul.f32 0.03125, %v517_v23  ;;  %v717_v41 = vmul.f32 0.03125, %v629_v28  ;;  %v615_v58 = vmul.f32 %v10492_v15, %v10492_v15 }
 0x268   : > { %v9329_v61 = vpop.eup %9328  ;;  %v10498_v9 = vsub.f32 %v10336_v59, %v552_v31  ;;  %v749_v54 = vadd.f32 1e-05, %v717_v41  ;;  %v705_v57 = vsel %vm424_vm0, %v615_v58, 0.0  ;;  %v10512_v41 = vld [vmem:[%s13073_s4 + $0x1] ss:$0 sm:$0xff] }
 0x269   : > { %v520_v11 = vpop.xlane.xlu1 %519  ;;  %706 = vadd.xlane.f32.xlu1 %v705_v57  ;;  %v632_v27 = vpop.xlane.xlu0 %631  ;;  %v810_v0 = vmul.f32 %v9329_v61, %v10293_v17 }
 0x26a   : > { %9334 = vrsqrt.f32 %v749_v54  ;;  %v553_v23 = vmul.f32 0.03125, %v520_v11  ;;  %v718_v28 = vmul.f32 0.03125, %v632_v27  ;;  %v616_v31 = vmul.f32 %v10498_v9, %v10498_v9 }
 0x26b   : > { %v846_v58 = vmul.f32 %v10504_v29, %v810_v0 }
 0x26c   : > { %v9331_v59 = vpop.eup %9330  ;;  %v10516_v50 = vsub.f32 %v10349_v6, %v553_v23  ;;  %v750_v57 = vadd.f32 1e-05, %v718_v28  ;;  %v708_v17 = vsel %vm424_vm0, %v616_v31, 0.0 }
 0x26d   : > { %v635_v61 = vpop.xlane.xlu1 %634  ;;  %709 = vadd.xlane.f32.xlu0 %v708_v17  ;;  %v638_v54 = vpop.xlane.xlu0 %637  ;;  %v882_v11 = vadd.f32 %v10512_v41, %v846_v58  ;;  %v811_v27 = vmul.f32 %v9331_v59, %v10300_v24 }
 0x26e   : > { %9336 = vrsqrt.f32 %v750_v57  ;;  %v719_v48 = vmul.f32 0.03125, %v635_v61  ;;  %v720_v51 = vmul.f32 0.03125, %v638_v54  ;;  %v617_v0 = vmul.f32 %v10516_v50, %v10516_v50 }
 0x26f   : > { %7775 = vmatprep.mubr.msk.f32.mxu0 %vm424_vm0, %v882_v11  ;;  %v847_v23 = vmul.f32 %v10504_v29, %v811_v27 }
 0x270   : > { %v9333_v28 = vpop.eup %9332  ;;  %v751_v6 = vadd.f32 1e-05, %v719_v48  ;;  %v752_v31 = vadd.f32 1e-05, %v720_v51  ;;  %v711_v17 = vsel %vm424_vm0, %v617_v0, 0.0 }
 0x271   : > { %v641_v43 = vpop.xlane.xlu1 %640  ;;  %712 = vadd.xlane.f32.xlu1 %v711_v17  ;;  %v883_v58 = vadd.f32 %v10512_v41, %v847_v23  ;;  %v812_v24 = vmul.f32 %v9333_v28, %v10309_v30 }
 0x272   : > { %9338 = vrsqrt.f32 %v751_v6  ;;  %v721_v59 = vmul.f32 0.03125, %v641_v43 }
 0x273   : > { %9340 = vrsqrt.f32 %v752_v31  ;;  %7776 = vmatmul.mubr.msk.f32.vlgmr.msra.gmra.mrb[0].mxu0 %vm424_vm0, %v883_v58  ;;  %v848_v57 = vmul.f32 %v10504_v29, %v812_v24 }
 0x274   : > { %v9335_v61 = vpop.eup %9334  ;;  %v753_v54 = vadd.f32 1e-05, %v721_v59 }
 0x275   : > { %v884_v48 = vadd.f32 %v10512_v41, %v848_v57  ;;  %v813_v51 = vmul.f32 %v9335_v61, %v10317_v38 }
 0x276   : > { %9342 = vrsqrt.f32 %v753_v54 }
 0x277   : > { %7778 = vmatprep.mubr.msk.f32.mxu0 %vm424_vm0, %v884_v48  ;;  %v849_v11 = vmul.f32 %v10504_v29, %v813_v51 }
 0x278   : > { %v9337_v27 = vpop.eup %9336 }
 0x279   : > { %v885_v30 = vadd.f32 %v10512_v41, %v849_v11  ;;  %v814_v43 = vmul.f32 %v9337_v27, %v10327_v49 }
 0x27b   : > { %7779 = vmatmul.mubr.msk.f32.gmra.mrb[2].mxu0 %vm424_vm0, %v885_v30  ;;  %v850_v6 = vmul.f32 %v10504_v29, %v814_v43 }
 0x27c   : > { %v9339_v0 = vpop.eup %9338 }
 0x27d   : > { %v9341_v23 = vpop.eup %9340  ;;  %v886_v28 = vadd.f32 %v10512_v41, %v850_v6  ;;  %v815_v38 = vmul.f32 %v9339_v0, %v10342_v1 }
 0x27e   : > { %v816_v31 = vmul.f32 %v9341_v23, %v10345_v63 }
 0x27f   : > { %7781 = vmatprep.mubr.msk.f32.mxu0 %vm424_vm0, %v886_v28  ;;  %v851_v17 = vmul.f32 %v10504_v29, %v815_v38 }
 0x280   : > { %v9343_v58 = vpop.eup %9342  ;;  %v852_v24 = vmul.f32 %v10504_v29, %v816_v31 }
 0x281   : > { %v887_v49 = vadd.f32 %v10512_v41, %v851_v17  ;;  %v817_v59 = vmul.f32 %v9343_v58, %v10353_v13 }
 0x282   : > { %v888_v57 = vadd.f32 %v10512_v41, %v852_v24 }
 0x283   : > { %7782 = vmatmul.mubr.msk.f32.gmra.mrb[4].mxu0 %vm424_vm0, %v887_v49  ;;  %v853_v61 = vmul.f32 %v10504_v29, %v817_v59 }
 0x284   : > { %7784 = vmatprep.mubr.msk.f32.mxu0 %vm424_vm0, %v888_v57 }
 0x285   : > { %v889_v1 = vadd.f32 %v10512_v41, %v853_v61 }
 0x287   : > { %7785 = vmatmul.mubr.msk.f32.gmra.mrb[6].mxu0 %vm424_vm0, %v889_v1  ;;  %v644_v63 = vpop.xlane.xlu0 %643 }
 0x288   : > { %v722_v54 = vmul.f32 0.03125, %v644_v63 }
 0x28a   : > { %v754_v48 = vadd.f32 1e-05, %v722_v54 }
 0x28b   : > { %v650_v13 = vpop.xlane.xlu0 %649 }
 0x28c   : > { %9344 = vrsqrt.f32 %v754_v48  ;;  %v724_v30 = vmul.f32 0.03125, %v650_v13 }
 0x28e   : > { %v756_v0 = vadd.f32 1e-05, %v724_v30 }
 0x290   : > { %9346 = vrsqrt.f32 %v756_v0 }
 0x293   : > { %v656_v6 = vpop.xlane.xlu0 %655 }
 0x294   : > { %v726_v23 = vmul.f32 0.03125, %v656_v6 }
 0x296   : > { %v9345_v51 = vpop.eup %9344  ;;  %v758_v28 = vadd.f32 1e-05, %v726_v23 }
 0x297   : > { %v818_v11 = vmul.f32 %v9345_v51, %v10367_v53 }
 0x298   : > { %9348 = vrsqrt.f32 %v758_v28 }
 0x299   : > { %v854_v27 = vmul.f32 %v10504_v29, %v818_v11 }
 0x29a   : > { %v9347_v49 = vpop.eup %9346 }
 0x29b   : > { %v890_v43 = vadd.f32 %v10512_v41, %v854_v27  ;;  %v820_v59 = vmul.f32 %v9347_v49, %v10372_v60 }
 0x29d   : > { %7787 = vmatprep.mubr.msk.f32.mxu0 %vm424_vm0, %v890_v43  ;;  %v856_v63 = vmul.f32 %v10504_v29, %v820_v59 }
 0x29f   : > { %v892_v27 = vadd.f32 %v10512_v41, %v856_v63 }
 0x2a2   : > { %v9349_v57 = vpop.eup %9348 }
 0x2a3   : > { %v647_v38 = vpop.xlane.xlu1 %646  ;;  %v822_v54 = vmul.f32 %v9349_v57, %v10379_v7 }
 0x2a4   : > { %v723_v31 = vmul.f32 0.03125, %v647_v38 }
 0x2a5   : > { %v858_v30 = vmul.f32 %v10504_v29, %v822_v54 }
 0x2a6   : > { %v755_v17 = vadd.f32 1e-05, %v723_v31 }
 0x2a7   : > { %v653_v58 = vpop.xlane.xlu1 %652  ;;  %v894_v7 = vadd.f32 %v10512_v41, %v858_v30 }
 0x2a8   : > { %9350 = vrsqrt.f32 %v755_v17  ;;  %v725_v53 = vmul.f32 0.03125, %v653_v58 }
 0x2aa   : > { %v757_v24 = vadd.f32 1e-05, %v725_v53 }
 0x2ac   : > { %9352 = vrsqrt.f32 %v757_v24 }
 0x2b2   : > { %v9351_v61 = vpop.eup %9350 }
 0x2b3   : > { %v819_v1 = vmul.f32 %v9351_v61, %v10388_v37 }
 0x2b5   : > { %v855_v48 = vmul.f32 %v10504_v29, %v819_v1 }
 0x2b6   : > { %v9353_v51 = vpop.eup %9352 }
 0x2b7   : > { %v891_v11 = vadd.f32 %v10512_v41, %v855_v48  ;;  %v821_v13 = vmul.f32 %v9353_v51, %v10385_v35 }
 0x2b9   : > { %7788 = vmatmul.mubr.msk.f32.gmra.mrb[8].mxu0 %vm424_vm0, %v891_v11  ;;  %v857_v60 = vmul.f32 %v10504_v29, %v821_v13 }
 0x2ba   : > { %7790 = vmatprep.mubr.msk.f32.mxu0 %vm424_vm0, %v892_v27 }
 0x2bb   : > { %v893_v37 = vadd.f32 %v10512_v41, %v857_v60 }
 0x2bd   : > { %7791 = vmatmul.mubr.msk.f32.gmra.mrb[10].mxu0 %vm424_vm0, %v893_v37 }
 0x2be   : > { %7793 = vmatprep.mubr.msk.f32.mxu0 %vm424_vm0, %v894_v7 }
 0x2c0   : > { %v668_v43 = vpop.xlane.xlu1 %667 }
 0x2c1   : > { %v730_v35 = vmul.f32 0.03125, %v668_v43 }
 0x2c3   : > { %v762_v6 = vadd.f32 1e-05, %v730_v35 }
 0x2c4   : > { %v671_v0 = vpop.xlane.xlu1 %670  ;;  %v659_v23 = vpop.xlane.xlu0 %658 }
 0x2c5   : > { %9354 = vrsqrt.f32 %v762_v6  ;;  %v731_v28 = vmul.f32 0.03125, %v671_v0  ;;  %v727_v38 = vmul.f32 0.03125, %v659_v23 }
 0x2c7   : > { %v763_v31 = vadd.f32 1e-05, %v731_v28  ;;  %v759_v17 = vadd.f32 1e-05, %v727_v38 }
 0x2c8   : > { %v674_v58 = vpop.xlane.xlu0 %673 }
 0x2c9   : > { %9356 = vrsqrt.f32 %v763_v31  ;;  %v732_v53 = vmul.f32 0.03125, %v674_v58 }
 0x2ca   : > { %9358 = vrsqrt.f32 %v759_v17 }
 0x2cb   : > { %v764_v24 = vadd.f32 1e-05, %v732_v53 }
 0x2cc   : > { %v677_v49 = vpop.xlane.xlu1 %676  ;;  %v662_v59 = vpop.xlane.xlu0 %661 }
 0x2cd   : > { %9360 = vrsqrt.f32 %v764_v24  ;;  %v733_v57 = vmul.f32 0.03125, %v677_v49  ;;  %v728_v61 = vmul.f32 0.03125, %v662_v59 }
 0x2cf   : > { %v9355_v1 = vpop.eup %9354  ;;  %v765_v63 = vadd.f32 1e-05, %v733_v57  ;;  %v760_v54 = vadd.f32 1e-05, %v728_v61 }
 0x2d0   : > { %v680_v48 = vpop.xlane.xlu1 %679  ;;  %v665_v51 = vpop.xlane.xlu0 %664  ;;  %v826_v11 = vmul.f32 %v9355_v1, %v10397_v56 }
 0x2d1   : > { %9362 = vrsqrt.f32 %v765_v63  ;;  %v734_v13 = vmul.f32 0.03125, %v680_v48  ;;  %v729_v27 = vmul.f32 0.03125, %v665_v51 }
 0x2d2   : > { %9364 = vrsqrt.f32 %v760_v54  ;;  %v862_v30 = vmul.f32 %v10504_v29, %v826_v11 }
 0x2d3   : > { %v9357_v60 = vpop.eup %9356  ;;  %v766_v37 = vadd.f32 1e-05, %v734_v13  ;;  %v761_v7 = vadd.f32 1e-05, %v729_v27 }
 0x2d4   : > { %v9359_v43 = vpop.eup %9358  ;;  %v683_v35 = vpop.xlane.xlu1 %682  ;;  %v898_v6 = vadd.f32 %v10512_v41, %v862_v30  ;;  %v827_v0 = vmul.f32 %v9357_v60, %v10402_v19 }
 0x2d5   : > { %9366 = vrsqrt.f32 %v766_v37  ;;  %v735_v23 = vmul.f32 0.03125, %v683_v35  ;;  %v823_v28 = vmul.f32 %v9359_v43, %v10405_v21 }
 0x2d6   : > { %9368 = vrsqrt.f32 %v761_v7  ;;  %7799 = vmatprep.mubr.msk.f32.mxu1 %vm424_vm0, %v898_v6  ;;  %v863_v56 = vmul.f32 %v10504_v29, %v827_v0 }
 0x2d7   : > { %v9361_v38 = vpop.eup %9360  ;;  %v767_v31 = vadd.f32 1e-05, %v735_v23  ;;  %v859_v17 = vmul.f32 %v10504_v29, %v823_v28 }
 0x2d8   : > { %v686_v58 = vpop.xlane.xlu0 %685  ;;  %v899_v53 = vadd.f32 %v10512_v41, %v863_v56  ;;  %v828_v24 = vmul.f32 %v9361_v38, %v10413_v40 }
 0x2d9   : > { %9370 = vrsqrt.f32 %v767_v31  ;;  %v736_v19 = vmul.f32 0.03125, %v686_v58  ;;  %v895_v49 = vadd.f32 %v10512_v41, %v859_v17 }
 0x2da   : > { %7800 = vmatmul.mubr.msk.f32.vlgmr.msra.gmra.mrb[0].mxu1 %vm424_vm0, %v899_v53  ;;  %v864_v21 = vmul.f32 %v10504_v29, %v828_v24 }
 0x2db   : > { %v9363_v59 = vpop.eup %9362  ;;  %v768_v57 = vadd.f32 1e-05, %v736_v19  ;;  %7794 = vmatmul.mubr.msk.f32.gmra.mrb[12].mxu0 %vm424_vm0, %v895_v49 }
 0x2dc   : > { %v9365_v61 = vpop.eup %9364  ;;  %v689_v1 = vpop.xlane.xlu1 %688  ;;  %v900_v63 = vadd.f32 %v10512_v41, %v864_v21  ;;  %v829_v54 = vmul.f32 %v9363_v59, %v10420_v2 }
 0x2dd   : > { %9372 = vrsqrt.f32 %v768_v57  ;;  %v737_v40 = vmul.f32 0.03125, %v689_v1  ;;  %v824_v48 = vmul.f32 %v9365_v61, %v10423_v4 }
 0x2de   : > { %7802 = vmatprep.mubr.msk.f32.mxu1 %vm424_vm0, %v900_v63  ;;  %v865_v51 = vmul.f32 %v10504_v29, %v829_v54 }
 0x2df   : > { %v9367_v11 = vpop.eup %9366  ;;  %v769_v13 = vadd.f32 1e-05, %v737_v40  ;;  %v860_v27 = vmul.f32 %v10504_v29, %v824_v48 }
 0x2e0   : > { %v9369_v30 = vpop.eup %9368  ;;  %v901_v60 = vadd.f32 %v10512_v41, %v865_v51  ;;  %v830_v37 = vmul.f32 %v9367_v11, %v10431_v46 }
 0x2e1   : > { %9374 = vrsqrt.f32 %v769_v13  ;;  %v896_v2 = vadd.f32 %v10512_v41, %v860_v27  ;;  %v825_v7 = vmul.f32 %v9369_v30, %v10434_v47 }
 0x2e2   : > { %7803 = vmatmul.mubr.msk.f32.gmra.mrb[2].mxu1 %vm424_vm0, %v901_v60  ;;  %v692_v4 = vpop.xlane.xlu0 %691  ;;  %v866_v43 = vmul.f32 %v10504_v29, %v830_v37 }
 0x2e3   : > { %v9371_v35 = vpop.eup %9370  ;;  %7796 = vmatprep.mubr.msk.f32.mxu0 %vm424_vm0, %v896_v2  ;;  %v738_v6 = vmul.f32 0.03125, %v692_v4  ;;  %v861_v0 = vmul.f32 %v10504_v29, %v825_v7 }
 0x2e4   : > { %v902_v23 = vadd.f32 %v10512_v41, %v866_v43  ;;  %v831_v46 = vmul.f32 %v9371_v35, %v10443_v26 }
 0x2e5   : > { %v770_v28 = vadd.f32 1e-05, %v738_v6  ;;  %v897_v56 = vadd.f32 %v10512_v41, %v861_v0 }
 0x2e6   : > { %v695_v38 = vpop.xlane.xlu1 %694  ;;  %7805 = vmatprep.mubr.msk.f32.mxu1 %vm424_vm0, %v902_v23  ;;  %v867_v47 = vmul.f32 %v10504_v29, %v831_v46 }
 0x2e7   : > { %v9373_v31 = vpop.eup %9372  ;;  %9376 = vrsqrt.f32 %v770_v28  ;;  %v739_v17 = vmul.f32 0.03125, %v695_v38  ;;  %7797 = vmatmul.mubr.msk.f32.gmra.mrb[14].mxu0 %vm424_vm0, %v897_v56 }
 0x2e8   : > { %v903_v58 = vadd.f32 %v10512_v41, %v867_v47  ;;  %v832_v53 = vmul.f32 %v9373_v31, %v10450_v55 }
 0x2e9   : > { %v771_v24 = vadd.f32 1e-05, %v739_v17 }
 0x2ea   : > { %7806 = vmatmul.mubr.msk.f32.gmra.mrb[4].mxu1 %vm424_vm0, %v903_v58  ;;  %v698_v26 = vpop.xlane.xlu0 %697  ;;  %v868_v19 = vmul.f32 %v10504_v29, %v832_v53 }
 0x2eb   : > { %v9375_v49 = vpop.eup %9374  ;;  %9378 = vrsqrt.f32 %v771_v24  ;;  %v740_v21 = vmul.f32 0.03125, %v698_v26 }
 0x2ec   : > { %v904_v59 = vadd.f32 %v10512_v41, %v868_v19  ;;  %v833_v57 = vmul.f32 %v9375_v49, %v10456_v25 }
 0x2ed   : > { %v772_v61 = vadd.f32 1e-05, %v740_v21 }
 0x2ee   : > { %v701_v1 = vpop.xlane.xlu1 %700  ;;  %7808 = vmatprep.mubr.msk.f32.mxu1 %vm424_vm0, %v904_v59  ;;  %v869_v63 = vmul.f32 %v10504_v29, %v833_v57 }
 0x2ef   : > { %9380 = vrsqrt.f32 %v772_v61  ;;  %v741_v55 = vmul.f32 0.03125, %v701_v1 }
 0x2f0   : > { %v905_v54 = vadd.f32 %v10512_v41, %v869_v63 }
 0x2f1   : > { %v9377_v40 = vpop.eup %9376  ;;  %v773_v48 = vadd.f32 1e-05, %v741_v55 }
 0x2f2   : > { %7809 = vmatmul.mubr.msk.f32.gmra.mrb[6].mxu1 %vm424_vm0, %v905_v54  ;;  %v704_v51 = vpop.xlane.xlu0 %703  ;;  %v834_v11 = vmul.f32 %v9377_v40, %v10463_v52 }
 0x2f3   : > { %9382 = vrsqrt.f32 %v773_v48  ;;  %v742_v13 = vmul.f32 0.03125, %v704_v51 }
 0x2f4   : > { %v870_v25 = vmul.f32 %v10504_v29, %v834_v11 }
 0x2f5   : > { %v9379_v27 = vpop.eup %9378  ;;  %v774_v30 = vadd.f32 1e-05, %v742_v13 }
 0x2f6   : > { %v707_v60 = vpop.xlane.xlu1 %706  ;;  %v906_v37 = vadd.f32 %v10512_v41, %v870_v25  ;;  %v835_v2 = vmul.f32 %v9379_v27, %v10468_v5 }
 0x2f7   : > { %9384 = vrsqrt.f32 %v774_v30  ;;  %v743_v7 = vmul.f32 0.03125, %v707_v60 }
 0x2f8   : > { %7811 = vmatprep.mubr.msk.f32.mxu1 %vm424_vm0, %v906_v37  ;;  %v871_v4 = vmul.f32 %v10504_v29, %v835_v2 }
 0x2f9   : > { %v9381_v43 = vpop.eup %9380  ;;  %v775_v35 = vadd.f32 1e-05, %v743_v7 }
 0x2fa   : > { %v710_v52 = vpop.xlane.xlu0 %709  ;;  %v907_v6 = vadd.f32 %v10512_v41, %v871_v4  ;;  %v836_v0 = vmul.f32 %v9381_v43, %v10474_v3 }
 0x2fb   : > { %9386 = vrsqrt.f32 %v775_v35  ;;  %v744_v23 = vmul.f32 0.03125, %v710_v52 }
 0x2fc   : > { %7812 = vmatmul.mubr.msk.f32.gmra.mrb[8].mxu1 %vm424_vm0, %v907_v6  ;;  %v872_v46 = vmul.f32 %v10504_v29, %v836_v0 }
 0x2fd   : > { %v9383_v5 = vpop.eup %9382  ;;  %v776_v28 = vadd.f32 1e-05, %v744_v23 }
 0x2fe   : > { %v713_v56 = vpop.xlane.xlu1 %712  ;;  %v908_v38 = vadd.f32 %v10512_v41, %v872_v46  ;;  %v837_v47 = vmul.f32 %v9383_v5, %v10480_v62 }
 0x2ff   : > { %9388 = vrsqrt.f32 %v776_v28  ;;  %v745_v31 = vmul.f32 0.03125, %v713_v56 }
 0x300   : > { %7814 = vmatprep.mubr.msk.f32.mxu1 %vm424_vm0, %v908_v38  ;;  %v873_v17 = vmul.f32 %v10504_v29, %v837_v47 }
 0x301   : > { %v9385_v3 = vpop.eup %9384  ;;  %v777_v58 = vadd.f32 1e-05, %v745_v31 }
 0x302   : > { %v909_v53 = vadd.f32 %v10512_v41, %v873_v17  ;;  %v838_v24 = vmul.f32 %v9385_v3, %v10486_v45 }
 0x303   : > { %9390 = vrsqrt.f32 %v777_v58 }
 0x304   : > { %7815 = vmatmul.mubr.msk.f32.gmra.mrb[10].mxu1 %vm424_vm0, %v909_v53  ;;  %v874_v26 = vmul.f32 %v10504_v29, %v838_v24 }
 0x305   : > { %v9387_v19 = vpop.eup %9386 }
 0x306   : > { %v910_v62 = vadd.f32 %v10512_v41, %v874_v26  ;;  %v839_v49 = vmul.f32 %v9387_v19, %v10492_v15 }
 0x308   : > { %7817 = vmatprep.mubr.msk.f32.mxu1 %vm424_vm0, %v910_v62  ;;  %v875_v21 = vmul.f32 %v10504_v29, %v839_v49 }
 0x309   : > { %v9389_v59 = vpop.eup %9388 }
 0x30a   : > { %v911_v57 = vadd.f32 %v10512_v41, %v875_v21  ;;  %v840_v61 = vmul.f32 %v9389_v59, %v10498_v9  ;;  %v10651_v9 = vld [vmem:[%s13071_s2] ss:$0 sm:$0xff] }
 0x30c   : > { %7818 = vmatmul.mubr.msk.f32.gmra.mrb[12].mxu1 %vm424_vm0, %v911_v57  ;;  %v876_v45 = vmul.f32 %v10504_v29, %v840_v61 }
 0x30d   : > { %v9391_v1 = vpop.eup %9390 }
 0x30e   : > { %v912_v63 = vadd.f32 %v10512_v41, %v876_v45  ;;  %v841_v55 = vmul.f32 %v9391_v1, %v10516_v50 }
 0x310   : > { %7820 = vmatprep.mubr.msk.f32.mxu1 %vm424_vm0, %v912_v63  ;;  %v877_v15 = vmul.f32 %v10504_v29, %v841_v55 }
 0x312   : > { %v913_v54 = vadd.f32 %v10512_v41, %v877_v15 }
 0x314   : > { %7821 = vmatmul.mubr.msk.f32.gmra.mrb[14].mxu1 %vm424_vm0, %v913_v54 }
 0x346   : > { %v7777_v40 = vpop.f32.mrb[0].mxu0 }
 0x347   : > { %v10654_v48 = vadd.f32 %v7777_v40, %v10651_v9  ;;  %v1087_v51 = vpop.f32.mrb[1].mxu0 }
 0x348   : > { %v1088_v50 = vadd.f32 %v10651_v9, %v1087_v51 }
 0x34a   : > { %v10658_v11 = vpack.i.bf16 %v10654_v48, %v1088_v50  ;;  %v10660_v29 = vmul.f32 0.25, %v1088_v50 }
 0x34c   : > { %8989 = vrot.lane.b32.xlu0 %v10658_v11, %s9939_s13  ;;  %7839 = vmatprep.mubr.msk.f32.mxu1 %vm1307_vm1, %v10660_v29 }
 0x34e   : > { %v7780_v41 = vpop.f32.mrb[2].mxu0 }
 0x34f   : > { %v10667_v13 = vadd.f32 %v7780_v41, %v10651_v9  ;;  %v1097_v25 = vpop.f32.mrb[3].mxu0 }
 0x350   : > { %v10670_v27 = vadd.f32 %v10651_v9, %v1097_v25 }
 0x352   : > { %v10674_v30 = vpack.i.bf16 %v10667_v13, %v10670_v27  ;;  %v10855_v39 = vmul.f32 0.25, %v10670_v27 }
 0x354   : > { %8994 = vrot.lane.b32.xlu1 %v10674_v30, %s9939_s13 }
 0x356   : > { %v7783_v60 = vpop.f32.mrb[4].mxu0 }
 0x357   : > { %v10679_v37 = vadd.f32 %v7783_v60, %v10651_v9  ;;  %v1107_v2 = vpop.f32.mrb[5].mxu0 }
 0x358   : > { %v10682_v7 = vadd.f32 %v10651_v9, %v1107_v2 }
 0x35a   : > { %v7786_v4 = vpop.f32.mrb[6].mxu0  ;;  %v10686_v43 = vpack.i.bf16 %v10679_v37, %v10682_v7 }
 0x35b   : > { %v10689_v35 = vadd.f32 %v7786_v4, %v10651_v9  ;;  %v1117_v52 = vpop.f32.mrb[7].mxu0 }
 0x35c   : > { %v10692_v6 = vadd.f32 %v10651_v9, %v1117_v52  ;;  %8999 = vrot.lane.b32.xlu1 %v10686_v43, %s9939_s13 }
 0x35e   : > { %v10698_v0 = vpack.i.bf16 %v10689_v35, %v10692_v6 }
 0x360   : > { %9004 = vrot.lane.b32.xlu0 %v10698_v0, %s9939_s13 }
 0x38c   : > { %v7789_v23 = vpop.f32.mrb[8].mxu0 }
 0x38d   : > { %v10703_v46 = vadd.f32 %v7789_v23, %v10651_v9  ;;  %v1127_v5 = vpop.f32.mrb[9].mxu0 }
 0x38e   : > { %v10706_v28 = vadd.f32 %v10651_v9, %v1127_v5 }
 0x390   : > { %v7792_v56 = vpop.f32.mrb[10].mxu0  ;;  %v10710_v38 = vpack.i.bf16 %v10703_v46, %v10706_v28 }
 0x391   : > { %v10713_v47 = vadd.f32 %v7792_v56, %v10651_v9  ;;  %v1137_v31 = vpop.f32.mrb[11].mxu0  ;;  %v13224_v56 = vmov 0 }
 0x392   : > { %v10716_v17 = vadd.f32 %v10651_v9, %v1137_v31  ;;  %9009 = vrot.lane.b32.xlu1 %v10710_v38, %s9939_s13  ;;  %v13225_v56 = vsel %vm10783_vm2, 4294967295, %v13224_v56 }
 0x393   : > { %13226 = vst [vmem:[#allocation48_spill] sm:$0xff] %v13225_v56 }
 0x394   : > { %v10722_v3 = vpack.i.bf16 %v10713_v47, %v10716_v17 }
 0x396   : > { %13220 = vst [vmem:[#allocation44_spill] sm:$0xff] %v10722_v3  ;;  %9014 = vrot.lane.b32.xlu0 %v10722_v3, %s9939_s13 }
 0x3ad   : > { %v7801_v58 = vpop.f32.mrb[0].mxu1 }
 0x3ae   : > { %v7795_v53 = vpop.f32.mrb[12].mxu0  ;;  %v10727_v24 = vadd.f32 %v7801_v58, %v10651_v9  ;;  %v1167_v26 = vpop.f32.mrb[1].mxu1 }
 0x3af   : > { %v10730_v19 = vadd.f32 %v7795_v53, %v10651_v9  ;;  %v1147_v62 = vpop.f32.mrb[13].mxu0  ;;  %v1168_v49 = vadd.f32 %v10651_v9, %v1167_v26 }
 0x3b0   : > { %v10734_v21 = vadd.f32 %v10651_v9, %v1147_v62 }
 0x3b1   : > { %v10737_v59 = vpack.i.bf16 %v10727_v24, %v1168_v49  ;;  %v10739_v57 = vmul.f32 0.25, %v1168_v49 }
 0x3b2   : > { %v10743_v61 = vpack.i.bf16 %v10730_v19, %v10734_v21 }
 0x3b3   : > { %13221 = vst [vmem:[#allocation45_spill] sm:$0xff] %v10737_v59  ;;  %13222 = vst [vmem:[#allocation46_spill] sm:$0xff] %v10739_v57  ;;  %9024 = vrot.lane.b32.xlu0 %v10737_v59, %s9939_s13  ;;  %7895 = vmatprep.mubr.msk.f32.mxu0 %vm1307_vm1, %v10739_v57 }
 0x3b4   : > { %9019 = vrot.lane.b32.xlu1 %v10743_v61, %s9939_s13 }
 0x3b5   : > { %v7804_v45 = vpop.f32.mrb[2].mxu1 }
 0x3b6   : > { %v10752_v1 = vadd.f32 %v7804_v45, %v10651_v9  ;;  %v1177_v63 = vpop.f32.mrb[3].mxu1 }
 0x3b7   : > { %v10755_v55 = vadd.f32 %v10651_v9, %v1177_v63 }
 0x3b9   : > { %v10759_v15 = vpack.i.bf16 %v10752_v1, %v10755_v55 }
 0x3ba   : > { %v7798_v54 = vpop.f32.mrb[14].mxu0 }
 0x3bb   : > { %13223 = vst [vmem:[#allocation47_spill] sm:$0xff] %v10759_v15  ;;  %v10762_v40 = vadd.f32 %v7798_v54, %v10651_v9  ;;  %v1157_v51 = vpop.f32.mrb[15].mxu0  ;;  %9034 = vrot.lane.b32.xlu0 %v10759_v15, %s9939_s13 }
 0x3bc   : > { %v10767_v50 = vadd.f32 %v10651_v9, %v1157_v51 }
 0x3bd   : > { %v7807_v41 = vpop.f32.mrb[4].mxu1 }
 0x3be   : > { %v10770_v25 = vadd.f32 %v7807_v41, %v10651_v9  ;;  %v1187_v60 = vpop.f32.mrb[5].mxu1  ;;  %v8990_v2 = vpop.permute.xlu0 %8989  ;;  %v10774_v4 = vpack.i.bf16 %v10762_v40, %v10767_v50 }
 0x3bf   : > { %v10777_v52 = vadd.f32 %v10651_v9, %v1187_v60  ;;  %v8992_v23 = vunpack.i.h.bf16 %v8990_v2  ;;  %v8991_v5 = vunpack.i.l.bf16 %v8990_v2 }
 0x3c0   : > { %9029 = vrot.lane.b32.xlu1 %v10774_v4, %s9939_s13 }
 0x3c1   : > { %v8495_v31 = vpack.c.bf16 %v8992_v23, %v8991_v5  ;;  %v10789_v58 = vpack.i.bf16 %v10770_v25, %v10777_v52 }
 0x3c3   : > { %8497 = vmatprep.subr.msk.bf16.mxu1 %vm10783_vm2, %v8495_v31 }
 0x3c4   : > { %9039 = vrot.lane.b32.xlu1 %v10789_v58, %s9939_s13  ;;  %8500 = vmatpush3.bf16.xpose.msk.msra.mxu1 %vm10783_vm2, %v8495_v31 }
 0x3c5   : > { %v7810_v53 = vpop.f32.mrb[6].mxu1 }
 0x3c6   : > { %v10798_v26 = vadd.f32 %v7810_v53, %v10651_v9  ;;  %v8995_v62 = vpop.permute.xlu1 %8994  ;;  %v1197_v49 = vpop.f32.mrb[7].mxu1 }
 0x3c7   : > { %v8997_v45 = vunpack.i.h.bf16 %v8995_v62  ;;  %v8996_v63 = vunpack.i.l.bf16 %v8995_v62  ;;  %v10801_v54 = vadd.f32 %v10651_v9, %v1197_v49 }
 0x3c9   : > { %v8501_v51 = vpack.c.bf16 %v8997_v45, %v8996_v63  ;;  %v10805_v41 = vpack.i.bf16 %v10798_v26, %v10801_v54 }
 0x3cb   : > { %13227 = vst [vmem:[#allocation49_spill] sm:$0xff] %v10805_v41  ;;  %9049 = vrot.lane.b32.xlu1 %v10805_v41, %s9939_s13  ;;  %8503 = vmatprep.subr.msk.bf16.mxu1 %vm10783_vm2, %v8501_v51 }
 0x3cc   : > { %8506 = vmatpush3.bf16.xpose.msk.msra.mxu1 %vm10783_vm2, %v8501_v51 }
 0x3ce   : > { %v9000_v60 = vpop.permute.xlu1 %8999 }
 0x3cf   : > { %v9002_v2 = vunpack.i.h.bf16 %v9000_v60  ;;  %v9001_v23 = vunpack.i.l.bf16 %v9000_v60  ;;  %v7813_v5 = vpop.f32.mrb[8].mxu1 }
 0x3d0   : > { %v10814_v31 = vadd.f32 %v7813_v5, %v10651_v9  ;;  %v1207_v53 = vpop.f32.mrb[9].mxu1 }
 0x3d1   : > { %v8507_v62 = vpack.c.bf16 %v9002_v2, %v9001_v23  ;;  %v10817_v49 = vadd.f32 %v10651_v9, %v1207_v53 }
 0x3d2   : > { %v9005_v45 = vpop.permute.xlu0 %9004 }
 0x3d3   : > { %v9007_v63 = vunpack.i.h.bf16 %v9005_v45  ;;  %v9006_v44 = vunpack.i.l.bf16 %v9005_v45  ;;  %8509 = vmatprep.subr.msk.bf16.mxu1 %vm10783_vm2, %v8507_v62  ;;  %v10823_v51 = vpack.i.bf16 %v10814_v31, %v10817_v49 }
 0x3d4   : > { %8512 = vmatpush3.bf16.xpose.msk.msra.mxu1 %vm10783_vm2, %v8507_v62 }
 0x3d5   : > { %v8513_v60 = vpack.c.bf16 %v9007_v63, %v9006_v44  ;;  %9044 = vrot.lane.b32.xlu0 %v10823_v51, %s9939_s13 }
 0x3d7   : > { %v7816_v2 = vpop.f32.mrb[10].mxu1  ;;  %8515 = vmatprep.subr.msk.bf16.mxu1 %vm10783_vm2, %v8513_v60 }
 0x3d8   : > { %v10832_v23 = vadd.f32 %v7816_v2, %v10651_v9  ;;  %v1217_v5 = vpop.f32.mrb[11].mxu1  ;;  %v10849_v2 = vmul.f32 0.25, %v10654_v48  ;;  %v10868_v48 = vmul.f32 0.25, %v10667_v13  ;;  %v10886_v13 = vmul.f32 0.25, %v10679_v37 }
 0x3d9   : > { %v10835_v53 = vadd.f32 %v10651_v9, %v1217_v5 }
 0x3da   : > { %13228 = vst [vmem:[#allocation50_spill] sm:$0xff] %v10849_v2  ;;  %13229 = vst [vmem:[#allocation51_spill] sm:$0xff] %v10868_v48 }
 0x3db   : > { %v10839_v45 = vpack.i.bf16 %v10832_v23, %v10835_v53  ;;  %13230 = vst [vmem:[#allocation52_spill] sm:$0xff] %v10886_v13 }
 0x3dc   : > { %8518 = vmatpush3.bf16.xpose.msk.msra.mxu1 %vm10783_vm2, %v8513_v60 }
 0x3dd   : > { %9054 = vrot.lane.b32.xlu0 %v10839_v45, %s9939_s13 }
 0x3df   : > { %v7819_v44 = vpop.f32.mrb[12].mxu1 }
 0x3e0   : > { %v10846_v62 = vadd.f32 %v7819_v44, %v10651_v9  ;;  %v1227_v63 = vpop.f32.mrb[13].mxu1  ;;  %v10871_v44 = vmul.f32 0.25, %v10682_v7  ;;  %v10889_v7 = vmul.f32 0.25, %v10692_v6 }
 0x3e1   : > { %v10852_v5 = vadd.f32 %v10651_v9, %v1227_v63 }
 0x3e3   : > { %7840 = vmatmul.mubr.msk.f32.vlgmr.msra.gmra.mrb[16].mxu1 %vm1307_vm1, %v10849_v2  ;;  %v10861_v60 = vpack.i.bf16 %v10846_v62, %v10852_v5 }
 0x3e4   : > { %7842 = vmatprep.mubr.msk.f32.mxu1 %vm1307_vm1, %v10855_v39 }
 0x3e5   : > { %9059 = vrot.lane.b32.xlu1 %v10861_v60, %s9939_s13 }
 0x3e7   : > { %v7822_v27 = vpop.f32.mrb[14].mxu1  ;;  %7843 = vmatmul.mubr.msk.f32.gmra.mrb[18].mxu1 %vm1307_vm1, %v10868_v48 }
 0x3e8   : > { %v10876_v63 = vadd.f32 %v7822_v27, %v10651_v9  ;;  %v1237_v42 = vpop.f32.mrb[15].mxu1  ;;  %7845 = vmatprep.mubr.msk.f32.mxu1 %vm1307_vm1, %v10871_v44 }
 0x3e9   : > { %v10881_v34 = vadd.f32 %v10651_v9, %v1237_v42  ;;  %9074 = vrot.lane.b32.xlu1 %v10674_v30, %s9940_s9  ;;  %v10904_v42 = vmul.f32 0.25, %v10689_v35  ;;  %v10907_v9 = vmul.f32 0.25, %v10706_v28 }
 0x3eb   : > { %7846 = vmatmul.mubr.msk.f32.gmra.mrb[20].mxu1 %vm1307_vm1, %v10886_v13  ;;  %v10895_v27 = vpack.i.bf16 %v10876_v63, %v10881_v34  ;;  %13231 = vst [vmem:[#allocation53_spill] sm:$0xff] %v10904_v42 }
 0x3ec   : > { %7848 = vmatprep.mubr.msk.f32.mxu1 %vm1307_vm1, %v10889_v7 }
 0x3ed   : > { %9084 = vrot.lane.b32.xlu1 %v10698_v0, %s9940_s9  ;;  %9064 = vrot.lane.b32.xlu0 %v10895_v27, %s9939_s13 }
 0x3ef   : > { %7849 = vmatmul.mubr.msk.f32.gmra.mrb[22].mxu1 %vm1307_vm1, %v10904_v42 }
 0x3f0   : > { %7867 = vmatprep.mubr.msk.f32.mxu1 %vm1307_vm1, %v10907_v9 }
 0x3f1   : > { %9094 = vrot.lane.b32.xlu1 %v10722_v3, %s9940_s9  ;;  %9069 = vrot.lane.b32.xlu0 %v10658_v11, %s9940_s9 }
 0x3f5   : > { %9109 = vrot.lane.b32.xlu1 %v10759_v15, %s9940_s9  ;;  %9079 = vrot.lane.b32.xlu0 %v10686_v43, %s9940_s9 }
 0x3f9   : > { %9119 = vrot.lane.b32.xlu1 %v10805_v41, %s9940_s9  ;;  %9089 = vrot.lane.b32.xlu0 %v10710_v38, %s9940_s9 }
 0x3fd   : > { %9124 = vrot.lane.b32.xlu1 %v10774_v4, %s9940_s9  ;;  %9099 = vrot.lane.b32.xlu0 %v10743_v61, %s9940_s9 }
 0x401   : > { %9104 = vrot.lane.b32.xlu0 %v10737_v59, %s9940_s9 }
 0x404   : > { %v9010_v37 = vpop.permute.xlu1 %9009 }
 0x405   : > { %v9012_v35 = vunpack.i.h.bf16 %v9010_v37  ;;  %v9011_v6 = vunpack.i.l.bf16 %v9010_v37  ;;  %9114 = vrot.lane.b32.xlu0 %v10789_v58, %s9940_s9 }
 0x407   : > { %v8519_v28 = vpack.c.bf16 %v9012_v35, %v9011_v6 }
 0x408   : > { %v9015_v36 = vpop.permute.xlu0 %9014 }
 0x409   : > { %v9017_v32 = vunpack.i.h.bf16 %v9015_v36  ;;  %v9016_v33 = vunpack.i.l.bf16 %v9015_v36  ;;  %8521 = vmatprep.subr.msk.bf16.mxu1 %vm10783_vm2, %v8519_v28 }
 0x40a   : > { %8524 = vmatpush3.bf16.xpose.msk.msra.mxu1 %vm10783_vm2, %v8519_v28 }
 0x40b   : > { %v8525_v20 = vpack.c.bf16 %v9017_v32, %v9016_v33 }
 0x40d   : > { %8527 = vmatprep.subr.msk.bf16.mxu1 %vm10783_vm2, %v8525_v20 }
 0x412   : > { %8530 = vmatpush3.bf16.xpose.msk.msra.mxu1 %vm10783_vm2, %v8525_v20 }
 0x425   : > { %v9025_v37 = vpop.permute.xlu0 %9024 }
 0x426   : > { %v9020_v22 = vpop.permute.xlu1 %9019  ;;  %v9027_v16 = vunpack.i.h.bf16 %v9025_v37  ;;  %v9026_v35 = vunpack.i.l.bf16 %v9025_v37 }
 0x427   : > { %v9022_v6 = vunpack.i.h.bf16 %v9020_v22  ;;  %v9021_v18 = vunpack.i.l.bf16 %v9020_v22 }
 0x428   : > { %v8543_v36 = vpack.c.bf16 %v9027_v16, %v9026_v35 }
 0x429   : > { %v8531_v12 = vpack.c.bf16 %v9022_v6, %v9021_v18 }
 0x42a   : > { %8545 = vmatprep.subr.msk.bf16.mxu0 %vm10783_vm2, %v8543_v36 }
 0x42b   : > { %8533 = vmatprep.subr.msk.bf16.mxu1 %vm10783_vm2, %v8531_v12  ;;  %8548 = vmatpush3.bf16.xpose.msk.msra.mxu0 %vm10783_vm2, %v8543_v36 }
 0x42c   : > { %8536 = vmatpush3.bf16.xpose.msk.msra.mxu1 %vm10783_vm2, %v8531_v12 }
 0x42d   : > { %v9035_v20 = vpop.permute.xlu0 %9034 }
 0x42e   : > { %v9037_v32 = vunpack.i.h.bf16 %v9035_v20  ;;  %v9036_v33 = vunpack.i.l.bf16 %v9035_v20  ;;  %v10962_v20 = vmul.f32 0.25, %v10703_v46  ;;  %v10977_v46 = vmul.f32 0.25, %v10734_v21 }
 0x430   : > { %v8549_v28 = vpack.c.bf16 %v9037_v32, %v9036_v33  ;;  %13232 = vst [vmem:[#allocation54_spill] sm:$0xff] %v10962_v20  ;;  %13235 = vst [vmem:[#allocation57_spill] sm:$0xff] %v10977_v46 }
 0x432   : > { %v9030_v37 = vpop.permute.xlu1 %9029  ;;  %8551 = vmatprep.subr.msk.bf16.mxu0 %vm10783_vm2, %v8549_v28 }
 0x433   : > { %v9032_v16 = vunpack.i.h.bf16 %v9030_v37  ;;  %v9031_v18 = vunpack.i.l.bf16 %v9030_v37  ;;  %8554 = vmatpush3.bf16.xpose.msk.msra.mxu0 %vm10783_vm2, %v8549_v28  ;;  %v10965_v37 = vmul.f32 0.25, %v10716_v17  ;;  %v10986_v17 = vmul.f32 0.25, %v10730_v19 }
 0x435   : > { %v8537_v22 = vpack.c.bf16 %v9032_v16, %v9031_v18  ;;  %13233 = vst [vmem:[#allocation55_spill] sm:$0xff] %v10965_v37  ;;  %v10972_v18 = vmul.f32 0.25, %v10713_v47  ;;  %13236 = vst [vmem:[#allocation58_spill] sm:$0xff] %v10986_v17  ;;  %v10989_v47 = vmul.f32 0.25, %v10767_v50  ;;  %v11005_v50 = vmul.f32 0.25, %v10817_v49 }
 0x436   : > { %v9040_v35 = vpop.permute.xlu1 %9039 }
 0x437   : > { %v9042_v6 = vunpack.i.h.bf16 %v9040_v35  ;;  %v9041_v36 = vunpack.i.l.bf16 %v9040_v35  ;;  %8539 = vmatprep.subr.msk.bf16.mxu1 %vm10783_vm2, %v8537_v22  ;;  %13234 = vst [vmem:[#allocation56_spill] sm:$0xff] %v10972_v18  ;;  %13237 = vst [vmem:[#allocation59_spill] sm:$0xff] %v10989_v47 }
 0x438   : > { %8542 = vmatpush3.bf16.xpose.msk.msra.mxu1 %vm10783_vm2, %v8537_v22  ;;  %13241 = vst [vmem:[#allocation63_spill] sm:$0xff] %v11005_v50 }
 0x439   : > { %v8555_v12 = vpack.c.bf16 %v9042_v6, %v9041_v36  ;;  %v10996_v6 = vmul.f32 0.25, %v10727_v24  ;;  %v10999_v36 = vmul.f32 0.25, %v10762_v40  ;;  %v11018_v24 = vmul.f32 0.25, %v10752_v1 }
 0x43b   : > { %8557 = vmatprep.subr.msk.bf16.mxu0 %vm10783_vm2, %v8555_v12  ;;  %13238 = vst [vmem:[#allocation60_spill] sm:$0xff] %v10996_v6  ;;  %13239 = vst [vmem:[#allocation61_spill] sm:$0xff] %v10999_v36 }
 0x43c   : > { %8560 = vmatpush3.bf16.xpose.msk.msra.mxu0 %vm10783_vm2, %v8555_v12  ;;  %v11002_v12 = vmul.f32 0.25, %v10755_v55  ;;  %13242 = vst [vmem:[#allocation64_spill] sm:$0xff] %v11018_v24  ;;  %v11023_v55 = vmul.f32 0.25, %v10777_v52  ;;  %v11042_v52 = vmul.f32 0.25, %v10798_v26 }
 0x43d   : > { %v9050_v32 = vpop.permute.xlu1 %9049 }
 0x43e   : > { %v9052_v33 = vunpack.i.h.bf16 %v9050_v32  ;;  %v9051_v28 = vunpack.i.l.bf16 %v9050_v32  ;;  %13240 = vst [vmem:[#allocation62_spill] sm:$0xff] %v11002_v12  ;;  %13243 = vst [vmem:[#allocation65_spill] sm:$0xff] %v11023_v55 }
 0x43f   : > { %7868 = vmatmul.mubr.msk.f32.vlgmr.msra.gmra.mrb[24].mxu1 %vm1307_vm1, %v10962_v20  ;;  %13246 = vst [vmem:[#allocation68_spill] sm:$0xff] %v11042_v52 }
 0x440   : > { %v8561_v16 = vpack.c.bf16 %v9052_v33, %v9051_v28  ;;  %7870 = vmatprep.mubr.msk.f32.mxu1 %vm1307_vm1, %v10965_v37  ;;  %v11030_v33 = vmul.f32 0.25, %v10770_v25  ;;  %v11033_v28 = vmul.f32 0.25, %v10801_v54 }
 0x442   : > { %8563 = vmatprep.subr.msk.bf16.mxu0 %vm10783_vm2, %v8561_v16  ;;  %13244 = vst [vmem:[#allocation66_spill] sm:$0xff] %v11030_v33  ;;  %13245 = vst [vmem:[#allocation67_spill] sm:$0xff] %v11033_v28 }
 0x443   : > { %7871 = vmatmul.mubr.msk.f32.gmra.mrb[26].mxu1 %vm1307_vm1, %v10972_v18 }
 0x444   : > { %7873 = vmatprep.mubr.msk.f32.mxu1 %vm1307_vm1, %v10977_v46  ;;  %8566 = vmatpush3.bf16.xpose.msk.msra.mxu0 %vm10783_vm2, %v8561_v16 }
 0x447   : > { %7874 = vmatmul.mubr.msk.f32.gmra.mrb[28].mxu1 %vm1307_vm1, %v10986_v17  ;;  %v9045_v21 = vpop.permute.xlu0 %9044 }
 0x448   : > { %v9047_v22 = vunpack.i.h.bf16 %v9045_v21  ;;  %v9046_v35 = vunpack.i.l.bf16 %v9045_v21  ;;  %7876 = vmatprep.mubr.msk.f32.mxu1 %vm1307_vm1, %v10989_v47 }
 0x44a   : > { %v8567_v19 = vpack.c.bf16 %v9047_v22, %v9046_v35 }
 0x44b   : > { %7877 = vmatmul.mubr.msk.f32.gmra.mrb[30].mxu1 %vm1307_vm1, %v10999_v36  ;;  %7896 = vmatmul.mubr.msk.f32.vlgmr.msra.gmra.mrb[16].mxu0 %vm1307_vm1, %v10996_v6 }
 0x44c   : > { %7898 = vmatprep.mubr.msk.f32.mxu0 %vm1307_vm1, %v11002_v12  ;;  %7923 = vmatprep.mubr.msk.f32.mxu1 %vm1307_vm1, %v11005_v50 }
 0x44d   : > { %8569 = vmatprep.subr.msk.bf16.mxu1 %vm10783_vm2, %v8567_v19 }
 0x44e   : > { %8572 = vmatpush3.bf16.xpose.msk.msra.mxu1 %vm10783_vm2, %v8567_v19 }
 0x44f   : > { %7899 = vmatmul.mubr.msk.f32.gmra.mrb[18].mxu0 %vm1307_vm1, %v11018_v24  ;;  %v9055_v40 = vpop.permute.xlu0 %9054 }
 0x450   : > { %v9057_v49 = vunpack.i.h.bf16 %v9055_v40  ;;  %v9056_v32 = vunpack.i.l.bf16 %v9055_v40  ;;  %7901 = vmatprep.mubr.msk.f32.mxu0 %vm1307_vm1, %v11023_v55 }
 0x452   : > { %v8573_v1 = vpack.c.bf16 %v9057_v49, %v9056_v32 }
 0x453   : > { %7902 = vmatmul.mubr.msk.f32.gmra.mrb[20].mxu0 %vm1307_vm1, %v11030_v33  ;;  %v11062_v33 = vmul.f32 0.25, %v10835_v53 }
 0x454   : > { %7904 = vmatprep.mubr.msk.f32.mxu0 %vm1307_vm1, %v11033_v28  ;;  %8575 = vmatprep.subr.msk.bf16.mxu1 %vm10783_vm2, %v8573_v1 }
 0x455   : > { %13248 = vst [vmem:[#allocation70_spill] sm:$0xff] %v11062_v33 }
 0x456   : > { %8578 = vmatpush3.bf16.xpose.msk.msra.mxu1 %vm10783_vm2, %v8573_v1 }
 0x457   : > { %7905 = vmatmul.mubr.msk.f32.gmra.mrb[22].mxu0 %vm1307_vm1, %v11042_v52  ;;  %v9060_v25 = vpop.permute.xlu1 %9059 }
 0x458   : > { %v9062_v54 = vunpack.i.h.bf16 %v9060_v25  ;;  %v9061_v16 = vunpack.i.l.bf16 %v9060_v25 }
 0x45a   : > { %v8579_v21 = vpack.c.bf16 %v9062_v54, %v9061_v16 }
 0x45b   : > { %v9075_v35 = vpop.permute.xlu1 %9074 }
 0x45c   : > { %8581 = vmatprep.subr.msk.bf16.mxu1 %vm10783_vm2, %v8579_v21  ;;  %v9077_v32 = vunpack.i.h.bf16 %v9075_v35  ;;  %v9076_v1 = vunpack.i.l.bf16 %v9075_v35 }
 0x45e   : > { %8584 = vmatpush3.bf16.xpose.msk.msra.mxu1 %vm10783_vm2, %v8579_v21  ;;  %v8595_v52 = vpack.c.bf16 %v9077_v32, %v9076_v1  ;;  %v11074_v1 = vmul.f32 0.25, %v10852_v5 }
 0x45f   : > { %v9065_v22 = vpop.permute.xlu0 %9064  ;;  %v9085_v25 = vpop.permute.xlu1 %9084 }
 0x460   : > { %v9067_v26 = vunpack.i.h.bf16 %v9065_v22  ;;  %v9066_v19 = vunpack.i.l.bf16 %v9065_v22  ;;  %v11057_v22 = vmul.f32 0.25, %v10814_v31  ;;  %13251 = vst [vmem:[#allocation73_spill] sm:$0xff] %v11074_v1 }
 0x462   : > { %v8585_v40 = vpack.c.bf16 %v9067_v26, %v9066_v19  ;;  %13247 = vst [vmem:[#allocation69_spill] sm:$0xff] %v11057_v22  ;;  %v9087_v26 = vunpack.i.h.bf16 %v9085_v25  ;;  %v9086_v19 = vunpack.i.l.bf16 %v9085_v25  ;;  %v11081_v25 = vmul.f32 0.25, %v10846_v62 }
 0x463   : > { %v9070_v49 = vpop.permute.xlu0 %9069 }
 0x464   : > { %v9072_v14 = vunpack.i.h.bf16 %v9070_v49  ;;  %v9071_v8 = vunpack.i.l.bf16 %v9070_v49  ;;  %8587 = vmatprep.subr.msk.bf16.mxu1 %vm10783_vm2, %v8585_v40  ;;  %v11059_v49 = vpop.permute.xlu1 %9094  ;;  %v8603_v53 = vpack.c.bf16 %v9087_v26, %v9086_v19  ;;  %13252 = vst [vmem:[#allocation74_spill] sm:$0xff] %v11081_v25  ;;  %v11094_v19 = vmul.f32 0.25, %v10876_v63 }
 0x466   : > { %8590 = vmatpush3.bf16.xpose.msk.msra.mxu1 %vm10783_vm2, %v8585_v40  ;;  %v8591_v54 = vpack.c.bf16 %v9072_v14, %v9071_v8  ;;  %v11071_v14 = vmul.f32 0.25, %v10832_v23  ;;  %13255 = vst [vmem:[#allocation77_spill] sm:$0xff] %v11094_v19 }
 0x467   : > { %v9080_v16 = vpop.permute.xlu0 %9079 }
 0x468   : > { %v9082_v21 = vunpack.i.h.bf16 %v9080_v16  ;;  %v9081_v10 = vunpack.i.l.bf16 %v9080_v16  ;;  %8592 = vmatprep.subr.bf16.mxu0 %v8591_v54  ;;  %13250 = vst [vmem:[#allocation72_spill] sm:$0xff] %v11071_v14  ;;  %v11084_v16 = vmul.f32 0.25, %v10881_v34 }
 0x469   : > { %8594 = vmatpush3.bf16.msra.mxu0 %v8591_v54 }
 0x46a   : > { %8596 = vmatprep.subr.bf16.mxu0 %v8595_v52  ;;  %v8599_v40 = vpack.c.bf16 %v9082_v21, %v9081_v10  ;;  %v9110_v10 = vpop.permute.xlu1 %9109  ;;  %13253 = vst [vmem:[#allocation75_spill] sm:$0xff] %v11084_v16 }
 0x46b   : > { %v9090_v35 = vpop.permute.xlu0 %9089  ;;  %v9112_v21 = vunpack.i.h.bf16 %v9110_v10 }
 0x46c   : > { %v9092_v31 = vunpack.i.h.bf16 %v9090_v35  ;;  %v9091_v32 = vunpack.i.l.bf16 %v9090_v35  ;;  %v9111_v35 = vunpack.i.l.bf16 %v9110_v10 }
 0x46d   : > { %7924 = vmatmul.mubr.msk.f32.vlgmr.msra.gmra.mrb[32].mxu1 %vm1307_vm1, %v11057_v22  ;;  %8598 = vmatpush3.bf16.msra.mxu0 %v8595_v52 }
 0x46e   : > { %7926 = vmatprep.mubr.msk.f32.mxu1 %vm1307_vm1, %v11062_v33  ;;  %8600 = vmatprep.subr.bf16.mxu0 %v8599_v40  ;;  %v11086_v5 = vpack.c.bf16 %v9092_v31, %v9091_v32  ;;  %v8627_v31 = vpack.c.bf16 %v9112_v21, %v9111_v35  ;;  %v9120_v32 = vpop.permute.xlu1 %9119 }
 0x46f   : > { %v11068_v8 = vpop.permute.xlu0 %9099  ;;  %v9121_v10 = vunpack.i.l.bf16 %v9120_v32 }
 0x470   : > { %13249 = vst [vmem:[#allocation71_spill] sm:$0xff] %v11068_v8  ;;  %13254 = vst [vmem:[#allocation76_spill] sm:$0xff] %v11086_v5 }
 0x471   : > { %7927 = vmatmul.mubr.msk.f32.gmra.mrb[34].mxu1 %vm1307_vm1, %v11071_v14  ;;  %8602 = vmatpush3.bf16.msra.mxu0 %v8599_v40 }
 0x472   : > { %7929 = vmatprep.mubr.msk.f32.mxu1 %vm1307_vm1, %v11074_v1  ;;  %8604 = vmatprep.subr.bf16.mxu0 %v8603_v53 }
 0x473   : > { %v9105_v52 = vpop.permute.xlu0 %9104 }
 0x474   : > { %v9107_v23 = vunpack.i.h.bf16 %v9105_v52  ;;  %v9106_v54 = vunpack.i.l.bf16 %v9105_v52 }
 0x475   : > { %7930 = vmatmul.mubr.msk.f32.gmra.mrb[36].mxu1 %vm1307_vm1, %v11081_v25  ;;  %8606 = vmatpush3.bf16.msra.mxu0 %v8603_v53  ;;  %v9122_v53 = vunpack.i.h.bf16 %v9120_v32 }
 0x476   : > { %7932 = vmatprep.mubr.msk.f32.mxu1 %vm1307_vm1, %v11084_v16  ;;  %8608 = vmatprep.subr.bf16.mxu0 %v11086_v5  ;;  %v8623_v62 = vpack.c.bf16 %v9107_v23, %v9106_v54 }
 0x477   : > { %v9115_v26 = vpop.permute.xlu0 %9114  ;;  %v8635_v23 = vpack.c.bf16 %v9122_v53, %v9121_v10 }
 0x478   : > { %8624 = vmatprep.subr.bf16.mxu1 %v8623_v62  ;;  %v9117_v34 = vunpack.i.h.bf16 %v9115_v26  ;;  %v9116_v40 = vunpack.i.l.bf16 %v9115_v26 }
 0x479   : > { %7933 = vmatmul.mubr.msk.f32.gmra.mrb[38].mxu1 %vm1307_vm1, %v11094_v19 }
 0x47a   : > { %8626 = vmatpush3.bf16.msra.mxu1 %v8623_v62  ;;  %v8631_v52 = vpack.c.bf16 %v9117_v34, %v9116_v40 }
 0x47b   : > { %8628 = vmatprep.subr.bf16.mxu1 %v8627_v31 }
 0x47e   : > { %8630 = vmatpush3.bf16.msra.mxu1 %v8627_v31 }
 0x47f   : > { %8632 = vmatprep.subr.bf16.mxu1 %v8631_v52 }
 0x482   : > { %8634 = vmatpush3.bf16.msra.mxu1 %v8631_v52 }
 0x483   : > { %8636 = vmatprep.subr.bf16.mxu1 %v8635_v23 }
 0x486   : > { %8638 = vmatpush3.bf16.msra.mxu1 %v8635_v23 }
 0x4b6   : > { %v11098_v63 = vpop.f32.mrb[16].mxu1 }
 0x4b7   : > { %v11100_v54 = vpop.f32.mrb[17].mxu1  ;;  %v1964_v21 = vsel %vm1960_vm3, %v11098_v63, -inf }
 0x4b8   : > { %1965 = vmax.xlane.f32.xlu0 %v1964_v21  ;;  %v1961_v36 = vsel %vm1960_vm3, %v11100_v54, -inf }
 0x4ba   : > { %v11104_v35 = vpop.f32.mrb[18].mxu1 }
 0x4bb   : > { %v11106_v62 = vpop.f32.mrb[19].mxu1 }
 0x4bc   : > { %v1967_v1 = vsel %vm1960_vm3, %v11106_v62, -inf }
 0x4be   : > { %v11108_v26 = vpop.f32.mrb[20].mxu1 }
 0x4bf   : > { %v11110_v34 = vpop.f32.mrb[21].mxu1  ;;  %v1976_v28 = vsel %vm1960_vm3, %v11108_v26, -inf }
 0x4c2   : > { %v11112_v40 = vpop.f32.mrb[22].mxu1 }
 0x4c3   : > { %v11114_v31 = vpop.f32.mrb[23].mxu1 }
 0x4c4   : > { %v1979_v20 = vsel %vm1960_vm3, %v11114_v31, -inf }
 0x512   : > { %v11116_v32 = vpop.f32.mrb[24].mxu1 }
 0x513   : > { %v11118_v53 = vpop.f32.mrb[25].mxu1 }
 0x516   : > { %v11120_v10 = vpop.f32.mrb[26].mxu1 }
 0x517   : > { %v11122_v52 = vpop.f32.mrb[27].mxu1 }
 0x51a   : > { %v11124_v23 = vpop.f32.mrb[28].mxu1 }
 0x51b   : > { %v11126_v21 = vpop.f32.mrb[29].mxu1  ;;  %v2000_v42 = vsel %vm1960_vm3, %v11124_v23, -inf }
 0x51e   : > { %v11128_v56 = vpop.f32.mrb[30].mxu1  ;;  %v11130_v19 = vpop.f32.mrb[16].mxu0 }
 0x51f   : > { %v11132_v25 = vpop.f32.mrb[31].mxu1  ;;  %v11134_v14 = vpop.f32.mrb[17].mxu0  ;;  %v2012_v22 = vsel %vm1960_vm3, %v11130_v19, -inf }
 0x520   : > { %2013 = vmax.xlane.f32.xlu1 %v2012_v22  ;;  %v2009_v12 = vsel %vm1960_vm3, %v11134_v14, -inf  ;;  %v1970_v22 = vsel %vm1960_vm3, %v11104_v35, -inf  ;;  %v2003_v6 = vsel %vm1960_vm3, %v11132_v25, -inf }
 0x521   : > { %2010 = vmax.xlane.f32.xlu0 %v2009_v12 }
 0x522   : > { %v11140_v57 = vpop.f32.mrb[18].mxu0 }
 0x523   : > { %v11142_v16 = vpop.f32.mrb[19].mxu0 }
 0x524   : > { %1962 = vmax.xlane.f32.xlu1 %v1961_v36  ;;  %v2015_v12 = vsel %vm1960_vm3, %v11142_v16, -inf  ;;  %v2018_v36 = vsel %vm1960_vm3, %v11140_v57, -inf }
 0x525   : > { %1968 = vmax.xlane.f32.xlu0 %v1967_v1  ;;  %v1973_v1 = vsel %vm1960_vm3, %v11110_v34, -inf }
 0x526   : > { %v11148_v17 = vpop.f32.mrb[20].mxu0 }
 0x527   : > { %v11150_v33 = vpop.f32.mrb[21].mxu0 }
 0x528   : > { %1971 = vmax.xlane.f32.xlu1 %v1970_v22  ;;  %v2021_v22 = vsel %vm1960_vm3, %v11150_v33, -inf }
 0x529   : > { %2016 = vmax.xlane.f32.xlu0 %v2015_v12  ;;  %v2024_v12 = vsel %vm1960_vm3, %v11148_v17, -inf }
 0x52a   : > { %v11156_v50 = vpop.f32.mrb[22].mxu0 }
 0x52b   : > { %v11158_v18 = vpop.f32.mrb[23].mxu0 }
 0x52c   : > { %2019 = vmax.xlane.f32.xlu1 %v2018_v36  ;;  %v1982_v36 = vsel %vm1960_vm3, %v11112_v40, -inf }
 0x52d   : > { %1974 = vmax.xlane.f32.xlu0 %v1973_v1  ;;  %v2027_v1 = vsel %vm1960_vm3, %v11158_v18, -inf }
 0x530   : > { %1977 = vmax.xlane.f32.xlu1 %v1976_v28  ;;  %v2030_v28 = vsel %vm1960_vm3, %v11156_v50, -inf }
 0x531   : > { %2022 = vmax.xlane.f32.xlu0 %v2021_v22  ;;  %v1985_v22 = vsel %vm1960_vm3, %v11118_v53, -inf }
 0x534   : > { %2025 = vmax.xlane.f32.xlu1 %v2024_v12  ;;  %v1988_v12 = vsel %vm1960_vm3, %v11116_v32, -inf }
 0x535   : > { %1980 = vmax.xlane.f32.xlu0 %v1979_v20 }
 0x538   : > { %1983 = vmax.xlane.f32.xlu1 %v1982_v36  ;;  %v1991_v36 = vsel %vm1960_vm3, %v11122_v52, -inf }
 0x539   : > { %2028 = vmax.xlane.f32.xlu0 %v2027_v1  ;;  %v1994_v1 = vsel %vm1960_vm3, %v11120_v10, -inf }
 0x53c   : > { %2031 = vmax.xlane.f32.xlu1 %v2030_v28 }
 0x53d   : > { %1986 = vmax.xlane.f32.xlu0 %v1985_v22  ;;  %v1997_v22 = vsel %vm1960_vm3, %v11126_v21, -inf }
 0x540   : > { %1989 = vmax.xlane.f32.xlu1 %v1988_v12  ;;  %v11182_v20 = vpop.f32.mrb[32].mxu1 }
 0x541   : > { %1992 = vmax.xlane.f32.xlu0 %v1991_v36  ;;  %v11186_v55 = vpop.f32.mrb[33].mxu1 }
 0x542   : > { %v2033_v47 = vsel %vm1960_vm3, %v11186_v55, -inf }
 0x544   : > { %1995 = vmax.xlane.f32.xlu1 %v1994_v1  ;;  %v11190_v28 = vpop.f32.mrb[34].mxu1 }
 0x545   : > { %1998 = vmax.xlane.f32.xlu0 %v1997_v22  ;;  %v11194_v24 = vpop.f32.mrb[35].mxu1  ;;  %v1966_v12 = vpop.xlane.xlu0 %1965  ;;  %v2006_v22 = vsel %vm1960_vm3, %v11128_v56, -inf }
 0x546   : > { %v2058_v13 = vsub.f32 %v11098_v63, %v1966_v12  ;;  %v2039_v63 = vsel %vm1960_vm3, %v11194_v24, -inf  ;;  %v2042_v12 = vsel %vm1960_vm3, %v11190_v28, -inf }
 0x548   : > { %2001 = vmax.xlane.f32.xlu1 %v2000_v42  ;;  %v11198_v36 = vpop.f32.mrb[36].mxu1  ;;  %v2091_v48 = vmul.f32 1.442695, %v2058_v13 }
 0x549   : > { %2004 = vmax.xlane.f32.xlu0 %v2003_v6  ;;  %v11202_v1 = vpop.f32.mrb[37].mxu1  ;;  %v2036_v6 = vsel %vm1960_vm3, %v11182_v20, -inf  ;;  %v2048_v13 = vsel %vm1960_vm3, %v11198_v36, -inf }
 0x54a   : > { %9392 = vpow2.f32 %v2091_v48 }
 0x54c   : > { %2007 = vmax.xlane.f32.xlu1 %v2006_v22  ;;  %v11207_v15 = vpop.f32.mrb[38].mxu1  ;;  %v2045_v22 = vsel %vm1960_vm3, %v11202_v1, -inf }
 0x54d   : > { %2034 = vmax.xlane.f32.xlu0 %v2033_v47  ;;  %v11211_v42 = vpop.f32.mrb[39].mxu1 }
 0x54e   : > { %v2051_v47 = vsel %vm1960_vm3, %v11211_v42, -inf }
 0x550   : > { %2037 = vmax.xlane.f32.xlu1 %v2036_v6  ;;  %v2054_v6 = vsel %vm1960_vm3, %v11207_v15, -inf }
 0x551   : > { %2040 = vmax.xlane.f32.xlu0 %v2039_v63 }
 0x554   : > { %2043 = vmax.xlane.f32.xlu1 %v2042_v12  ;;  %v11227_v48 = vpop.eup %9392  ;;  %v11231_v12 = vpop.permute.xlu1 %9124 }
 0x555   : > { %2046 = vmax.xlane.f32.xlu0 %v2045_v22  ;;  %v2156_v63 = vsel %vm1960_vm3, %v11227_v48, 0.0  ;;  %13256 = vst [vmem:[#allocation78_spill] sm:$0xff] %v11231_v12 }
 0x558   : > { %2049 = vmax.xlane.f32.xlu1 %v2048_v13 }
 0x559   : > { %2052 = vmax.xlane.f32.xlu0 %v2051_v47 }
 0x55c   : > { %2055 = vmax.xlane.f32.xlu1 %v2054_v6 }
 0x560   : > { %2157 = vadd.xlane.f32.xlu1 %v2156_v63 }
 0x5ad   : > { %v2014_v22 = vpop.xlane.xlu1 %2013 }
 0x5ae   : > { %v2074_v46 = vsub.f32 %v11130_v19, %v2014_v22  ;;  %v2011_v13 = vpop.xlane.xlu0 %2010 }
 0x5af   : > { %v2073_v59 = vsub.f32 %v11134_v14, %v2011_v13 }
 0x5b0   : > { %v2123_v41 = vmul.f32 1.442695, %v2074_v46 }
 0x5b1   : > { %v2121_v47 = vmul.f32 1.442695, %v2073_v59  ;;  %v1963_v3 = vpop.xlane.xlu1 %1962 }
 0x5b2   : > { %9394 = vpow2.f32 %v2123_v41  ;;  %v2057_v37 = vsub.f32 %v11100_v54, %v1963_v3  ;;  %v1969_v2 = vpop.xlane.xlu0 %1968 }
 0x5b3   : > { %9396 = vpow2.f32 %v2121_v47  ;;  %v2059_v19 = vsub.f32 %v11106_v62, %v1969_v2 }
 0x5b4   : > { %v2089_v6 = vmul.f32 1.442695, %v2057_v37 }
 0x5b5   : > { %v1972_v5 = vpop.xlane.xlu1 %1971  ;;  %v2093_v54 = vmul.f32 1.442695, %v2059_v19 }
 0x5b6   : > { %9398 = vpow2.f32 %v2089_v6  ;;  %v2060_v63 = vsub.f32 %v11104_v35, %v1972_v5  ;;  %v2017_v12 = vpop.xlane.xlu0 %2016 }
 0x5b7   : > { %v2075_v8 = vsub.f32 %v11142_v16, %v2017_v12 }
 0x5b8   : > { %v2095_v22 = vmul.f32 1.442695, %v2060_v63 }
 0x5b9   : > { %v2125_v14 = vmul.f32 1.442695, %v2075_v8  ;;  %v2020_v46 = vpop.xlane.xlu1 %2019 }
 0x5ba   : > { %9400 = vpow2.f32 %v2095_v22  ;;  %v2076_v59 = vsub.f32 %v11140_v57, %v2020_v46  ;;  %v1975_v41 = vpop.xlane.xlu0 %1974 }
 0x5bb   : > { %9402 = vpow2.f32 %v2125_v14  ;;  %v2061_v12 = vsub.f32 %v11110_v34, %v1975_v41 }
 0x5bc   : > { %v11240_v3 = vpop.eup %9394  ;;  %v2127_v37 = vmul.f32 1.442695, %v2076_v59 }
 0x5bd   : > { %v11242_v13 = vpop.eup %9396  ;;  %v1978_v5 = vpop.xlane.xlu1 %1977  ;;  %v2204_v16 = vsel %vm1960_vm3, %v11240_v3, 0.0 }
 0x5be   : > { %9404 = vpow2.f32 %v2127_v37  ;;  %v2062_v2 = vsub.f32 %v11108_v26, %v1978_v5  ;;  %v2023_v8 = vpop.xlane.xlu0 %2022  ;;  %2205 = vadd.xlane.f32.xlu0 %v2204_v16  ;;  %v2201_v57 = vsel %vm1960_vm3, %v11242_v13, 0.0 }
 0x5bf   : > { %v2077_v35 = vsub.f32 %v11150_v33, %v2023_v8  ;;  %2202 = vadd.xlane.f32.xlu1 %v2201_v57  ;;  %9406 = vpow2.f32 %v2093_v54  ;;  %v2097_v33 = vmul.f32 1.442695, %v2061_v12 }
 0x5c0   : > { %v11250_v62 = vpop.eup %9398  ;;  %v2099_v47 = vmul.f32 1.442695, %v2062_v2 }
 0x5c1   : > { %v2129_v6 = vmul.f32 1.442695, %v2077_v35  ;;  %v2026_v63 = vpop.xlane.xlu1 %2025  ;;  %v2153_v19 = vsel %vm1960_vm3, %v11250_v62, 0.0 }
 0x5c2   : > { %9408 = vpow2.f32 %v2099_v47  ;;  %v2078_v26 = vsub.f32 %v11148_v17, %v2026_v63  ;;  %v1981_v22 = vpop.xlane.xlu0 %1980  ;;  %2154 = vadd.xlane.f32.xlu0 %v2153_v19 }
 0x5c3   : > { %9410 = vpow2.f32 %v2129_v6  ;;  %v2063_v59 = vsub.f32 %v11114_v31, %v1981_v22 }
 0x5c4   : > { %v11256_v14 = vpop.eup %9400  ;;  %v2131_v46 = vmul.f32 1.442695, %v2078_v26 }
 0x5c5   : > { %v1984_v54 = vpop.xlane.xlu1 %1983  ;;  %v2162_v34 = vsel %vm1960_vm3, %v11256_v14, 0.0  ;;  %v11261_v41 = vpop.eup %9402  ;;  %v2101_v2 = vmul.f32 1.442695, %v2063_v59 }
 0x5c6   : > { %9412 = vpow2.f32 %v2131_v46  ;;  %v2064_v37 = vsub.f32 %v11112_v40, %v1984_v54  ;;  %v2029_v5 = vpop.xlane.xlu0 %2028  ;;  %2163 = vadd.xlane.f32.xlu1 %v2162_v34  ;;  %v2207_v31 = vsel %vm1960_vm3, %v11261_v41, 0.0 }
 0x5c7   : > { %v2079_v17 = vsub.f32 %v11158_v18, %v2029_v5  ;;  %9414 = vpow2.f32 %v2097_v33 }
 0x5c8   : > { %v11265_v16 = vpop.eup %9404  ;;  %v2103_v8 = vmul.f32 1.442695, %v2064_v37 }
 0x5c9   : > { %v2032_v57 = vpop.xlane.xlu1 %2031  ;;  %v2210_v35 = vsel %vm1960_vm3, %v11265_v16, 0.0  ;;  %v11271_v12 = vpop.eup %9406  ;;  %v2133_v18 = vmul.f32 1.442695, %v2079_v17 }
 0x5ca   : > { %9416 = vpow2.f32 %v2103_v8  ;;  %v2080_v40 = vsub.f32 %v11156_v50, %v2032_v57  ;;  %v1987_v47 = vpop.xlane.xlu0 %1986  ;;  %2208 = vadd.xlane.f32.xlu1 %v2207_v31  ;;  %2211 = vadd.xlane.f32.xlu0 %v2210_v35  ;;  %v2159_v46 = vsel %vm1960_vm3, %v11271_v12, 0.0 }
 0x5cb   : > { %v2065_v6 = vsub.f32 %v11118_v53, %v1987_v47  ;;  %9418 = vpow2.f32 %v2101_v2 }
 0x5cc   : > { %v11275_v63 = vpop.eup %9408  ;;  %v2135_v19 = vmul.f32 1.442695, %v2080_v40 }
 0x5cd   : > { %v2105_v26 = vmul.f32 1.442695, %v2065_v6  ;;  %v1990_v22 = vpop.xlane.xlu1 %1989  ;;  %v2168_v33 = vsel %vm1960_vm3, %v11275_v63, 0.0  ;;  %v11281_v59 = vpop.eup %9410 }
 0x5ce   : > { %9420 = vpow2.f32 %v2135_v19  ;;  %v2066_v50 = vsub.f32 %v11116_v32, %v1990_v22  ;;  %v1993_v54 = vpop.xlane.xlu0 %1992  ;;  %2169 = vadd.xlane.f32.xlu1 %v2168_v33  ;;  %2160 = vadd.xlane.f32.xlu0 %v2159_v46  ;;  %v2213_v5 = vsel %vm1960_vm3, %v11281_v59, 0.0 }
 0x5cf   : > { %9422 = vpow2.f32 %v2133_v18  ;;  %v2067_v35 = vsub.f32 %v11122_v52, %v1993_v54 }
 0x5d0   : > { %v11284_v53 = vpop.eup %9412  ;;  %9424 = vpow2.f32 %v2105_v26  ;;  %v2107_v34 = vmul.f32 1.442695, %v2066_v50 }
 0x5d1   : > { %v1996_v37 = vpop.xlane.xlu1 %1995  ;;  %v2216_v17 = vsel %vm1960_vm3, %v11284_v53, 0.0  ;;  %v11290_v2 = vpop.eup %9414  ;;  %v2109_v22 = vmul.f32 1.442695, %v2067_v35 }
 0x5d2   : > { %v2068_v8 = vsub.f32 %v11120_v10, %v1996_v37  ;;  %v1999_v32 = vpop.xlane.xlu0 %1998  ;;  %2214 = vadd.xlane.f32.xlu1 %v2213_v5  ;;  %2217 = vadd.xlane.f32.xlu0 %v2216_v17  ;;  %9426 = vpow2.f32 %v2107_v34  ;;  %v2165_v19 = vsel %vm1960_vm3, %v11290_v2, 0.0 }
 0x5d3   : > { %v2069_v57 = vsub.f32 %v11126_v21, %v1999_v32 }
 0x5d4   : > { %v11294_v31 = vpop.eup %9416  ;;  %v2111_v40 = vmul.f32 1.442695, %v2068_v8 }
 0x5d5   : > { %v2113_v47 = vmul.f32 1.442695, %v2069_v57  ;;  %v2002_v18 = vpop.xlane.xlu1 %2001  ;;  %v2174_v6 = vsel %vm1960_vm3, %v11294_v31, 0.0  ;;  %v11301_v10 = vpop.eup %9418 }
 0x5d6   : > { %v2005_v26 = vpop.xlane.xlu0 %2004  ;;  %2175 = vadd.xlane.f32.xlu1 %v2174_v6  ;;  %2166 = vadd.xlane.f32.xlu0 %v2165_v19  ;;  %v2070_v52 = vsub.f32 %v11124_v23, %v2002_v18  ;;  %v2171_v50 = vsel %vm1960_vm3, %v11301_v10, 0.0 }
 0x5d7   : > { %9428 = vpow2.f32 %v2113_v47  ;;  %v2071_v23 = vsub.f32 %v11132_v25, %v2005_v26 }
 0x5d8   : > { %v11303_v21 = vpop.eup %9420  ;;  %9430 = vpow2.f32 %v2111_v40  ;;  %v2115_v17 = vmul.f32 1.442695, %v2070_v52 }
 0x5d9   : > { %v11306_v33 = vpop.eup %9422  ;;  %v2008_v46 = vpop.xlane.xlu1 %2007  ;;  %v2222_v54 = vsel %vm1960_vm3, %v11303_v21, 0.0  ;;  %9432 = vpow2.f32 %v2109_v22  ;;  %v2117_v40 = vmul.f32 1.442695, %v2071_v23 }
 0x5da   : > { %v11312_v34 = vpop.eup %9424  ;;  %v2072_v37 = vsub.f32 %v11128_v56, %v2008_v46  ;;  %v2035_v5 = vpop.xlane.xlu0 %2034  ;;  %2172 = vadd.xlane.f32.xlu1 %v2171_v50  ;;  %2223 = vadd.xlane.f32.xlu0 %v2222_v54  ;;  %v2219_v32 = vsel %vm1960_vm3, %v11306_v33, 0.0 }
 0x5db   : > { %v2177_v57 = vsel %vm1960_vm3, %v11312_v34, 0.0  ;;  %v2081_v47 = vsub.f32 %v11186_v55, %v2035_v5 }
 0x5dc   : > { %v2119_v8 = vmul.f32 1.442695, %v2072_v37  ;;  %v11320_v35 = vpop.eup %9426 }
 0x5dd   : > { %v2180_v25 = vsel %vm1960_vm3, %v11320_v35, 0.0  ;;  %v2137_v26 = vmul.f32 1.442695, %v2081_v47 }
 0x5de   : > { %9434 = vpow2.f32 %v2119_v8  ;;  %2220 = vadd.xlane.f32.xlu1 %v2219_v32  ;;  %2178 = vadd.xlane.f32.xlu0 %v2177_v57  ;;  %v2041_v56 = vpop.xlane.xlu0 %2040 }
 0x5df   : > { %9436 = vpow2.f32 %v2115_v17  ;;  %v2083_v22 = vsub.f32 %v11194_v24, %v2041_v56 }
 0x5e0   : > { %9438 = vpow2.f32 %v2117_v40 }
 0x5e1   : > { %v11323_v18 = vpop.eup %9428  ;;  %9440 = vpow2.f32 %v2137_v26  ;;  %v2141_v54 = vmul.f32 1.442695, %v2083_v22  ;;  %v2038_v26 = vpop.xlane.xlu1 %2037 }
 0x5e2   : > { %v11327_v6 = vpop.eup %9430  ;;  %2181 = vadd.xlane.f32.xlu1 %v2180_v25  ;;  %v2189_v19 = vsel %vm1960_vm3, %v11323_v18, 0.0  ;;  %v2047_v52 = vpop.xlane.xlu0 %2046 }
 0x5e3   : > { %2190 = vadd.xlane.f32.xlu0 %v2189_v19  ;;  %v2186_v55 = vsel %vm1960_vm3, %v11327_v6, 0.0  ;;  %v11334_v46 = vpop.eup %9432  ;;  %v2085_v37 = vsub.f32 %v11202_v1, %v2047_v52  ;;  %9442 = vpow2.f32 %v2141_v54  ;;  %v2082_v52 = vsub.f32 %v11182_v20, %v2038_v26 }
 0x5e4   : > { %v2183_v5 = vsel %vm1960_vm3, %v11334_v46, 0.0 }
 0x5e5   : > { %v2145_v23 = vmul.f32 1.442695, %v2085_v37  ;;  %v2044_v22 = vpop.xlane.xlu1 %2043  ;;  %v2139_v54 = vmul.f32 1.442695, %v2082_v52 }
 0x5e6   : > { %2187 = vadd.xlane.f32.xlu1 %v2186_v55  ;;  %v2084_v37 = vsub.f32 %v11190_v28, %v2044_v22  ;;  %v2053_v28 = vpop.xlane.xlu0 %2052 }
 0x5e7   : > { %9444 = vpow2.f32 %v2145_v23 }
 0x5e8   : > { %v11336_v50 = vpop.eup %9434  ;;  %9446 = vpow2.f32 %v2139_v54 }
 0x5e9   : > { %v2198_v17 = vsel %vm1960_vm3, %v11336_v50, 0.0  ;;  %v11343_v24 = vpop.eup %9436  ;;  %v2050_v55 = vpop.xlane.xlu1 %2049 }
 0x5ea   : > { %2184 = vadd.xlane.f32.xlu1 %v2183_v5  ;;  %2199 = vadd.xlane.f32.xlu0 %v2198_v17  ;;  %v2192_v8 = vsel %vm1960_vm3, %v11343_v24, 0.0  ;;  %v11347_v32 = vpop.eup %9438  ;;  %v2143_v5 = vmul.f32 1.442695, %v2084_v37  ;;  %v2086_v17 = vsub.f32 %v11198_v36, %v2050_v55  ;;  %v2087_v36 = vsub.f32 %v11211_v42, %v2053_v28 }
 0x5eb   : > { %v2195_v1 = vsel %vm1960_vm3, %v11347_v32, 0.0  ;;  %v11351_v57 = vpop.eup %9440 }
 0x5ec   : > { %v2225_v56 = vsel %vm1960_vm3, %v11351_v57, 0.0  ;;  %9448 = vpow2.f32 %v2143_v5 }
 0x5ed   : > { %v11355_v40 = vpop.eup %9442  ;;  %v2056_v23 = vpop.xlane.xlu1 %2055 }
 0x5ee   : > { %2193 = vadd.xlane.f32.xlu1 %v2192_v8  ;;  %v2231_v47 = vsel %vm1960_vm3, %v11355_v40, 0.0  ;;  %v2147_v8 = vmul.f32 1.442695, %v2086_v17 }
 0x5f0   : > { %9450 = vpow2.f32 %v2147_v8 }
 0x5f1   : > { %v11359_v25 = vpop.eup %9444  ;;  %v2158_v5 = vpop.xlane.xlu1 %2157 }
 0x5f2   : > { %2196 = vadd.xlane.f32.xlu1 %v2195_v1  ;;  %v2237_v19 = vsel %vm1960_vm3, %v11359_v25, 0.0  ;;  %v2088_v1 = vsub.f32 %v11207_v15, %v2056_v23  ;;  %v2149_v15 = vmul.f32 1.442695, %v2087_v36 }
 0x5f4   : > { %v2151_v20 = vmul.f32 1.442695, %v2088_v1 }
 0x5f6   : > { %2226 = vadd.xlane.f32.xlu1 %v2225_v56  ;;  %v11373_v56 = vpop.eup %9446  ;;  %9452 = vpow2.f32 %v2151_v20 }
 0x5f7   : > { %9454 = vpow2.f32 %v2149_v15 }
 0x5fa   : > { %2232 = vadd.xlane.f32.xlu1 %v2231_v47  ;;  %v2228_v47 = vsel %vm1960_vm3, %v11373_v56, 0.0 }
 0x5fe   : > { %2238 = vadd.xlane.f32.xlu1 %v2237_v19  ;;  %v11377_v19 = vpop.eup %9448 }
 0x5ff   : > { %v2234_v26 = vsel %vm1960_vm3, %v11377_v19, 0.0  ;;  %v11382_v22 = vpop.eup %9450 }
 0x600   : > { %9129 = vrot.lane.b32.xlu0 %v10823_v51, %s9940_s9  ;;  %v2240_v52 = vsel %vm1960_vm3, %v11382_v22, 0.0  ;;  %v11386_v55 = vpop.eup %9452 }
 0x601   : > { %v2246_v54 = vsel %vm1960_vm3, %v11386_v55, 0.0  ;;  %v11390_v37 = vpop.eup %9454 }
 0x602   : > { %v2243_v42 = vsel %vm1960_vm3, %v11390_v37, 0.0 }
 0x60f   : > { %9134 = vrot.lane.b32.xlu1 %v10839_v45, %s9940_s9 }
 0x613   : > { %9139 = vrot.lane.b32.xlu1 %v10861_v60, %s9940_s9 }
 0x61f   : > { %2229 = vadd.xlane.f32.xlu0 %v2228_v47 }
 0x623   : > { %2235 = vadd.xlane.f32.xlu0 %v2234_v26 }
 0x627   : > { %2241 = vadd.xlane.f32.xlu0 %v2240_v52  ;;  %v9096_v52 = vunpack.i.l.bf16 %v11059_v49 }
 0x62b   : > { %2247 = vadd.xlane.f32.xlu0 %v2246_v54 }
 0x637   : > { %2244 = vadd.xlane.f32.xlu1 %v2243_v42 }
 0x641   : > { %9159 = vrot.lane.b32.xlu0 %v10686_v43, %s9941_s30 }
 0x645   : > { %9179 = vrot.lane.b32.xlu0 %v10743_v61, %s9941_s30 }
 0x648   : > { %9144 = vrot.lane.b32.xlu1 %v10895_v27, %s9940_s9 }
 0x649   : > { %3286 = vrot.lane.b32.xlu0 %v10855_v39, %s9942_s11 }
 0x64b   : > { %v2206_v17 = vpop.xlane.xlu0 %2205 }
 0x64c   : > { %9456 = vrcp.f32 %v2206_v17  ;;  %v2203_v23 = vpop.xlane.xlu1 %2202  ;;  %9149 = vrot.lane.b32.xlu1 %v10658_v11, %s9941_s30 }
 0x64d   : > { %9458 = vrcp.f32 %v2203_v23  ;;  %9189 = vrot.lane.b32.xlu0 %v10774_v4, %s9941_s30 }
 0x64e   : > { %9460 = vrcp.f32 %v2158_v5 }
 0x64f   : > { %v2155_v8 = vpop.xlane.xlu0 %2154 }
 0x650   : > { %9462 = vrcp.f32 %v2155_v8  ;;  %9154 = vrot.lane.b32.xlu1 %v10674_v30, %s9941_s30 }
 0x651   : > { %3290 = vrot.lane.b32.xlu0 %v10871_v44, %s9942_s11 }
 0x653   : > { %v2164_v39 = vpop.xlane.xlu1 %2163 }
 0x654   : > { %9164 = vrot.lane.b32.xlu1 %v10698_v0, %s9941_s30 }
 0x655   : > { %3294 = vrot.lane.b32.xlu0 %v10889_v7, %s9942_s11  ;;  %v9097_v7 = vunpack.i.h.bf16 %v11059_v49  ;;  %v13257_v49 = vld [vmem:[#allocation71_spill] sm:$0xff] }
 0x656   : > { %v9457_v1 = vpop.eup %9456  ;;  %v9101_v17 = vunpack.i.l.bf16 %v13257_v49 }
 0x657   : > { %v9459_v20 = vpop.eup %9458  ;;  %v2209_v28 = vpop.xlane.xlu1 %2208  ;;  %v2298_v44 = vmul.f32 %v9457_v1, %v11240_v3  ;;  %v9102_v3 = vunpack.i.h.bf16 %v13257_v49  ;;  %v8611_v23 = vpack.c.bf16 %v9097_v7, %v9096_v52  ;;  %v13261_v1 = vld [vmem:[#allocation78_spill] sm:$0xff]  ;;  %v13262_v7 = vld [vmem:[#allocation44_spill] sm:$0xff] }
 0x658   : > { %v2212_v47 = vpop.xlane.xlu0 %2211  ;;  %9464 = vrcp.f32 %v2209_v28  ;;  %9169 = vrot.lane.b32.xlu1 %v10710_v38, %s9941_s30  ;;  %v2297_v36 = vmul.f32 %v9459_v20, %v11242_v13  ;;  %v9461_v26 = vpop.eup %9460  ;;  %v9127_v20 = vunpack.i.h.bf16 %v13261_v1  ;;  %v9126_v28 = vunpack.i.l.bf16 %v13261_v1 }
 0x659   : > { %9466 = vrcp.f32 %v2212_v47  ;;  %9199 = vrot.lane.b32.xlu0 %v10789_v58, %s9941_s30  ;;  %v2282_v5 = vmul.f32 %v9461_v26, %v11227_v48  ;;  %v8615_v47 = vpack.c.bf16 %v9102_v3, %v9101_v17  ;;  %v13264_v3 = vld [vmem:[#allocation45_spill] sm:$0xff] }
 0x65a   : > { %v9463_v15 = vpop.eup %9462  ;;  %8007 = vmatprep.mubr.msk.f32.mxu1 %vm1960_vm3, %v2297_v36  ;;  %9468 = vrcp.f32 %v2164_v39  ;;  %v13265_v17 = vld [vmem:[#allocation57_spill] sm:$0xff] }
 0x65b   : > { %v2170_v54 = vpop.xlane.xlu1 %2169  ;;  %8008 = vmatmul.mubr.msk.f32.vlgmr.msra.gmra.mrb[40].mxu1 %vm1960_vm3, %v2298_v44  ;;  %v2281_v13 = vmul.f32 %v9463_v15, %v11250_v62  ;;  %v13258_v62 = vld [vmem:[#allocation76_spill] sm:$0xff] }
 0x65c   : > { %v2161_v42 = vpop.xlane.xlu0 %2160  ;;  %3282 = vrot.lane.b32.xlu1 %v10660_v29, %s9942_s11  ;;  %v13259_v29 = vld [vmem:[#allocation50_spill] sm:$0xff] }
 0x65d   : > { %9470 = vrcp.f32 %v2161_v42  ;;  %3451 = vrot.lane.b32.xlu0 %v10907_v9, %s9942_s11  ;;  %7951 = vmatprep.mubr.msk.f32.mxu0 %vm1960_vm3, %v2281_v13  ;;  %v13260_v9 = vld [vmem:[#allocation55_spill] sm:$0xff]  ;;  %v13263_v42 = vld [vmem:[#allocation49_spill] sm:$0xff] }
 0x65e   : > { %7952 = vmatmul.mubr.msk.f32.vlgmr.msra.gmra.mrb[24].mxu0 %vm1960_vm3, %v2282_v5  ;;  %v8619_v5 = vpack.c.bf16 %v9127_v20, %v9126_v28  ;;  %v13267_v28 = vld [vmem:[#allocation59_spill] sm:$0xff] }
 0x65f   : > { %8610 = vmatpush3.bf16.msra.mxu0 %v13258_v62  ;;  %v2215_v48 = vpop.xlane.xlu1 %2214 }
 0x660   : > { %v2218_v8 = vpop.xlane.xlu0 %2217  ;;  %9472 = vrcp.f32 %v2215_v48  ;;  %8612 = vmatprep.subr.bf16.mxu0 %v8611_v23  ;;  %3284 = vrot.lane.b32.xlu1 %v13259_v29, %s9942_s11  ;;  %v1278_v48 = vld [vmem:[#allocation7] sm:$0xff] }
 0x661   : > { %9474 = vrcp.f32 %v2218_v8  ;;  %3455 = vrot.lane.b32.xlu0 %v13260_v9, %s9942_s11  ;;  %v1279_v8 = vld [vmem:[#allocation7 + $0x8] sm:$0xff] }
 0x662   : > { %v9465_v39 = vpop.eup %9464  ;;  %9476 = vrcp.f32 %v2170_v54  ;;  %v8655_v20 = vpack.c.bf16 %v1279_v8, %v1278_v48  ;;  %v13271_v48 = vld [vmem:[#allocation53_spill] sm:$0xff] }
 0x663   : > { %v9467_v36 = vpop.eup %9466  ;;  %8614 = vmatpush3.bf16.msra.mxu0 %v8611_v23  ;;  %v2176_v26 = vpop.xlane.xlu1 %2175  ;;  %v2299_v15 = vmul.f32 %v9465_v39, %v11261_v41 }
 0x664   : > { %v2167_v44 = vpop.xlane.xlu0 %2166  ;;  %8616 = vmatprep.subr.bf16.mxu0 %v8615_v47  ;;  %9174 = vrot.lane.b32.xlu1 %v13262_v7, %s9941_s30  ;;  %v2300_v52 = vmul.f32 %v9467_v36, %v11265_v16  ;;  %v9469_v13 = vpop.eup %9468 }
 0x665   : > { %9478 = vrcp.f32 %v2167_v44  ;;  %9209 = vrot.lane.b32.xlu0 %v13263_v42, %s9941_s30  ;;  %8010 = vmatprep.mubr.msk.f32.mxu1 %vm1960_vm3, %v2299_v15  ;;  %v2284_v23 = vmul.f32 %v9469_v13, %v11256_v14 }
 0x666   : > { %8011 = vmatmul.mubr.msk.f32.gmra.mrb[42].mxu1 %vm1960_vm3, %v2300_v52  ;;  %9480 = vrcp.f32 %v2176_v26  ;;  %8656 = vmatprep.subr.bf16.mxu1 %v8655_v20  ;;  %v13268_v26 = vld [vmem:[#allocation47_spill] sm:$0xff] }
 0x667   : > { %v9471_v49 = vpop.eup %9470  ;;  %8618 = vmatpush3.bf16.msra.mxu0 %v8615_v47  ;;  %v2173_v41 = vpop.xlane.xlu1 %2172  ;;  %8658 = vmatpush3.bf16.msra.mxu1 %v8655_v20 }
 0x668   : > { %v2224_v54 = vpop.xlane.xlu0 %2223  ;;  %9482 = vrcp.f32 %v2173_v41  ;;  %8620 = vmatprep.subr.bf16.mxu0 %v8619_v5  ;;  %9184 = vrot.lane.b32.xlu1 %v13264_v3, %s9941_s30  ;;  %v2283_v16 = vmul.f32 %v9471_v49, %v11271_v12  ;;  %v13266_v12 = vld [vmem:[#allocation51_spill] sm:$0xff]  ;;  %v13269_v41 = vld [vmem:[#allocation52_spill] sm:$0xff] }
 0x669   : > { %3459 = vrot.lane.b32.xlu0 %v13265_v17, %s9942_s11  ;;  %9484 = vrcp.f32 %v2224_v54 }
 0x66a   : > { %v9473_v62 = vpop.eup %9472  ;;  %7954 = vmatprep.mubr.msk.f32.mxu0 %vm1960_vm3, %v2283_v16 }
 0x66b   : > { %v9475_v29 = vpop.eup %9474  ;;  %7955 = vmatmul.mubr.msk.f32.gmra.mrb[26].mxu0 %vm1960_vm3, %v2284_v23  ;;  %v2221_v9 = vpop.xlane.xlu1 %2220  ;;  %v2301_v1 = vmul.f32 %v9473_v62, %v11281_v59 }
 0x66c   : > { %v2179_v39 = vpop.xlane.xlu0 %2178  ;;  %8622 = vmatpush3.bf16.msra.mxu0 %v8619_v5  ;;  %9486 = vrcp.f32 %v2221_v9  ;;  %3288 = vrot.lane.b32.xlu1 %v13266_v12, %s9942_s11  ;;  %v2302_v14 = vmul.f32 %v9475_v29, %v11284_v53  ;;  %v9477_v47 = vpop.eup %9476 }
 0x66d   : > { %9488 = vrcp.f32 %v2179_v39  ;;  %3463 = vrot.lane.b32.xlu0 %v13267_v28, %s9942_s11  ;;  %8013 = vmatprep.mubr.msk.f32.mxu1 %vm1960_vm3, %v2301_v1  ;;  %v2286_v15 = vmul.f32 %v9477_v47, %v11275_v63 }
 0x66e   : > { %8014 = vmatmul.mubr.msk.f32.gmra.mrb[44].mxu1 %vm1960_vm3, %v2302_v14 }
 0x66f   : > { %v9479_v36 = vpop.eup %9478  ;;  %v2182_v59 = vpop.xlane.xlu1 %2181 }
 0x670   : > { %9490 = vrcp.f32 %v2182_v59  ;;  %9194 = vrot.lane.b32.xlu1 %v13268_v26, %s9941_s30  ;;  %v2285_v44 = vmul.f32 %v9479_v36, %v11290_v2  ;;  %v9481_v53 = vpop.eup %9480  ;;  %v2191_v13 = vpop.xlane.xlu0 %2190  ;;  %v13270_v2 = vld [vmem:[#allocation60_spill] sm:$0xff]  ;;  %v13275_v36 = vld [vmem:[#allocation67_spill] sm:$0xff] }
 0x671   : > { %9219 = vrot.lane.b32.xlu0 %v10861_v60, %s9941_s30  ;;  %v2288_v63 = vmul.f32 %v9481_v53, %v11294_v31  ;;  %9492 = vrcp.f32 %v2191_v13  ;;  %v13272_v31 = vld [vmem:[#allocation64_spill] sm:$0xff]  ;;  %v13277_v13 = vld [vmem:[#allocation63_spill] sm:$0xff] }
 0x672   : > { %v9483_v52 = vpop.eup %9482  ;;  %7957 = vmatprep.mubr.msk.f32.mxu0 %vm1960_vm3, %v2285_v44 }
 0x673   : > { %7958 = vmatmul.mubr.msk.f32.gmra.mrb[28].mxu0 %vm1960_vm3, %v2286_v15  ;;  %v2188_v5 = vpop.xlane.xlu1 %2187  ;;  %v2287_v49 = vmul.f32 %v9483_v52, %v11301_v10  ;;  %v9485_v54 = vpop.eup %9484  ;;  %v13276_v15 = vld [vmem:[#allocation56_spill] sm:$0xff] }
 0x674   : > { %3292 = vrot.lane.b32.xlu1 %v13269_v41, %s9942_s11  ;;  %9494 = vrcp.f32 %v2188_v5  ;;  %v2304_v29 = vmul.f32 %v9485_v54, %v11303_v21  ;;  %v13273_v21 = vld [vmem:[#allocation65_spill] sm:$0xff] }
 0x675   : > { %3622 = vrot.lane.b32.xlu0 %v13270_v2, %s9942_s11  ;;  %7960 = vmatprep.mubr.msk.f32.mxu0 %vm1960_vm3, %v2287_v49 }
 0x676   : > { %v9487_v16 = vpop.eup %9486 }
 0x677   : > { %v9489_v17 = vpop.eup %9488  ;;  %7961 = vmatmul.mubr.msk.f32.gmra.mrb[30].mxu0 %vm1960_vm3, %v2288_v63  ;;  %v2185_v23 = vpop.xlane.xlu1 %2184  ;;  %v2303_v10 = vmul.f32 %v9487_v16, %v11306_v33  ;;  %v13279_v16 = vld [vmem:[#allocation58_spill] sm:$0xff] }
 0x678   : > { %v2200_v62 = vpop.xlane.xlu0 %2199  ;;  %9496 = vrcp.f32 %v2185_v23  ;;  %3296 = vrot.lane.b32.xlu1 %v13271_v48, %s9942_s11  ;;  %v2289_v8 = vmul.f32 %v9489_v17, %v11312_v34 }
 0x679   : > { %3626 = vrot.lane.b32.xlu0 %v13272_v31, %s9942_s11  ;;  %8016 = vmatprep.mubr.msk.f32.mxu1 %vm1960_vm3, %v2303_v10 }
 0x67a   : > { %v9491_v9 = vpop.eup %9490  ;;  %7979 = vmatprep.mubr.msk.f32.mxu0 %vm1960_vm3, %v2289_v8  ;;  %8017 = vmatmul.mubr.msk.f32.gmra.mrb[46].mxu1 %vm1960_vm3, %v2304_v29  ;;  %v13282_v29 = vld [vmem:[#allocation75_spill] sm:$0xff] }
 0x67b   : > { %v2290_v33 = vmul.f32 %v9491_v9, %v11320_v35  ;;  %v2194_v39 = vpop.xlane.xlu1 %2193  ;;  %v9493_v28 = vpop.eup %9492  ;;  %v13274_v35 = vld [vmem:[#allocation54_spill] sm:$0xff] }
 0x67c   : > { %v9130_v1 = vpop.permute.xlu0 %9129  ;;  %9498 = vrcp.f32 %v2194_v39  ;;  %9204 = vrot.lane.b32.xlu1 %v10823_v51, %s9941_s30  ;;  %v2293_v5 = vmul.f32 %v9493_v28, %v11323_v18  ;;  %v13283_v39 = vld [vmem:[#allocation46_spill] sm:$0xff] }
 0x67d   : > { %v9132_v20 = vunpack.i.h.bf16 %v9130_v1  ;;  %v9131_v12 = vunpack.i.l.bf16 %v9130_v1  ;;  %3628 = vrot.lane.b32.xlu0 %v13273_v21, %s9942_s11  ;;  %7980 = vmatmul.mubr.msk.f32.vlgmr.msra.gmra.mrb[32].mxu0 %vm1960_vm3, %v2290_v33  ;;  %9500 = vrcp.f32 %v2200_v62  ;;  %v13284_v1 = vld [vmem:[#allocation62_spill] sm:$0xff] }
 0x67e   : > { %v9495_v47 = vpop.eup %9494 }
 0x67f   : > { %v8639_v34 = vpack.c.bf16 %v9132_v20, %v9131_v12  ;;  %v2197_v14 = vpop.xlane.xlu1 %2196  ;;  %v2292_v52 = vmul.f32 %v9495_v47, %v11327_v6  ;;  %v13278_v6 = vld [vmem:[#allocation70_spill] sm:$0xff]  ;;  %v13288_v12 = vld [vmem:[#allocation72_spill] sm:$0xff] }
 0x680   : > { %9502 = vrcp.f32 %v2197_v14  ;;  %3453 = vrot.lane.b32.xlu1 %v13274_v35, %s9942_s11  ;;  %v13285_v20 = vld [vmem:[#allocation66_spill] sm:$0xff]  ;;  %v13290_v14 = vld [vmem:[#allocation77_spill] sm:$0xff] }
 0x681   : > { %8640 = vmatprep.subr.bf16.mxu0 %v8639_v34  ;;  %3632 = vrot.lane.b32.xlu0 %v13275_v36, %s9942_s11 }
 0x682   : > { %8642 = vmatpush3.bf16.msra.mxu0 %v8639_v34  ;;  %v9497_v59 = vpop.eup %9496 }
 0x683   : > { %v2227_v44 = vpop.xlane.xlu1 %2226  ;;  %v2291_v53 = vmul.f32 %v9497_v59, %v11334_v46 }
 0x684   : > { %9504 = vrcp.f32 %v2227_v44  ;;  %3457 = vrot.lane.b32.xlu1 %v13276_v15, %s9942_s11 }
 0x685   : > { %3789 = vrot.lane.b32.xlu0 %v13277_v13, %s9942_s11  ;;  %7982 = vmatprep.mubr.msk.f32.mxu0 %vm1960_vm3, %v2291_v53 }
 0x686   : > { %v9499_v49 = vpop.eup %9498  ;;  %7983 = vmatmul.mubr.msk.f32.gmra.mrb[34].mxu0 %vm1960_vm3, %v2292_v52 }
 0x687   : > { %v2233_v41 = vpop.xlane.xlu1 %2232  ;;  %7985 = vmatprep.mubr.msk.f32.mxu0 %vm1960_vm3, %v2293_v5  ;;  %v2294_v46 = vmul.f32 %v9499_v49, %v11343_v24  ;;  %v9501_v54 = vpop.eup %9500  ;;  %v13280_v24 = vld [vmem:[#allocation73_spill] sm:$0xff] }
 0x688   : > { %9214 = vrot.lane.b32.xlu1 %v10839_v45, %s9941_s30  ;;  %v2296_v17 = vmul.f32 %v9501_v54, %v11336_v50 }
 0x689   : > { %3793 = vrot.lane.b32.xlu0 %v13278_v6, %s9942_s11 }
 0x68a   : > { %v9503_v2 = vpop.eup %9502  ;;  %7986 = vmatmul.mubr.msk.f32.gmra.mrb[36].mxu0 %vm1960_vm3, %v2294_v46 }
 0x68b   : > { %v2239_v63 = vpop.xlane.xlu1 %2238  ;;  %v2295_v18 = vmul.f32 %v9503_v2, %v11347_v32  ;;  %v13281_v32 = vld [vmem:[#allocation61_spill] sm:$0xff] }
 0x68c   : > { %3461 = vrot.lane.b32.xlu1 %v13279_v16, %s9942_s11 }
 0x68d   : > { %3797 = vrot.lane.b32.xlu0 %v13280_v24, %s9942_s11  ;;  %7988 = vmatprep.mubr.msk.f32.mxu0 %vm1960_vm3, %v2295_v18 }
 0x68e   : > { %v9505_v23 = vpop.eup %9504  ;;  %7989 = vmatmul.mubr.msk.f32.gmra.mrb[38].mxu0 %vm1960_vm3, %v2296_v17 }
 0x68f   : > { %v9135_v62 = vpop.permute.xlu1 %9134  ;;  %v2305_v10 = vmul.f32 %v9505_v23, %v11351_v57 }
 0x690   : > { %v9137_v48 = vunpack.i.h.bf16 %v9135_v62  ;;  %v9136_v8 = vunpack.i.l.bf16 %v9135_v62  ;;  %3465 = vrot.lane.b32.xlu1 %v13281_v32, %s9942_s11 }
 0x691   : > { %3801 = vrot.lane.b32.xlu0 %v13282_v29, %s9942_s11  ;;  %8035 = vmatprep.mubr.msk.f32.mxu0 %vm1960_vm3, %v2305_v10 }
 0x692   : > { %v8643_v50 = vpack.c.bf16 %v9137_v48, %v9136_v8 }
 0x693   : > { %v9140_v31 = vpop.permute.xlu1 %9139 }
 0x694   : > { %v9142_v9 = vunpack.i.h.bf16 %v9140_v31  ;;  %v9141_v33 = vunpack.i.l.bf16 %v9140_v31  ;;  %3620 = vrot.lane.b32.xlu1 %v13283_v39, %s9942_s11  ;;  %8644 = vmatprep.subr.bf16.mxu0 %v8643_v50 }
 0x695   : > { %9234 = vrot.lane.b32.xlu0 %v10674_v30, %s9943_s17  ;;  %8646 = vmatpush3.bf16.msra.mxu0 %v8643_v50  ;;  %v13286_v30 = vld [vmem:[#allocation68_spill] sm:$0xff] }
 0x696   : > { %v8647_v57 = vpack.c.bf16 %v9142_v9, %v9141_v33 }
 0x698   : > { %3624 = vrot.lane.b32.xlu1 %v13284_v1, %s9942_s11  ;;  %8648 = vmatprep.subr.bf16.mxu0 %v8647_v57 }
 0x699   : > { %9249 = vrot.lane.b32.xlu0 %v10710_v38, %s9943_s17  ;;  %8650 = vmatpush3.bf16.msra.mxu0 %v8647_v57  ;;  %v13287_v38 = vld [vmem:[#allocation69_spill] sm:$0xff] }
 0x69c   : > { %9224 = vrot.lane.b32.xlu1 %v10895_v27, %s9941_s30 }
 0x69d   : > { %9259 = vrot.lane.b32.xlu0 %v10743_v61, %s9943_s17  ;;  %v13289_v61 = vld [vmem:[#allocation74_spill] sm:$0xff] }
 0x6a0   : > { %3630 = vrot.lane.b32.xlu1 %v13285_v20, %s9942_s11 }
 0x6a1   : > { %9269 = vrot.lane.b32.xlu0 %v13264_v3, %s9943_s17 }
 0x6a4   : > { %3634 = vrot.lane.b32.xlu1 %v13286_v30, %s9942_s11 }
 0x6a5   : > { %9279 = vrot.lane.b32.xlu0 %v10789_v58, %s9943_s17 }
 0x6a8   : > { %3791 = vrot.lane.b32.xlu1 %v13287_v38, %s9942_s11 }
 0x6ac   : > { %3795 = vrot.lane.b32.xlu1 %v13288_v12, %s9942_s11  ;;  %v2230_v21 = vpop.xlane.xlu0 %2229 }
 0x6ad   : > { %9506 = vrcp.f32 %v2230_v21 }
 0x6ae   : > { %9508 = vrcp.f32 %v2233_v41 }
 0x6b0   : > { %3799 = vrot.lane.b32.xlu1 %v13289_v61, %s9942_s11  ;;  %v2236_v34 = vpop.xlane.xlu0 %2235 }
 0x6b1   : > { %9510 = vrcp.f32 %v2236_v34 }
 0x6b2   : > { %9512 = vrcp.f32 %v2239_v63 }
 0x6b4   : > { %3803 = vrot.lane.b32.xlu1 %v13290_v14, %s9942_s11  ;;  %v2242_v3 = vpop.xlane.xlu0 %2241 }
 0x6b5   : > { %9514 = vrcp.f32 %v2242_v3 }
 0x6b7   : > { %v9507_v53 = vpop.eup %9506 }
 0x6b8   : > { %9229 = vrot.lane.b32.xlu1 %v10658_v11, %s9943_s17  ;;  %v2248_v28 = vpop.xlane.xlu0 %2247  ;;  %v9509_v52 = vpop.eup %9508 }
 0x6bb   : > { %v9511_v41 = vpop.eup %9510 }
 0x6bc   : > { %9239 = vrot.lane.b32.xlu1 %v10686_v43, %s9943_s17  ;;  %v11563_v58 = vpop.permute.xlu0 %9159  ;;  %v9513_v6 = vpop.eup %9512 }
 0x6bd   : > { %v2309_v24 = vmul.f32 %v9513_v6, %v11359_v25  ;;  %v9162_v8 = vunpack.i.h.bf16 %v11563_v58  ;;  %v9161_v32 = vunpack.i.l.bf16 %v11563_v58 }
 0x6bf   : > { %v9515_v16 = vpop.eup %9514  ;;  %v8671_v31 = vpack.c.bf16 %v9162_v8, %v9161_v32 }
 0x6c0   : > { %9244 = vrot.lane.b32.xlu1 %v10698_v0, %s9943_s17  ;;  %v11567_v35 = vpop.permute.xlu0 %9179  ;;  %v2310_v62 = vmul.f32 %v9515_v16, %v11382_v22 }
 0x6c4   : > { %9254 = vrot.lane.b32.xlu1 %v13262_v7, %s9943_s17  ;;  %v2245_v47 = vpop.xlane.xlu1 %2244  ;;  %v11571_v36 = vpop.permute.xlu0 %3286 }
 0x6c5   : > { %9516 = vrcp.f32 %v2245_v47 }
 0x6c6   : > { %9518 = vrcp.f32 %v2248_v28 }
 0x6c8   : > { %9264 = vrot.lane.b32.xlu1 %v10774_v4, %s9943_s17  ;;  %v9145_v11 = vpop.permute.xlu1 %9144  ;;  %v11575_v43 = vpop.permute.xlu0 %9189  ;;  %v2306_v4 = vmul.f32 %v9507_v53, %v11373_v56  ;;  %v2308_v56 = vmul.f32 %v9511_v41, %v11377_v19 }
 0x6c9   : > { %v9147_v59 = vunpack.i.h.bf16 %v9145_v11  ;;  %v9146_v0 = vunpack.i.l.bf16 %v9145_v11 }
 0x6cb   : > { %v8651_v44 = vpack.c.bf16 %v9147_v59, %v9146_v0 }
 0x6cc   : > { %9274 = vrot.lane.b32.xlu1 %v13268_v26, %s9943_s17  ;;  %v9150_v7 = vpop.permute.xlu1 %9149  ;;  %v11579_v15 = vpop.permute.xlu0 %3290  ;;  %v2307_v26 = vmul.f32 %v9509_v52, %v11355_v40 }
 0x6cd   : > { %v9152_v13 = vunpack.i.h.bf16 %v9150_v7  ;;  %v9151_v5 = vunpack.i.l.bf16 %v9150_v7  ;;  %8652 = vmatprep.subr.bf16.mxu0 %v8651_v44 }
 0x6ce   : > { %8654 = vmatpush3.bf16.msra.mxu0 %v8651_v44 }
 0x6cf   : > { %v8659_v49 = vpack.c.bf16 %v9152_v13, %v9151_v5  ;;  %v9517_v23 = vpop.eup %9516  ;;  %v9182_v13 = vunpack.i.h.bf16 %v11567_v35  ;;  %v9181_v5 = vunpack.i.l.bf16 %v11567_v35  ;;  %v9192_v35 = vunpack.i.h.bf16 %v11575_v43 }
 0x6d0   : > { %9284 = vrot.lane.b32.xlu1 %v13263_v42, %s9943_s17  ;;  %v9155_v46 = vpop.permute.xlu1 %9154  ;;  %v11584_v54 = vpop.permute.xlu0 %3294  ;;  %v2311_v25 = vmul.f32 %v9517_v23, %v11390_v37 }
 0x6d1   : > { %8036 = vmatmul.mubr.msk.f32.vlgmr.msra.gmra.mrb[40].mxu0 %vm1960_vm3, %v2306_v4  ;;  %8661 = vmatprep.subr.msk.bf16.mxu0 %vm10783_vm2, %v8659_v49  ;;  %v9157_v63 = vunpack.i.h.bf16 %v9155_v46  ;;  %v9156_v18 = vunpack.i.l.bf16 %v9155_v46  ;;  %v9519_v10 = vpop.eup %9518 }
 0x6d2   : > { %8038 = vmatprep.mubr.msk.f32.mxu0 %vm1960_vm3, %v2307_v26  ;;  %v2312_v29 = vmul.f32 %v9519_v10, %v11386_v55 }
 0x6d3   : > { %v8665_v40 = vpack.c.bf16 %v9157_v63, %v9156_v18 }
 0x6d4   : > { %v9165_v17 = vpop.permute.xlu1 %9164  ;;  %v11592_v42 = vpop.permute.xlu0 %9199 }
 0x6d5   : > { %8039 = vmatmul.mubr.msk.f32.gmra.mrb[42].mxu0 %vm1960_vm3, %v2308_v56  ;;  %v9167_v33 = vunpack.i.h.bf16 %v9165_v17  ;;  %v9166_v39 = vunpack.i.l.bf16 %v9165_v17 }
 0x6d6   : > { %8041 = vmatprep.mubr.msk.f32.mxu0 %vm1960_vm3, %v2309_v24 }
 0x6d7   : > { %8664 = vmatpush3.bf16.xpose.msk.msra.mxu0 %vm10783_vm2, %v8659_v49  ;;  %v8677_v1 = vpack.c.bf16 %v9167_v33, %v9166_v39  ;;  %v8695_v49 = vpack.c.bf16 %v9182_v13, %v9181_v5  ;;  %v9201_v13 = vunpack.i.l.bf16 %v11592_v42 }
 0x6d8   : > { %v9170_v48 = vpop.permute.xlu1 %9169  ;;  %v11600_v19 = vpop.permute.xlu0 %3451  ;;  %8667 = vmatprep.subr.msk.bf16.mxu0 %vm10783_vm2, %v8665_v40 }
 0x6d9   : > { %8042 = vmatmul.mubr.msk.f32.gmra.mrb[44].mxu0 %vm1960_vm3, %v2310_v62  ;;  %v9172_v21 = vunpack.i.h.bf16 %v9170_v48  ;;  %v9171_v61 = vunpack.i.l.bf16 %v9170_v48 }
 0x6da   : > { %8044 = vmatprep.mubr.msk.f32.mxu0 %vm1960_vm3, %v2311_v25 }
 0x6db   : > { %v8683_v28 = vpack.c.bf16 %v9172_v21, %v9171_v61 }
 0x6dc   : > { %v3283_v22 = vpop.permute.xlu1 %3282  ;;  %v11610_v50 = vpop.permute.xlu0 %3455 }
 0x6dd   : > { %8045 = vmatmul.mubr.msk.f32.gmra.mrb[46].mxu0 %vm1960_vm3, %v2312_v29 }
 0x6de   : > { %8115 = vmatprep.mubr.msk.f32.mxu0 %vm1307_vm1, %v3283_v22 }
 0x6df   : > { %8670 = vmatpush3.bf16.xpose.msk.msra.mxu0 %vm10783_vm2, %v8665_v40 }
 0x6e0   : > { %v3285_v37 = vpop.permute.xlu1 %3284  ;;  %v11616_v9 = vpop.permute.xlu0 %9209  ;;  %8673 = vmatprep.subr.msk.bf16.mxu0 %vm10783_vm2, %v8671_v31 }
 0x6e4   : > { %v9175_v55 = vpop.permute.xlu1 %9174  ;;  %v11620_v57 = vpop.permute.xlu0 %3459 }
 0x6e5   : > { %v9177_v11 = vunpack.i.h.bf16 %v9175_v55  ;;  %v9176_v59 = vunpack.i.l.bf16 %v9175_v55 }
 0x6e7   : > { %8676 = vmatpush3.bf16.xpose.msk.msra.mxu0 %vm10783_vm2, %v8671_v31  ;;  %v8689_v53 = vpack.c.bf16 %v9177_v11, %v9176_v59 }
 0x6e8   : > { %v9185_v20 = vpop.permute.xlu1 %9184  ;;  %v11624_v30 = vpop.permute.xlu0 %3463  ;;  %8679 = vmatprep.subr.msk.bf16.mxu0 %vm10783_vm2, %v8677_v1 }
 0x6e9   : > { %v9187_v38 = vunpack.i.h.bf16 %v9185_v20  ;;  %v9186_v12 = vunpack.i.l.bf16 %v9185_v20 }
 0x6eb   : > { %v11628_v34 = vpack.c.bf16 %v9187_v38, %v9186_v12 }
 0x6ec   : > { %v3289_v14 = vpop.permute.xlu1 %3288  ;;  %v11630_v3 = vpop.permute.xlu0 %9219 }
 0x6ed   : > { %8709 = vmatprep.subr.msk.bf16.mxu1 %vm10783_vm2, %v11628_v34  ;;  %v9222_v8 = vunpack.i.h.bf16 %v11630_v3  ;;  %v9221_v32 = vunpack.i.l.bf16 %v11630_v3 }
 0x6ef   : > { %8682 = vmatpush3.bf16.xpose.msk.msra.mxu0 %vm10783_vm2, %v8677_v1 }
 0x6f0   : > { %v11637_v58 = vpop.permute.xlu1 %9194  ;;  %v11639_v47 = vpop.permute.xlu0 %3622  ;;  %8685 = vmatprep.subr.msk.bf16.mxu0 %vm10783_vm2, %v8683_v28 }
 0x6f1   : > { %v9197_v3 = vunpack.i.h.bf16 %v11637_v58 }
 0x6f4   : > { %v3293_v0 = vpop.permute.xlu1 %3292  ;;  %v11643_v44 = vpop.permute.xlu0 %3626 }
 0x6f6   : > { %8116 = vmatmul.mubr.msk.f32.vlgmr.msra.gmra.mrb[48].mxu0 %vm1307_vm1, %v3285_v37 }
 0x6f7   : > { %8118 = vmatprep.mubr.msk.f32.mxu0 %vm1307_vm1, %v11571_v36  ;;  %8688 = vmatpush3.bf16.xpose.msk.msra.mxu0 %vm10783_vm2, %v8683_v28  ;;  %v9196_v28 = vunpack.i.l.bf16 %v11637_v58  ;;  %v9202_v58 = vunpack.i.h.bf16 %v11592_v42 }
 0x6f8   : > { %v3297_v7 = vpop.permute.xlu1 %3296  ;;  %v11650_v52 = vpop.permute.xlu0 %3628  ;;  %8691 = vmatprep.subr.msk.bf16.mxu0 %vm10783_vm2, %v8689_v53 }
 0x6fa   : > { %8119 = vmatmul.mubr.msk.f32.gmra.mrb[50].mxu0 %vm1307_vm1, %v3289_v14 }
 0x6fb   : > { %8121 = vmatprep.mubr.msk.f32.mxu0 %vm1307_vm1, %v11579_v15  ;;  %v9191_v15 = vunpack.i.l.bf16 %v11575_v43 }
 0x6fc   : > { %v9205_v4 = vpop.permute.xlu1 %9204  ;;  %v11659_v36 = vpop.permute.xlu0 %3632 }
 0x6fd   : > { %v9207_v56 = vunpack.i.h.bf16 %v9205_v4  ;;  %v9206_v43 = vunpack.i.l.bf16 %v9205_v4 }
 0x6fe   : > { %8122 = vmatmul.mubr.msk.f32.gmra.mrb[52].mxu0 %vm1307_vm1, %v3293_v0 }
 0x6ff   : > { %8124 = vmatprep.mubr.msk.f32.mxu0 %vm1307_vm1, %v11584_v54  ;;  %8694 = vmatpush3.bf16.xpose.msk.msra.mxu0 %vm10783_vm2, %v8689_v53  ;;  %v8701_v54 = vpack.c.bf16 %v9192_v35, %v9191_v15  ;;  %v8731_v17 = vpack.c.bf16 %v9207_v56, %v9206_v43  ;;  %v8713_v53 = vpack.c.bf16 %v9197_v3, %v9196_v28  ;;  %v9212_v35 = vunpack.i.h.bf16 %v11616_v9 }
 0x700   : > { %v3454_v41 = vpop.permute.xlu1 %3453  ;;  %v3790_v46 = vpop.permute.xlu0 %3789  ;;  %8697 = vmatprep.subr.msk.bf16.mxu0 %vm10783_vm2, %v8695_v49  ;;  %v9211_v15 = vunpack.i.l.bf16 %v11616_v9 }
 0x702   : > { %8125 = vmatmul.mubr.msk.f32.gmra.mrb[54].mxu0 %vm1307_vm1, %v3297_v7 }
 0x703   : > { %8143 = vmatprep.mubr.msk.f32.mxu0 %vm1307_vm1, %v11600_v19 }
 0x704   : > { %v3458_v26 = vpop.permute.xlu1 %3457  ;;  %v11673_v6 = vpop.permute.xlu0 %3793 }
 0x707   : > { %8700 = vmatpush3.bf16.xpose.msk.msra.mxu0 %vm10783_vm2, %v8695_v49 }
 0x708   : > { %v9215_v63 = vpop.permute.xlu1 %9214  ;;  %8703 = vmatprep.subr.msk.bf16.mxu0 %vm10783_vm2, %v8701_v54  ;;  %v11679_v18 = vpop.permute.xlu0 %3797 }
 0x709   : > { %v9217_v40 = vunpack.i.h.bf16 %v9215_v63  ;;  %v9216_v62 = vunpack.i.l.bf16 %v9215_v63  ;;  %v8725_v63 = vpack.c.bf16 %v9212_v35, %v9211_v15 }
 0x70b   : > { %v8737_v19 = vpack.c.bf16 %v9217_v40, %v9216_v62 }
 0x70c   : > { %v3462_v16 = vpop.permute.xlu1 %3461  ;;  %v11681_v24 = vpop.permute.xlu0 %3801 }
 0x70f   : > { %8706 = vmatpush3.bf16.xpose.msk.msra.mxu0 %vm10783_vm2, %v8701_v54 }
 0x710   : > { %v3466_v23 = vpop.permute.xlu1 %3465  ;;  %8733 = vmatprep.subr.msk.bf16.mxu0 %vm10783_vm2, %v8731_v17  ;;  %v11689_v48 = vpop.permute.xlu0 %9234 }
 0x714   : > { %v11687_v10 = vpop.permute.xlu1 %3620  ;;  %v11703_v29 = vpop.permute.xlu0 %9249 }
 0x716   : > { %8144 = vmatmul.mubr.msk.f32.vlgmr.msra.gmra.mrb[56].mxu0 %vm1307_vm1, %v3454_v41 }
 0x717   : > { %8146 = vmatprep.mubr.msk.f32.mxu0 %vm1307_vm1, %v11610_v50  ;;  %8736 = vmatpush3.bf16.xpose.msk.msra.mxu0 %vm10783_vm2, %v8731_v17  ;;  %v8743_v50 = vpack.c.bf16 %v9222_v8, %v9221_v32 }
 0x718   : > { %v11696_v25 = vpop.permute.xlu1 %3624  ;;  %8739 = vmatprep.subr.msk.bf16.mxu0 %vm10783_vm2, %v8737_v19  ;;  %v11716_v37 = vpop.permute.xlu0 %9259 }
 0x71a   : > { %8147 = vmatmul.mubr.msk.f32.gmra.mrb[58].mxu0 %vm1307_vm1, %v3458_v26 }
 0x71b   : > { %8149 = vmatprep.mubr.msk.f32.mxu0 %vm1307_vm1, %v11620_v57 }
 0x71c   : > { %v9225_v22 = vpop.permute.xlu1 %9224  ;;  %v9270_v1 = vpop.permute.xlu0 %9269 }
 0x71d   : > { %v9227_v33 = vunpack.i.h.bf16 %v9225_v22  ;;  %v9226_v39 = vunpack.i.l.bf16 %v9225_v22  ;;  %v9271_v38 = vunpack.i.l.bf16 %v9270_v1 }
 0x71e   : > { %8150 = vmatmul.mubr.msk.f32.gmra.mrb[60].mxu0 %vm1307_vm1, %v3462_v16 }
 0x71f   : > { %8152 = vmatprep.mubr.msk.f32.mxu0 %vm1307_vm1, %v11624_v30  ;;  %8742 = vmatpush3.bf16.xpose.msk.msra.mxu0 %vm10783_vm2, %v8737_v19  ;;  %v8749_v57 = vpack.c.bf16 %v9227_v33, %v9226_v39  ;;  %v9272_v30 = vunpack.i.h.bf16 %v9270_v1 }
 0x720   : > { %v11712_v31 = vpop.permute.xlu1 %3630  ;;  %8745 = vmatprep.subr.msk.bf16.mxu0 %vm10783_vm2, %v8743_v50  ;;  %v9280_v16 = vpop.permute.xlu0 %9279 }
 0x721   : > { %v8787_v61 = vpack.c.bf16 %v9272_v30, %v9271_v38  ;;  %v9282_v62 = vunpack.i.h.bf16 %v9280_v16  ;;  %v9281_v8 = vunpack.i.l.bf16 %v9280_v16 }
 0x722   : > { %8153 = vmatmul.mubr.msk.f32.gmra.mrb[62].mxu0 %vm1307_vm1, %v3466_v23 }
 0x723   : > { %8199 = vmatprep.mubr.msk.f32.mxu0 %vm1307_vm1, %v3790_v46 }
 0x724   : > { %v11720_v55 = vpop.permute.xlu1 %3634 }
 0x727   : > { %8748 = vmatpush3.bf16.xpose.msk.msra.mxu0 %vm10783_vm2, %v8743_v50 }
 0x728   : > { %v3792_v20 = vpop.permute.xlu1 %3791  ;;  %8751 = vmatprep.subr.msk.bf16.mxu0 %vm10783_vm2, %v8749_v57 }
 0x72c   : > { %v3796_v12 = vpop.permute.xlu1 %3795 }
 0x72e   : > { %v11726_v21 = vpop.f32.mrb[40].mxu1 }
 0x72f   : > { %v11728_v14 = vpop.f32.mrb[41].mxu1  ;;  %8754 = vmatpush3.bf16.xpose.msk.msra.mxu0 %vm10783_vm2, %v8749_v57 }
 0x730   : > { %v3800_v11 = vpop.permute.xlu1 %3799  ;;  %8788 = vmatprep.subr.bf16.mxu0 %v8787_v61 }
 0x731   : > { %v7953_v59 = vpop.f32.mrb[24].mxu0 }
 0x732   : > { %v2427_v0 = vpop.f32.mrb[25].mxu0 }
 0x733   : > { %8051 = vmatprep.mubr.msk.f32.mxu1 %vm1307_vm1, %v2427_v0 }
 0x734   : > { %v3804_v7 = vpop.permute.xlu1 %3803  ;;  %8052 = vmatmul.mubr.msk.f32.vlgmr.msra.gmra.mrb[48].mxu1 %vm1307_vm1, %v7953_v59 }
 0x735   : > { %8712 = vmatpush3.bf16.xpose.msk.msra.mxu1 %vm10783_vm2, %v11628_v34  ;;  %v8719_v34 = vpack.c.bf16 %v9202_v58, %v9201_v13 }
 0x736   : > { %8715 = vmatprep.subr.msk.bf16.mxu1 %vm10783_vm2, %v8713_v53  ;;  %8200 = vmatmul.mubr.msk.f32.vlgmr.msra.gmra.mrb[64].mxu0 %vm1307_vm1, %v3792_v20 }
 0x737   : > { %8202 = vmatprep.mubr.msk.f32.mxu0 %vm1307_vm1, %v11673_v6  ;;  %8790 = vmatpush3.bf16.msra.mxu0 %v8787_v61  ;;  %v8795_v61 = vpack.c.bf16 %v9282_v62, %v9281_v8 }
 0x738   : > { %v9230_v5 = vpop.permute.xlu1 %9229 }
 0x739   : > { %v11746_v4 = vpop.f32.mrb[42].mxu1  ;;  %v9232_v17 = vunpack.i.h.bf16 %v9230_v5 }
 0x73a   : > { %v11748_v49 = vpop.f32.mrb[43].mxu1  ;;  %8203 = vmatmul.mubr.msk.f32.gmra.mrb[66].mxu0 %vm1307_vm1, %v3796_v12 }
 0x73b   : > { %8205 = vmatprep.mubr.msk.f32.mxu0 %vm1307_vm1, %v11679_v18 }
 0x73c   : > { %v11753_v41 = vpop.permute.xlu1 %9239 }
 0x73d   : > { %8718 = vmatpush3.bf16.xpose.msk.msra.mxu1 %vm10783_vm2, %v8713_v53  ;;  %v9241_v35 = vunpack.i.l.bf16 %v11753_v41 }
 0x73e   : > { %v7956_v46 = vpop.f32.mrb[26].mxu0  ;;  %8721 = vmatprep.subr.msk.bf16.mxu1 %vm10783_vm2, %v8719_v34  ;;  %8206 = vmatmul.mubr.msk.f32.gmra.mrb[68].mxu0 %vm1307_vm1, %v3800_v11 }
 0x73f   : > { %v2437_v42 = vpop.f32.mrb[27].mxu0  ;;  %8208 = vmatprep.mubr.msk.f32.mxu0 %vm1307_vm1, %v11681_v24  ;;  %v9231_v24 = vunpack.i.l.bf16 %v9230_v5 }
 0x740   : > { %8054 = vmatprep.mubr.msk.f32.mxu1 %vm1307_vm1, %v2437_v42  ;;  %v11765_v26 = vpop.permute.xlu1 %9244  ;;  %v9242_v42 = vunpack.i.h.bf16 %v11753_v41  ;;  %v9251_v41 = vunpack.i.l.bf16 %v11703_v29 }
 0x741   : > { %8055 = vmatmul.mubr.msk.f32.gmra.mrb[50].mxu1 %vm1307_vm1, %v7956_v46  ;;  %v8015_v6 = vpop.f32.mrb[44].mxu1  ;;  %v11781_v33 = vpack.c.bf16 %v9232_v17, %v9231_v24  ;;  %v9236_v46 = vunpack.i.l.bf16 %v11689_v48 }
 0x742   : > { %v2753_v54 = vpop.f32.mrb[45].mxu1  ;;  %8209 = vmatmul.mubr.msk.f32.gmra.mrb[70].mxu0 %vm1307_vm1, %v3804_v7 }
 0x744   : > { %v11769_v18 = vpop.permute.xlu1 %9254 }
 0x745   : > { %8724 = vmatpush3.bf16.xpose.msk.msra.mxu1 %vm10783_vm2, %v8719_v34  ;;  %v9237_v34 = vunpack.i.h.bf16 %v11689_v48  ;;  %v9247_v48 = vunpack.i.h.bf16 %v11765_v26 }
 0x746   : > { %v7959_v56 = vpop.f32.mrb[28].mxu0  ;;  %8727 = vmatprep.subr.msk.bf16.mxu1 %vm10783_vm2, %v8725_v63 }
 0x747   : > { %v2447_v9 = vpop.f32.mrb[29].mxu0  ;;  %v8759_v15 = vpack.c.bf16 %v9237_v34, %v9236_v46 }
 0x748   : > { %8057 = vmatprep.mubr.msk.f32.mxu1 %vm1307_vm1, %v2447_v9  ;;  %v11776_v43 = vpop.permute.xlu1 %9264 }
 0x749   : > { %8058 = vmatmul.mubr.msk.f32.gmra.mrb[52].mxu1 %vm1307_vm1, %v7959_v56 }
 0x74a   : > { %v7962_v23 = vpop.f32.mrb[30].mxu0 }
 0x74b   : > { %v2457_v40 = vpop.f32.mrb[31].mxu0 }
 0x74c   : > { %8060 = vmatprep.mubr.msk.f32.mxu1 %vm1307_vm1, %v2457_v40  ;;  %v9275_v19 = vpop.permute.xlu1 %9274 }
 0x74d   : > { %v9277_v32 = vunpack.i.h.bf16 %v9275_v19  ;;  %v9276_v22 = vunpack.i.l.bf16 %v9275_v19  ;;  %8061 = vmatmul.mubr.msk.f32.gmra.mrb[54].mxu1 %vm1307_vm1, %v7962_v23  ;;  %v8018_v50 = vpop.f32.mrb[46].mxu1 }
 0x74e   : > { %8730 = vmatpush3.bf16.xpose.msk.msra.mxu1 %vm10783_vm2, %v8725_v63  ;;  %v2763_v39 = vpop.f32.mrb[47].mxu1 }
 0x74f   : > { %8756 = vmatprep.subr.bf16.mxu1 %v11781_v33  ;;  %v8791_v57 = vpack.c.bf16 %v9277_v32, %v9276_v22 }
 0x750   : > { %v9285_v1 = vpop.permute.xlu1 %9284  ;;  %v7981_v20 = vpop.f32.mrb[32].mxu0 }
 0x751   : > { %v9287_v30 = vunpack.i.h.bf16 %v9285_v1  ;;  %v9286_v38 = vunpack.i.l.bf16 %v9285_v1  ;;  %v2580_v12 = vpop.f32.mrb[33].mxu0  ;;  %8792 = vmatprep.subr.bf16.mxu0 %v8791_v57 }
 0x752   : > { %8063 = vmatprep.mubr.msk.f32.mxu1 %vm1307_vm1, %v2580_v12  ;;  %8794 = vmatpush3.bf16.msra.mxu0 %v8791_v57 }
 0x753   : > { %8064 = vmatmul.mubr.msk.f32.gmra.mrb[56].mxu1 %vm1307_vm1, %v7981_v20  ;;  %8796 = vmatprep.subr.bf16.mxu0 %v8795_v61  ;;  %v8799_v3 = vpack.c.bf16 %v9287_v30, %v9286_v38 }
 0x756   : > { %8798 = vmatpush3.bf16.msra.mxu0 %v8795_v61 }
 0x757   : > { %8800 = vmatprep.subr.bf16.mxu0 %v8799_v3 }
 0x759   : > { %v7984_v2 = vpop.f32.mrb[34].mxu0 }
 0x75a   : > { %v2590_v28 = vpop.f32.mrb[35].mxu0  ;;  %8802 = vmatpush3.bf16.msra.mxu0 %v8799_v3 }
 0x75b   : > { %8066 = vmatprep.mubr.msk.f32.mxu1 %vm1307_vm1, %v2590_v28 }
 0x75c   : > { %8067 = vmatmul.mubr.msk.f32.gmra.mrb[58].mxu1 %vm1307_vm1, %v7984_v2 }
 0x75d   : > { %v7987_v11 = vpop.f32.mrb[36].mxu0 }
 0x75e   : > { %v2600_v59 = vpop.f32.mrb[37].mxu0 }
 0x75f   : > { %8069 = vmatprep.mubr.msk.f32.mxu1 %vm1307_vm1, %v2600_v59 }
 0x760   : > { %8070 = vmatmul.mubr.msk.f32.gmra.mrb[60].mxu1 %vm1307_vm1, %v7987_v11 }
 0x761   : > { %v7990_v0 = vpop.f32.mrb[38].mxu0 }
 0x762   : > { %v2610_v53 = vpop.f32.mrb[39].mxu0 }
 0x763   : > { %8072 = vmatprep.mubr.msk.f32.mxu1 %vm1307_vm1, %v2610_v53 }
 0x764   : > { %8073 = vmatmul.mubr.msk.f32.gmra.mrb[62].mxu1 %vm1307_vm1, %v7990_v0 }
 0x765   : > { %8075 = vmatprep.mubr.msk.f32.mxu1 %vm1307_vm1, %v11728_v14 }
 0x768   : > { %8076 = vmatmul.mubr.msk.f32.gmra.mrb[64].mxu1 %vm1307_vm1, %v11726_v21 }
 0x769   : > { %8078 = vmatprep.mubr.msk.f32.mxu1 %vm1307_vm1, %v11748_v49 }
 0x76c   : > { %8079 = vmatmul.mubr.msk.f32.gmra.mrb[66].mxu1 %vm1307_vm1, %v11746_v4 }
 0x76d   : > { %8081 = vmatprep.mubr.msk.f32.mxu1 %vm1307_vm1, %v2753_v54 }
 0x770   : > { %8082 = vmatmul.mubr.msk.f32.gmra.mrb[68].mxu1 %vm1307_vm1, %v8015_v6  ;;  %v9246_v6 = vunpack.i.l.bf16 %v11765_v26 }
 0x771   : > { %8084 = vmatprep.mubr.msk.f32.mxu1 %vm1307_vm1, %v2763_v39 }
 0x774   : > { %8085 = vmatmul.mubr.msk.f32.gmra.mrb[70].mxu1 %vm1307_vm1, %v8018_v50 }
 0x7a4   : > { %v8037_v7 = vpop.f32.mrb[40].mxu0 }
 0x7a5   : > { %v2886_v58 = vpop.f32.mrb[41].mxu0 }
 0x7a6   : > { %8087 = vmatprep.mubr.msk.f32.mxu1 %vm1307_vm1, %v2886_v58 }
 0x7a7   : > { %8088 = vmatmul.mubr.msk.f32.gmra.mrb[72].mxu1 %vm1307_vm1, %v8037_v7 }
 0x7a8   : > { %v8040_v21 = vpop.f32.mrb[42].mxu0 }
 0x7a9   : > { %v2896_v14 = vpop.f32.mrb[43].mxu0 }
 0x7aa   : > { %8090 = vmatprep.mubr.msk.f32.mxu1 %vm1307_vm1, %v2896_v14 }
 0x7ab   : > { %8091 = vmatmul.mubr.msk.f32.gmra.mrb[74].mxu1 %vm1307_vm1, %v8040_v21 }
 0x7ac   : > { %v8043_v13 = vpop.f32.mrb[44].mxu0 }
 0x7ad   : > { %v2906_v5 = vpop.f32.mrb[45].mxu0 }
 0x7ae   : > { %8093 = vmatprep.mubr.msk.f32.mxu1 %vm1307_vm1, %v2906_v5 }
 0x7af   : > { %8094 = vmatmul.mubr.msk.f32.gmra.mrb[76].mxu1 %vm1307_vm1, %v8043_v13 }
 0x7b0   : > { %v8046_v4 = vpop.f32.mrb[46].mxu0 }
 0x7b1   : > { %v2916_v49 = vpop.f32.mrb[47].mxu0 }
 0x7b2   : > { %8096 = vmatprep.mubr.msk.f32.mxu1 %vm1307_vm1, %v2916_v49 }
 0x7b3   : > { %8097 = vmatmul.mubr.msk.f32.gmra.mrb[78].mxu1 %vm1307_vm1, %v8046_v4 }
 0x7b4   : > { %8171 = vmatprep.mubr.msk.f32.mxu1 %vm1307_vm1, %v11687_v10  ;;  %v8763_v10 = vpack.c.bf16 %v9242_v42, %v9241_v35 }
 0x7b7   : > { %8172 = vmatmul.mubr.msk.f32.vlgmr.msra.gmra.mrb[80].mxu1 %vm1307_vm1, %v11639_v47  ;;  %v9252_v47 = vunpack.i.h.bf16 %v11703_v29 }
 0x7b8   : > { %8758 = vmatpush3.bf16.msra.mxu1 %v11781_v33  ;;  %8174 = vmatprep.mubr.msk.f32.mxu1 %vm1307_vm1, %v11696_v25  ;;  %v8767_v25 = vpack.c.bf16 %v9247_v48, %v9246_v6 }
 0x7b9   : > { %8760 = vmatprep.subr.bf16.mxu1 %v8759_v15 }
 0x7bb   : > { %8175 = vmatmul.mubr.msk.f32.gmra.mrb[82].mxu1 %vm1307_vm1, %v11643_v44  ;;  %v11839_v44 = vpack.c.bf16 %v9252_v47, %v9251_v41 }
 0x7bc   : > { %8762 = vmatpush3.bf16.msra.mxu1 %v8759_v15  ;;  %8177 = vmatprep.mubr.msk.f32.mxu1 %vm1307_vm1, %v11650_v52 }
 0x7bd   : > { %8764 = vmatprep.subr.bf16.mxu1 %v8763_v10 }
 0x7bf   : > { %8178 = vmatmul.mubr.msk.f32.gmra.mrb[84].mxu1 %vm1307_vm1, %v11712_v31 }
 0x7c0   : > { %8766 = vmatpush3.bf16.msra.mxu1 %v8763_v10  ;;  %8180 = vmatprep.mubr.msk.f32.mxu1 %vm1307_vm1, %v11659_v36 }
 0x7c1   : > { %8768 = vmatprep.subr.bf16.mxu1 %v8767_v25 }
 0x7c3   : > { %8181 = vmatmul.mubr.msk.f32.gmra.mrb[86].mxu1 %vm1307_vm1, %v11720_v55 }
 0x7c4   : > { %8770 = vmatpush3.bf16.msra.mxu1 %v8767_v25 }
 0x7c5   : > { %8772 = vmatprep.subr.bf16.mxu1 %v11839_v44 }
 0x7c9   : > { %v11842_v52 = vpop.f32.mrb[48].mxu0 }
 0x7ca   : > { %v11844_v29 = vpop.f32.mrb[49].mxu0  ;;  %v3961_v31 = vsel %vm1960_vm3, %v11842_v52, -inf }
 0x7cb   : > { %3962 = vmax.xlane.f32.xlu1 %v3961_v31  ;;  %v3958_v36 = vsel %vm1960_vm3, %v11844_v29, -inf }
 0x7cc   : > { %3959 = vmax.xlane.f32.xlu0 %v3958_v36 }
 0x7cd   : > { %v11850_v26 = vpop.f32.mrb[50].mxu0 }
 0x7ce   : > { %v11852_v55 = vpop.f32.mrb[51].mxu0  ;;  %v3967_v54 = vsel %vm1960_vm3, %v11850_v26, -inf }
 0x7cf   : > { %v3964_v9 = vsel %vm1960_vm3, %v11852_v55, -inf }
 0x7d0   : > { %3968 = vmax.xlane.f32.xlu0 %v3967_v54 }
 0x7d1   : > { %v11856_v63 = vpop.f32.mrb[52].mxu0 }
 0x7d2   : > { %v11858_v56 = vpop.f32.mrb[53].mxu0  ;;  %v3973_v23 = vsel %vm1960_vm3, %v11856_v63, -inf }
 0x7d3   : > { %v3970_v16 = vsel %vm1960_vm3, %v11858_v56, -inf }
 0x7d4   : > { %3965 = vmax.xlane.f32.xlu0 %v3964_v9  ;;  %3971 = vmax.xlane.f32.xlu1 %v3970_v16 }
 0x7d5   : > { %v11864_v17 = vpop.f32.mrb[54].mxu0 }
 0x7d6   : > { %v11866_v24 = vpop.f32.mrb[55].mxu0  ;;  %v3979_v62 = vsel %vm1960_vm3, %v11864_v17, -inf }
 0x7d7   : > { %v3976_v40 = vsel %vm1960_vm3, %v11866_v24, -inf }
 0x7d8   : > { %3974 = vmax.xlane.f32.xlu0 %v3973_v23  ;;  %3977 = vmax.xlane.f32.xlu1 %v3976_v40 }
 0x7dc   : > { %3980 = vmax.xlane.f32.xlu0 %v3979_v62 }
 0x7e9   : > { %v11874_v19 = vpop.f32.mrb[56].mxu0 }
 0x7ea   : > { %v11876_v8 = vpop.f32.mrb[57].mxu0  ;;  %v3985_v32 = vsel %vm1960_vm3, %v11874_v19, -inf }
 0x7eb   : > { %3986 = vmax.xlane.f32.xlu0 %v3985_v32  ;;  %v3982_v22 = vsel %vm1960_vm3, %v11876_v8, -inf }
 0x7ec   : > { %3983 = vmax.xlane.f32.xlu1 %v3982_v22 }
 0x7ed   : > { %v11882_v50 = vpop.f32.mrb[58].mxu0 }
 0x7ee   : > { %v11884_v33 = vpop.f32.mrb[59].mxu0  ;;  %v3991_v39 = vsel %vm1960_vm3, %v11882_v50, -inf }
 0x7ef   : > { %3992 = vmax.xlane.f32.xlu0 %v3991_v39  ;;  %v3988_v57 = vsel %vm1960_vm3, %v11884_v33, -inf }
 0x7f0   : > { %3989 = vmax.xlane.f32.xlu1 %v3988_v57 }
 0x7f1   : > { %v11890_v1 = vpop.f32.mrb[60].mxu0 }
 0x7f2   : > { %v11892_v20 = vpop.f32.mrb[61].mxu0  ;;  %v3997_v30 = vsel %vm1960_vm3, %v11890_v1, -inf }
 0x7f3   : > { %3998 = vmax.xlane.f32.xlu0 %v3997_v30  ;;  %v3994_v38 = vsel %vm1960_vm3, %v11892_v20, -inf }
 0x7f4   : > { %3995 = vmax.xlane.f32.xlu1 %v3994_v38 }
 0x7f5   : > { %v11898_v12 = vpop.f32.mrb[62].mxu0 }
 0x7f6   : > { %v11900_v61 = vpop.f32.mrb[63].mxu0  ;;  %v4003_v3 = vsel %vm1960_vm3, %v11898_v12, -inf }
 0x7f7   : > { %4004 = vmax.xlane.f32.xlu0 %v4003_v3  ;;  %v4000_v2 = vsel %vm1960_vm3, %v11900_v61, -inf }
 0x7f8   : > { %4001 = vmax.xlane.f32.xlu1 %v4000_v2 }
 0x809   : > { %v11906_v28 = vpop.f32.mrb[64].mxu0 }
 0x80a   : > { %v11908_v11 = vpop.f32.mrb[65].mxu0  ;;  %v4033_v59 = vsel %vm1960_vm3, %v11906_v28, -inf }
 0x80b   : > { %4034 = vmax.xlane.f32.xlu0 %v4033_v59  ;;  %v4030_v0 = vsel %vm1960_vm3, %v11908_v11, -inf }
 0x80c   : > { %4031 = vmax.xlane.f32.xlu1 %v4030_v0 }
 0x80d   : > { %v11914_v53 = vpop.f32.mrb[66].mxu0 }
 0x80e   : > { %v11916_v7 = vpop.f32.mrb[67].mxu0  ;;  %v4039_v58 = vsel %vm1960_vm3, %v11914_v53, -inf }
 0x80f   : > { %4040 = vmax.xlane.f32.xlu0 %v4039_v58  ;;  %v4036_v21 = vsel %vm1960_vm3, %v11916_v7, -inf }
 0x810   : > { %4037 = vmax.xlane.f32.xlu1 %v4036_v21 }
 0x811   : > { %v11922_v14 = vpop.f32.mrb[68].mxu0 }
 0x812   : > { %v11924_v13 = vpop.f32.mrb[69].mxu0  ;;  %v4045_v5 = vsel %vm1960_vm3, %v11922_v14, -inf }
 0x813   : > { %4046 = vmax.xlane.f32.xlu0 %v4045_v5  ;;  %v4042_v4 = vsel %vm1960_vm3, %v11924_v13, -inf }
 0x814   : > { %4043 = vmax.xlane.f32.xlu1 %v4042_v4 }
 0x815   : > { %v11930_v49 = vpop.f32.mrb[70].mxu0 }
 0x816   : > { %v11932_v34 = vpop.f32.mrb[71].mxu0  ;;  %v4051_v46 = vsel %vm1960_vm3, %v11930_v49, -inf }
 0x817   : > { %4052 = vmax.xlane.f32.xlu0 %v4051_v46  ;;  %v4048_v42 = vsel %vm1960_vm3, %v11932_v34, -inf }
 0x818   : > { %4049 = vmax.xlane.f32.xlu1 %v4048_v42 }
 0x858   : > { %v3963_v35 = vpop.xlane.xlu1 %3962 }
 0x859   : > { %v4055_v15 = vsub.f32 %v11842_v52, %v3963_v35  ;;  %v3960_v48 = vpop.xlane.xlu0 %3959 }
 0x85a   : > { %v4054_v6 = vsub.f32 %v11844_v29, %v3960_v48 }
 0x85b   : > { %v4088_v10 = vmul.f32 1.442695, %v4055_v15 }
 0x85c   : > { %v4086_v47 = vmul.f32 1.442695, %v4054_v6 }
 0x85d   : > { %9520 = vpow2.f32 %v4088_v10  ;;  %v3969_v41 = vpop.xlane.xlu0 %3968 }
 0x85e   : > { %9522 = vpow2.f32 %v4086_v47  ;;  %v4057_v25 = vsub.f32 %v11850_v26, %v3969_v41 }
 0x860   : > { %v4092_v31 = vmul.f32 1.442695, %v4057_v25 }
 0x861   : > { %v3966_v36 = vpop.xlane.xlu0 %3965  ;;  %v3972_v54 = vpop.xlane.xlu1 %3971 }
 0x862   : > { %9524 = vpow2.f32 %v4092_v31  ;;  %v4056_v9 = vsub.f32 %v11852_v55, %v3966_v36  ;;  %v4058_v16 = vsub.f32 %v11858_v56, %v3972_v54 }
 0x864   : > { %v4090_v23 = vmul.f32 1.442695, %v4056_v9  ;;  %v4094_v52 = vmul.f32 1.442695, %v4058_v16 }
 0x865   : > { %v3975_v40 = vpop.xlane.xlu0 %3974  ;;  %v3978_v62 = vpop.xlane.xlu1 %3977 }
 0x866   : > { %9526 = vpow2.f32 %v4090_v23  ;;  %v4059_v29 = vsub.f32 %v11856_v63, %v3975_v40  ;;  %v4060_v39 = vsub.f32 %v11866_v24, %v3978_v62 }
 0x867   : > { %v11944_v32 = vpop.eup %9520  ;;  %9528 = vpow2.f32 %v4094_v52 }
 0x868   : > { %v11946_v22 = vpop.eup %9522  ;;  %v4096_v26 = vmul.f32 1.442695, %v4059_v29  ;;  %v4153_v55 = vsel %vm1960_vm3, %v11944_v32, 0.0  ;;  %v4098_v38 = vmul.f32 1.442695, %v4060_v39 }
 0x869   : > { %v3981_v57 = vpop.xlane.xlu0 %3980  ;;  %4154 = vadd.xlane.f32.xlu0 %v4153_v55  ;;  %v4150_v56 = vsel %vm1960_vm3, %v11946_v22, 0.0 }
 0x86a   : > { %9530 = vpow2.f32 %v4096_v26  ;;  %v4061_v30 = vsub.f32 %v11864_v17, %v3981_v57  ;;  %4151 = vadd.xlane.f32.xlu1 %v4150_v56 }
 0x86c   : > { %v11954_v63 = vpop.eup %9524  ;;  %v4100_v3 = vmul.f32 1.442695, %v4061_v30 }
 0x86d   : > { %v4159_v2 = vsel %vm1960_vm3, %v11954_v63, 0.0 }
 0x86e   : > { %9532 = vpow2.f32 %v4100_v3  ;;  %4160 = vadd.xlane.f32.xlu0 %v4159_v2 }
 0x86f   : > { %9534 = vpow2.f32 %v4098_v38 }
 0x870   : > { %v11958_v24 = vpop.eup %9526 }
 0x871   : > { %v4156_v59 = vsel %vm1960_vm3, %v11958_v24, 0.0  ;;  %v11962_v0 = vpop.eup %9528 }
 0x872   : > { %4157 = vadd.xlane.f32.xlu1 %v4156_v59  ;;  %v4162_v21 = vsel %vm1960_vm3, %v11962_v0, 0.0 }
 0x874   : > { %v11964_v17 = vpop.eup %9530 }
 0x875   : > { %v4165_v58 = vsel %vm1960_vm3, %v11964_v17, 0.0 }
 0x876   : > { %4166 = vadd.xlane.f32.xlu0 %v4165_v58  ;;  %4163 = vadd.xlane.f32.xlu1 %v4162_v21 }
 0x878   : > { %v11970_v5 = vpop.eup %9532  ;;  %v3987_v4 = vpop.xlane.xlu0 %3986 }
 0x879   : > { %v4063_v46 = vsub.f32 %v11874_v19, %v3987_v4  ;;  %v3984_v42 = vpop.xlane.xlu1 %3983  ;;  %v4171_v35 = vsel %vm1960_vm3, %v11970_v5, 0.0  ;;  %v11975_v15 = vpop.eup %9534 }
 0x87a   : > { %v4062_v48 = vsub.f32 %v11876_v8, %v3984_v42  ;;  %4172 = vadd.xlane.f32.xlu0 %v4171_v35  ;;  %v4168_v31 = vsel %vm1960_vm3, %v11975_v15, 0.0 }
 0x87b   : > { %v4104_v6 = vmul.f32 1.442695, %v4063_v46 }
 0x87c   : > { %v4102_v10 = vmul.f32 1.442695, %v4062_v48  ;;  %v3993_v47 = vpop.xlane.xlu0 %3992 }
 0x87d   : > { %9536 = vpow2.f32 %v4104_v6  ;;  %v4065_v41 = vsub.f32 %v11882_v50, %v3993_v47  ;;  %v3990_v25 = vpop.xlane.xlu1 %3989 }
 0x87e   : > { %9538 = vpow2.f32 %v4102_v10  ;;  %v4064_v19 = vsub.f32 %v11884_v33, %v3990_v25  ;;  %4169 = vadd.xlane.f32.xlu0 %v4168_v31 }
 0x87f   : > { %v4108_v36 = vmul.f32 1.442695, %v4065_v41 }
 0x880   : > { %v4106_v54 = vmul.f32 1.442695, %v4064_v19  ;;  %v3999_v9 = vpop.xlane.xlu0 %3998 }
 0x881   : > { %9540 = vpow2.f32 %v4108_v36  ;;  %v4067_v8 = vsub.f32 %v11890_v1, %v3999_v9  ;;  %v3996_v16 = vpop.xlane.xlu1 %3995 }
 0x882   : > { %v4066_v23 = vsub.f32 %v11892_v20, %v3996_v16  ;;  %9542 = vpow2.f32 %v4106_v54 }
 0x883   : > { %v4112_v52 = vmul.f32 1.442695, %v4067_v8 }
 0x884   : > { %v4005_v50 = vpop.xlane.xlu0 %4004  ;;  %v4110_v62 = vmul.f32 1.442695, %v4066_v23 }
 0x885   : > { %9544 = vpow2.f32 %v4112_v52  ;;  %v4069_v40 = vsub.f32 %v11898_v12, %v4005_v50  ;;  %v4002_v39 = vpop.xlane.xlu1 %4001 }
 0x886   : > { %9546 = vpow2.f32 %v4110_v62  ;;  %v4068_v12 = vsub.f32 %v11900_v61, %v4002_v39 }
 0x887   : > { %v11985_v29 = vpop.eup %9536  ;;  %v4116_v33 = vmul.f32 1.442695, %v4069_v40 }
 0x888   : > { %v11987_v26 = vpop.eup %9538  ;;  %v4177_v55 = vsel %vm1960_vm3, %v11985_v29, 0.0  ;;  %v4114_v59 = vmul.f32 1.442695, %v4068_v12 }
 0x889   : > { %4178 = vadd.xlane.f32.xlu0 %v4177_v55  ;;  %v4174_v1 = vsel %vm1960_vm3, %v11987_v26, 0.0  ;;  %9548 = vpow2.f32 %v4116_v33 }
 0x88a   : > { %4175 = vadd.xlane.f32.xlu1 %v4174_v1  ;;  %v11993_v20 = vpop.f32.mrb[80].mxu1  ;;  %9550 = vpow2.f32 %v4114_v59 }
 0x88b   : > { %v11995_v57 = vpop.eup %9540  ;;  %v11998_v56 = vpop.f32.mrb[81].mxu1  ;;  %v4009_v35 = vsel %vm1960_vm3, %v11993_v20, -inf }
 0x88c   : > { %v4183_v30 = vsel %vm1960_vm3, %v11995_v57, 0.0  ;;  %v12002_v38 = vpop.eup %9542  ;;  %v4006_v48 = vsel %vm1960_vm3, %v11998_v56, -inf }
 0x88d   : > { %4184 = vadd.xlane.f32.xlu0 %v4183_v30  ;;  %v4180_v21 = vsel %vm1960_vm3, %v12002_v38, 0.0 }
 0x88e   : > { %v12004_v3 = vpop.f32.mrb[82].mxu1 }
 0x88f   : > { %v12006_v2 = vpop.eup %9544  ;;  %v12008_v58 = vpop.f32.mrb[83].mxu1  ;;  %v4015_v31 = vsel %vm1960_vm3, %v12004_v3, -inf }
 0x890   : > { %v4189_v61 = vsel %vm1960_vm3, %v12006_v2, 0.0  ;;  %v12018_v42 = vpop.eup %9546  ;;  %v4012_v19 = vsel %vm1960_vm3, %v12008_v58, -inf }
 0x891   : > { %4181 = vadd.xlane.f32.xlu0 %v4180_v21  ;;  %4190 = vadd.xlane.f32.xlu1 %v4189_v61  ;;  %v4186_v41 = vsel %vm1960_vm3, %v12018_v42, 0.0 }
 0x892   : > { %v12014_v4 = vpop.f32.mrb[84].mxu1 }
 0x893   : > { %v12016_v46 = vpop.f32.mrb[85].mxu1  ;;  %v12024_v6 = vpop.eup %9548  ;;  %v4021_v8 = vsel %vm1960_vm3, %v12014_v4, -inf }
 0x894   : > { %v4195_v25 = vsel %vm1960_vm3, %v12024_v6, 0.0  ;;  %v12038_v36 = vpop.eup %9550  ;;  %v4018_v9 = vsel %vm1960_vm3, %v12016_v46, -inf }
 0x895   : > { %4010 = vmax.xlane.f32.xlu0 %v4009_v35  ;;  %4007 = vmax.xlane.f32.xlu1 %v4006_v48  ;;  %v4192_v54 = vsel %vm1960_vm3, %v12038_v36, 0.0 }
 0x896   : > { %v12026_v10 = vpop.f32.mrb[86].mxu1 }
 0x897   : > { %v12028_v47 = vpop.f32.mrb[87].mxu1  ;;  %v4027_v23 = vsel %vm1960_vm3, %v12026_v10, -inf }
 0x898   : > { %v4024_v16 = vsel %vm1960_vm3, %v12028_v47, -inf  ;;  %v4035_v52 = vpop.xlane.xlu0 %4034 }
 0x899   : > { %4187 = vadd.xlane.f32.xlu0 %v4186_v41  ;;  %4196 = vadd.xlane.f32.xlu1 %v4195_v25  ;;  %v4032_v50 = vpop.xlane.xlu1 %4031  ;;  %v4079_v62 = vsub.f32 %v11906_v28, %v4035_v52 }
 0x89a   : > { %v4078_v39 = vsub.f32 %v11908_v11, %v4032_v50 }
 0x89b   : > { %v4136_v1 = vmul.f32 1.442695, %v4079_v62 }
 0x89c   : > { %v4041_v40 = vpop.xlane.xlu0 %4040  ;;  %v4134_v30 = vmul.f32 1.442695, %v4078_v39 }
 0x89d   : > { %4016 = vmax.xlane.f32.xlu0 %v4015_v31  ;;  %4013 = vmax.xlane.f32.xlu1 %v4012_v19  ;;  %v4038_v33 = vpop.xlane.xlu1 %4037  ;;  %v4081_v12 = vsub.f32 %v11914_v53, %v4041_v40  ;;  %9552 = vpow2.f32 %v4136_v1 }
 0x89e   : > { %v4080_v59 = vsub.f32 %v11916_v7, %v4038_v33  ;;  %9554 = vpow2.f32 %v4134_v30 }
 0x8a0   : > { %v4047_v55 = vpop.xlane.xlu0 %4046 }
 0x8a1   : > { %4193 = vadd.xlane.f32.xlu0 %v4192_v54  ;;  %4019 = vmax.xlane.f32.xlu1 %v4018_v9  ;;  %v4044_v21 = vpop.xlane.xlu1 %4043  ;;  %v4083_v61 = vsub.f32 %v11922_v14, %v4047_v55 }
 0x8a2   : > { %v4082_v28 = vsub.f32 %v11924_v13, %v4044_v21 }
 0x8a3   : > { %v4144_v48 = vmul.f32 1.442695, %v4083_v61  ;;  %v9256_v61 = vunpack.i.l.bf16 %v11769_v18 }
 0x8a4   : > { %v4053_v35 = vpop.xlane.xlu0 %4052  ;;  %v4142_v53 = vmul.f32 1.442695, %v4082_v28 }
 0x8a5   : > { %4022 = vmax.xlane.f32.xlu0 %v4021_v8  ;;  %4025 = vmax.xlane.f32.xlu1 %v4024_v16  ;;  %v4085_v11 = vsub.f32 %v11930_v49, %v4053_v35  ;;  %v4050_v41 = vpop.xlane.xlu1 %4049 }
 0x8a6   : > { %v4084_v7 = vsub.f32 %v11932_v34, %v4050_v41  ;;  %v9261_v41 = vunpack.i.l.bf16 %v11716_v37 }
 0x8a7   : > { %v4148_v25 = vmul.f32 1.442695, %v4085_v11  ;;  %v12062_v31 = vpop.eup %9552  ;;  %v9262_v11 = vunpack.i.h.bf16 %v11716_v37 }
 0x8a8   : > { %v4146_v14 = vmul.f32 1.442695, %v4084_v7  ;;  %v12064_v19 = vpop.eup %9554  ;;  %v4225_v13 = vsel %vm1960_vm3, %v12062_v31, 0.0 }
 0x8a9   : > { %4028 = vmax.xlane.f32.xlu0 %v4027_v23  ;;  %v4222_v9 = vsel %vm1960_vm3, %v12064_v19, 0.0 }
 0x8b6   : > { %9294 = vrot.lane.b32.xlu1 %v10839_v45, %s9943_s17  ;;  %v4140_v45 = vmul.f32 1.442695, %v4081_v12 }
 0x8b8   : > { %9556 = vpow2.f32 %v4140_v45  ;;  %v9257_v45 = vunpack.i.h.bf16 %v11769_v18 }
 0x8bf   : > { %9289 = vrot.lane.b32.xlu0 %v10823_v51, %s9943_s17  ;;  %v4138_v51 = vmul.f32 1.442695, %v4080_v59 }
 0x8c1   : > { %9558 = vpow2.f32 %v4138_v51 }
 0x8c2   : > { %9560 = vpow2.f32 %v4144_v48  ;;  %v12068_v54 = vpop.eup %9556 }
 0x8c3   : > { %9562 = vpow2.f32 %v4142_v53  ;;  %v4231_v34 = vsel %vm1960_vm3, %v12068_v54, 0.0  ;;  %v8775_v53 = vpack.c.bf16 %v9257_v45, %v9256_v61 }
 0x8c4   : > { %9564 = vpow2.f32 %v4148_v25 }
 0x8c5   : > { %9566 = vpow2.f32 %v4146_v14  ;;  %v8779_v14 = vpack.c.bf16 %v9262_v11, %v9261_v41 }
 0x8cb   : > { %v12070_v49 = vpop.eup %9558 }
 0x8cc   : > { %v12076_v8 = vpop.eup %9560  ;;  %v4228_v23 = vsel %vm1960_vm3, %v12070_v49, 0.0 }
 0x8cd   : > { %v12078_v16 = vpop.eup %9562  ;;  %v4237_v52 = vsel %vm1960_vm3, %v12076_v8, 0.0 }
 0x8ce   : > { %v12084_v50 = vpop.eup %9564  ;;  %v4234_v40 = vsel %vm1960_vm3, %v12078_v16, 0.0 }
 0x8cf   : > { %v4243_v62 = vsel %vm1960_vm3, %v12084_v50, 0.0  ;;  %v12090_v33 = vpop.eup %9566 }
 0x8d0   : > { %v4240_v39 = vsel %vm1960_vm3, %v12090_v33, 0.0 }
 0x8da   : > { %4226 = vadd.xlane.f32.xlu1 %v4225_v13 }
 0x8de   : > { %4223 = vadd.xlane.f32.xlu0 %v4222_v9  ;;  %4232 = vadd.xlane.f32.xlu1 %v4231_v34 }
 0x8e2   : > { %4229 = vadd.xlane.f32.xlu0 %v4228_v23  ;;  %4238 = vadd.xlane.f32.xlu1 %v4237_v52 }
 0x8e6   : > { %4235 = vadd.xlane.f32.xlu0 %v4234_v40  ;;  %4244 = vadd.xlane.f32.xlu1 %v4243_v62 }
 0x8ea   : > { %4241 = vadd.xlane.f32.xlu0 %v4240_v39 }
 0x8f6   : > { %v4155_v55 = vpop.xlane.xlu0 %4154 }
 0x8f7   : > { %9568 = vrcp.f32 %v4155_v55  ;;  %v4152_v1 = vpop.xlane.xlu1 %4151 }
 0x8f8   : > { %9570 = vrcp.f32 %v4152_v1 }
 0x8fb   : > { %v4161_v12 = vpop.xlane.xlu0 %4160 }
 0x8fc   : > { %9572 = vrcp.f32 %v4161_v12 }
 0x8ff   : > { %v4158_v30 = vpop.xlane.xlu1 %4157 }
 0x900   : > { %9574 = vrcp.f32 %v4158_v30 }
 0x901   : > { %v9569_v59 = vpop.eup %9568 }
 0x902   : > { %v9571_v21 = vpop.eup %9570  ;;  %v4279_v48 = vmul.f32 %v9569_v59, %v11944_v32  ;;  %v9266_v32 = vunpack.i.l.bf16 %v11776_v43 }
 0x903   : > { %v4167_v35 = vpop.xlane.xlu0 %4166  ;;  %v4164_v51 = vpop.xlane.xlu1 %4163  ;;  %v4278_v28 = vmul.f32 %v9571_v21, %v11946_v22  ;;  %v9267_v22 = vunpack.i.h.bf16 %v11776_v43 }
 0x904   : > { %9576 = vrcp.f32 %v4167_v35 }
 0x905   : > { %9578 = vrcp.f32 %v4164_v51  ;;  %8227 = vmatprep.mubr.msk.f32.mxu1 %vm1960_vm3, %v4278_v28  ;;  %v8783_v34 = vpack.c.bf16 %v9267_v22, %v9266_v32 }
 0x906   : > { %8228 = vmatmul.mubr.msk.f32.vlgmr.msra.gmra.mrb[88].mxu1 %vm1960_vm3, %v4279_v48  ;;  %v9573_v25 = vpop.eup %9572 }
 0x907   : > { %8774 = vmatpush3.bf16.msra.mxu1 %v11839_v44  ;;  %v4173_v18 = vpop.xlane.xlu0 %4172  ;;  %v4281_v37 = vmul.f32 %v9573_v25, %v11954_v63 }
 0x908   : > { %8776 = vmatprep.subr.bf16.mxu1 %v8775_v53  ;;  %9580 = vrcp.f32 %v4173_v18 }
 0x90a   : > { %v9575_v7 = vpop.eup %9574 }
 0x90b   : > { %8778 = vmatpush3.bf16.msra.mxu1 %v8775_v53  ;;  %v4170_v13 = vpop.xlane.xlu0 %4169  ;;  %v4280_v9 = vmul.f32 %v9575_v7, %v11958_v24 }
 0x90c   : > { %9582 = vrcp.f32 %v4170_v13  ;;  %8780 = vmatprep.subr.bf16.mxu1 %v8779_v14 }
 0x90d   : > { %8230 = vmatprep.mubr.msk.f32.mxu1 %vm1960_vm3, %v4280_v9 }
 0x90e   : > { %v9577_v44 = vpop.eup %9576  ;;  %8231 = vmatmul.mubr.msk.f32.gmra.mrb[90].mxu1 %vm1960_vm3, %v4281_v37 }
 0x90f   : > { %v9579_v23 = vpop.eup %9578  ;;  %8782 = vmatpush3.bf16.msra.mxu1 %v8779_v14  ;;  %v4283_v43 = vmul.f32 %v9577_v44, %v11964_v17 }
 0x910   : > { %8784 = vmatprep.subr.bf16.mxu1 %v8783_v34  ;;  %v4282_v52 = vmul.f32 %v9579_v23, %v11962_v0 }
 0x912   : > { %8233 = vmatprep.mubr.msk.f32.mxu1 %vm1960_vm3, %v4282_v52  ;;  %v9581_v24 = vpop.eup %9580 }
 0x913   : > { %8234 = vmatmul.mubr.msk.f32.gmra.mrb[92].mxu1 %vm1960_vm3, %v4283_v43  ;;  %v4285_v55 = vmul.f32 %v9581_v24, %v11970_v5 }
 0x914   : > { %8786 = vmatpush3.bf16.msra.mxu1 %v8783_v34 }
 0x916   : > { %v9583_v63 = vpop.eup %9582  ;;  %v4179_v40 = vpop.xlane.xlu0 %4178 }
 0x917   : > { %9584 = vrcp.f32 %v4179_v40  ;;  %v4176_v62 = vpop.xlane.xlu1 %4175  ;;  %v4284_v39 = vmul.f32 %v9583_v63, %v11975_v15 }
 0x918   : > { %9586 = vrcp.f32 %v4176_v62 }
 0x919   : > { %8236 = vmatprep.mubr.msk.f32.mxu1 %vm1960_vm3, %v4284_v39 }
 0x91a   : > { %v4185_v17 = vpop.xlane.xlu0 %4184  ;;  %8237 = vmatmul.mubr.msk.f32.gmra.mrb[94].mxu1 %vm1960_vm3, %v4285_v55 }
 0x91b   : > { %9588 = vrcp.f32 %v4185_v17 }
 0x91e   : > { %v4182_v0 = vpop.xlane.xlu0 %4181  ;;  %v4191_v1 = vpop.xlane.xlu1 %4190 }
 0x91f   : > { %9590 = vrcp.f32 %v4182_v0 }
 0x920   : > { %9592 = vrcp.f32 %v4191_v1 }
 0x921   : > { %v9585_v12 = vpop.eup %9584 }
 0x922   : > { %v9587_v30 = vpop.eup %9586  ;;  %v4011_v59 = vpop.xlane.xlu0 %4010  ;;  %v4287_v5 = vmul.f32 %v9585_v12, %v11985_v29 }
 0x923   : > { %v4008_v21 = vpop.xlane.xlu1 %4007  ;;  %v4071_v45 = vsub.f32 %v11993_v20, %v4011_v59  ;;  %v4286_v61 = vmul.f32 %v9587_v30, %v11987_v26 }
 0x924   : > { %v4070_v15 = vsub.f32 %v11998_v56, %v4008_v21 }
 0x925   : > { %v4120_v35 = vmul.f32 1.442695, %v4071_v45  ;;  %8255 = vmatprep.mubr.msk.f32.mxu1 %vm1960_vm3, %v4286_v61  ;;  %v9589_v11 = vpop.eup %9588 }
 0x926   : > { %v4118_v51 = vmul.f32 1.442695, %v4070_v15  ;;  %8256 = vmatmul.mubr.msk.f32.vlgmr.msra.gmra.mrb[96].mxu1 %vm1960_vm3, %v4287_v5  ;;  %v4188_v28 = vpop.xlane.xlu0 %4187  ;;  %v4289_v18 = vmul.f32 %v9589_v11, %v11995_v57 }
 0x927   : > { %v4197_v48 = vpop.xlane.xlu1 %4196  ;;  %9594 = vpow2.f32 %v4120_v35 }
 0x928   : > { %9596 = vpow2.f32 %v4118_v51 }
 0x929   : > { %v9591_v41 = vpop.eup %9590  ;;  %9598 = vrcp.f32 %v4188_v28 }
 0x92a   : > { %v4017_v20 = vpop.xlane.xlu0 %4016  ;;  %v4288_v26 = vmul.f32 %v9591_v41, %v12002_v38  ;;  %9600 = vrcp.f32 %v4197_v48  ;;  %v9593_v13 = vpop.eup %9592 }
 0x92b   : > { %v4014_v56 = vpop.xlane.xlu1 %4013  ;;  %v4073_v29 = vsub.f32 %v12004_v3, %v4017_v20  ;;  %v4291_v63 = vmul.f32 %v9593_v13, %v12006_v2 }
 0x92c   : > { %v4072_v53 = vsub.f32 %v12008_v58, %v4014_v56  ;;  %8258 = vmatprep.mubr.msk.f32.mxu1 %vm1960_vm3, %v4288_v26 }
 0x92d   : > { %v4124_v25 = vmul.f32 1.442695, %v4073_v29  ;;  %8259 = vmatmul.mubr.msk.f32.gmra.mrb[98].mxu1 %vm1960_vm3, %v4289_v18 }
 0x92e   : > { %v4122_v7 = vmul.f32 1.442695, %v4072_v53  ;;  %v4194_v22 = vpop.xlane.xlu0 %4193 }
 0x92f   : > { %v4020_v32 = vpop.xlane.xlu1 %4019  ;;  %9602 = vpow2.f32 %v4124_v25 }
 0x930   : > { %v4074_v14 = vsub.f32 %v12016_v46, %v4020_v32  ;;  %9604 = vpow2.f32 %v4122_v7 }
 0x931   : > { %v12130_v38 = vpop.eup %9594  ;;  %9606 = vrcp.f32 %v4194_v22 }
 0x932   : > { %v4126_v3 = vmul.f32 1.442695, %v4074_v14  ;;  %v12132_v58 = vpop.eup %9596  ;;  %v4023_v57 = vpop.xlane.xlu0 %4022  ;;  %v4201_v37 = vsel %vm1960_vm3, %v12130_v38, 0.0 }
 0x933   : > { %v4026_v9 = vpop.xlane.xlu1 %4025  ;;  %v9599_v44 = vpop.eup %9598  ;;  %v4075_v34 = vsub.f32 %v12014_v4, %v4023_v57  ;;  %v4198_v46 = vsel %vm1960_vm3, %v12132_v58, 0.0  ;;  %4202 = vadd.xlane.f32.xlu1 %v4201_v37 }
 0x934   : > { %9608 = vpow2.f32 %v4126_v3  ;;  %v4076_v23 = vsub.f32 %v12028_v47, %v4026_v9  ;;  %4199 = vadd.xlane.f32.xlu0 %v4198_v46  ;;  %v4290_v43 = vmul.f32 %v9599_v44, %v12018_v42  ;;  %v9601_v62 = vpop.eup %9600 }
 0x935   : > { %v4128_v52 = vmul.f32 1.442695, %v4075_v34  ;;  %v4293_v61 = vmul.f32 %v9601_v62, %v12024_v6 }
 0x936   : > { %v4130_v24 = vmul.f32 1.442695, %v4076_v23  ;;  %8261 = vmatprep.mubr.msk.f32.mxu1 %vm1960_vm3, %v4290_v43  ;;  %v4029_v40 = vpop.xlane.xlu0 %4028 }
 0x937   : > { %9610 = vpow2.f32 %v4128_v52  ;;  %8262 = vmatmul.mubr.msk.f32.gmra.mrb[100].mxu1 %vm1960_vm3, %v4291_v63  ;;  %v4077_v4 = vsub.f32 %v12026_v10, %v4029_v40  ;;  %v9295_v47 = vpop.permute.xlu1 %9294 }
 0x938   : > { %9612 = vpow2.f32 %v4130_v24  ;;  %v9297_v42 = vunpack.i.h.bf16 %v9295_v47  ;;  %v9296_v0 = vunpack.i.l.bf16 %v9295_v47 }
 0x939   : > { %v12145_v39 = vpop.eup %9602  ;;  %v4132_v55 = vmul.f32 1.442695, %v4077_v4 }
 0x93a   : > { %v12147_v17 = vpop.eup %9604  ;;  %v9290_v1 = vpop.permute.xlu0 %9289  ;;  %v4207_v2 = vsel %vm1960_vm3, %v12145_v39, 0.0  ;;  %v8807_v35 = vpack.c.bf16 %v9297_v42, %v9296_v0  ;;  %v12188_v42 = vld [vmem:[#allocation7 + $0x10] sm:$0xff]  ;;  %v12190_v0 = vld [vmem:[#allocation7 + $0x18] sm:$0xff] }
 0x93b   : > { %v9607_v12 = vpop.eup %9606  ;;  %9614 = vpow2.f32 %v4132_v55  ;;  %v9292_v30 = vunpack.i.h.bf16 %v9290_v1  ;;  %v9291_v59 = vunpack.i.l.bf16 %v9290_v1  ;;  %v4204_v10 = vsel %vm1960_vm3, %v12147_v17, 0.0  ;;  %4208 = vadd.xlane.f32.xlu1 %v4207_v2 }
 0x93c   : > { %4205 = vadd.xlane.f32.xlu0 %v4204_v10  ;;  %v4292_v21 = vmul.f32 %v9607_v12, %v12038_v36 }
 0x93d   : > { %v8803_v15 = vpack.c.bf16 %v9292_v30, %v9291_v59  ;;  %v8819_v59 = vpack.c.bf16 %v12190_v0, %v12188_v42 }
 0x93e   : > { %v12154_v45 = vpop.eup %9608  ;;  %8264 = vmatprep.mubr.msk.f32.mxu1 %vm1960_vm3, %v4292_v21 }
 0x93f   : > { %v4210_v5 = vsel %vm1960_vm3, %v12154_v45, 0.0  ;;  %8265 = vmatmul.mubr.msk.f32.gmra.mrb[102].mxu1 %vm1960_vm3, %v4293_v61  ;;  %8804 = vmatprep.subr.bf16.mxu1 %v8803_v15 }
 0x940   : > { %4211 = vadd.xlane.f32.xlu0 %v4210_v5  ;;  %8806 = vmatpush3.bf16.msra.mxu1 %v8803_v15 }
 0x941   : > { %v12161_v51 = vpop.eup %9610  ;;  %8808 = vmatprep.subr.bf16.mxu1 %v8807_v35 }
 0x942   : > { %v12163_v36 = vpop.eup %9612  ;;  %v4213_v28 = vsel %vm1960_vm3, %v12161_v51, 0.0 }
 0x943   : > { %4214 = vadd.xlane.f32.xlu1 %v4213_v28  ;;  %v4216_v6 = vsel %vm1960_vm3, %v12163_v36, 0.0 }
 0x944   : > { %4217 = vadd.xlane.f32.xlu0 %v4216_v6  ;;  %8810 = vmatpush3.bf16.msra.mxu1 %v8807_v35 }
 0x945   : > { %v12169_v48 = vpop.eup %9614 }
 0x946   : > { %v4219_v11 = vsel %vm1960_vm3, %v12169_v48, 0.0 }
 0x947   : > { %4220 = vadd.xlane.f32.xlu1 %v4219_v11 }
 0x958   : > { %9304 = vrot.lane.b32.xlu1 %v10895_v27, %s9943_s17 }
 0x95a   : > { %9299 = vrot.lane.b32.xlu0 %v10861_v60, %s9943_s17 }
 0x967   : > { %v4227_v26 = vpop.xlane.xlu1 %4226 }
 0x96b   : > { %v4224_v41 = vpop.xlane.xlu0 %4223  ;;  %v4233_v29 = vpop.xlane.xlu1 %4232 }
 0x96c   : > { %9616 = vrcp.f32 %v4224_v41 }
 0x96f   : > { %v4230_v53 = vpop.xlane.xlu0 %4229  ;;  %v4239_v18 = vpop.xlane.xlu1 %4238 }
 0x973   : > { %v4236_v25 = vpop.xlane.xlu0 %4235  ;;  %v4245_v7 = vpop.xlane.xlu1 %4244 }
 0x976   : > { %v9617_v20 = vpop.eup %9616 }
 0x977   : > { %v4302_v56 = vmul.f32 %v9617_v20, %v12064_v19  ;;  %v4242_v22 = vpop.xlane.xlu0 %4241 }
 0x979   : > { %8311 = vmatprep.mubr.msk.f32.mxu1 %vm1960_vm3, %v4302_v56 }
 0x9c0   : > { %v4203_v32 = vpop.xlane.xlu1 %4202 }
 0x9c1   : > { %v4200_v14 = vpop.xlane.xlu0 %4199  ;;  %9618 = vrcp.f32 %v4203_v32 }
 0x9c2   : > { %9620 = vrcp.f32 %v4200_v14 }
 0x9c8   : > { %v4209_v27 = vpop.xlane.xlu1 %4208 }
 0x9c9   : > { %v4206_v60 = vpop.xlane.xlu0 %4205  ;;  %9622 = vrcp.f32 %v4209_v27 }
 0x9ca   : > { %9624 = vrcp.f32 %v4206_v60 }
 0x9cb   : > { %v9619_v13 = vpop.eup %9618 }
 0x9cc   : > { %v9621_v3 = vpop.eup %9620  ;;  %v4295_v19 = vmul.f32 %v9619_v13, %v12130_v38 }
 0x9cd   : > { %v4212_v57 = vpop.xlane.xlu0 %4211  ;;  %v4294_v9 = vmul.f32 %v9621_v3, %v12132_v58 }
 0x9ce   : > { %9626 = vrcp.f32 %v4212_v57 }
 0x9cf   : > { %8283 = vmatprep.mubr.msk.f32.mxu0 %vm1960_vm3, %v4294_v9 }
 0x9d0   : > { %8284 = vmatmul.mubr.msk.f32.vlgmr.msra.gmra.mrb[72].mxu0 %vm1960_vm3, %v4295_v19  ;;  %v4215_v37 = vpop.xlane.xlu1 %4214 }
 0x9d1   : > { %v4218_v44 = vpop.xlane.xlu0 %4217  ;;  %9628 = vrcp.f32 %v4215_v37 }
 0x9d2   : > { %9630 = vrcp.f32 %v4218_v44 }
 0x9d3   : > { %v9623_v34 = vpop.eup %9622  ;;  %9632 = vrcp.f32 %v4227_v26 }
 0x9d4   : > { %v9625_v23 = vpop.eup %9624  ;;  %9634 = vrcp.f32 %v4230_v53  ;;  %v4221_v46 = vpop.xlane.xlu1 %4220  ;;  %v4297_v43 = vmul.f32 %v9623_v34, %v12145_v39 }
 0x9d5   : > { %v9300_v38 = vpop.permute.xlu0 %9299  ;;  %9636 = vrcp.f32 %v4221_v46  ;;  %v4296_v58 = vmul.f32 %v9625_v23, %v12147_v17 }
 0x9d6   : > { %v9302_v52 = vunpack.i.h.bf16 %v9300_v38  ;;  %v9301_v24 = vunpack.i.l.bf16 %v9300_v38  ;;  %9638 = vrcp.f32 %v4233_v29 }
 0x9d7   : > { %8286 = vmatprep.mubr.msk.f32.mxu0 %vm1960_vm3, %v4296_v58  ;;  %9640 = vrcp.f32 %v4236_v25 }
 0x9d8   : > { %v9627_v63 = vpop.eup %9626  ;;  %v8811_v40 = vpack.c.bf16 %v9302_v52, %v9301_v24  ;;  %8287 = vmatmul.mubr.msk.f32.gmra.mrb[74].mxu0 %vm1960_vm3, %v4297_v43  ;;  %v9305_v4 = vpop.permute.xlu1 %9304  ;;  %9642 = vrcp.f32 %v4239_v18  ;;  %v12247_v52 = vld [vmem:[%s13073_s4 + $0x4] ss:$0 sm:$0xff] }
 0x9d9   : > { %v9307_v47 = vunpack.i.h.bf16 %v9305_v4  ;;  %v9306_v62 = vunpack.i.l.bf16 %v9305_v4  ;;  %v8229_v55 = vpop.f32.mrb[88].mxu1  ;;  %v4298_v39 = vmul.f32 %v9627_v63, %v12154_v45  ;;  %9644 = vrcp.f32 %v4242_v22 }
 0x9da   : > { %8812 = vmatprep.subr.bf16.mxu1 %v8811_v40  ;;  %v4424_v17 = vpop.f32.mrb[89].mxu1  ;;  %9646 = vrcp.f32 %v4245_v7 }
 0x9db   : > { %v9629_v1 = vpop.eup %9628  ;;  %v8815_v2 = vpack.c.bf16 %v9307_v47, %v9306_v62  ;;  %8289 = vmatprep.mubr.msk.f32.mxu0 %vm1960_vm3, %v4298_v39  ;;  %8814 = vmatpush3.bf16.msra.mxu1 %v8811_v40  ;;  %v13292_v47 = vld [vmem:[#allocation13_spill] sm:$0xff] }
 0x9dc   : > { %v9631_v12 = vpop.eup %9630  ;;  %v4299_v30 = vmul.f32 %v9629_v1, %v12161_v51 }
 0x9dd   : > { %v9633_v10 = vpop.eup %9632  ;;  %8816 = vmatprep.subr.bf16.mxu1 %v8815_v2  ;;  %v4300_v21 = vmul.f32 %v9631_v12, %v12163_v36 }
 0x9de   : > { %v9635_v45 = vpop.eup %9634  ;;  %8290 = vmatmul.mubr.msk.f32.gmra.mrb[76].mxu0 %vm1960_vm3, %v4299_v30  ;;  %v4303_v61 = vmul.f32 %v9633_v10, %v12062_v31  ;;  %v13294_v10 = vld [vmem:[#allocation15_spill] sm:$0xff] }
 0x9df   : > { %v9637_v15 = vpop.eup %9636  ;;  %8818 = vmatpush3.bf16.msra.mxu1 %v8815_v2  ;;  %8292 = vmatprep.mubr.msk.f32.mxu0 %vm1960_vm3, %v4300_v21  ;;  %v4304_v28 = vmul.f32 %v9635_v45, %v12070_v49 }
 0x9e0   : > { %v4301_v5 = vmul.f32 %v9637_v15, %v12169_v48  ;;  %8820 = vmatprep.subr.bf16.mxu1 %v8819_v59  ;;  %v9639_v35 = vpop.eup %9638 }
 0x9e1   : > { %v8232_v51 = vpop.f32.mrb[90].mxu1  ;;  %v9641_v6 = vpop.eup %9640  ;;  %v4305_v11 = vmul.f32 %v9639_v35, %v12068_v54  ;;  %v13296_v35 = vld [vmem:[#allocation14_spill] sm:$0xff] }
 0x9e2   : > { %8312 = vmatmul.mubr.msk.f32.vlgmr.msra.gmra.mrb[104].mxu1 %vm1960_vm3, %v4303_v61  ;;  %v4434_v36 = vpop.f32.mrb[91].mxu1  ;;  %8293 = vmatmul.mubr.msk.f32.gmra.mrb[78].mxu0 %vm1960_vm3, %v4301_v5  ;;  %v9643_v41 = vpop.eup %9642  ;;  %v4306_v31 = vmul.f32 %v9641_v6, %v12078_v16  ;;  %v13298_v6 = vld [vmem:[#allocation17_spill] sm:$0xff] }
 0x9e3   : > { %8314 = vmatprep.mubr.msk.f32.mxu1 %vm1960_vm3, %v4304_v28  ;;  %8822 = vmatpush3.bf16.msra.mxu1 %v8819_v59  ;;  %v9645_v48 = vpop.eup %9644  ;;  %v4307_v49 = vmul.f32 %v9643_v41, %v12076_v8 }
 0x9e4   : > { %v9647_v26 = vpop.eup %9646  ;;  %v4308_v29 = vmul.f32 %v9645_v48, %v12090_v33 }
 0x9e5   : > { %v4309_v54 = vmul.f32 %v9647_v26, %v12084_v50 }
 0x9e6   : > { %v8235_v20 = vpop.f32.mrb[92].mxu1  ;;  %8315 = vmatmul.mubr.msk.f32.gmra.mrb[106].mxu1 %vm1960_vm3, %v4305_v11 }
 0x9e7   : > { %v4444_v56 = vpop.f32.mrb[93].mxu1  ;;  %8317 = vmatprep.mubr.msk.f32.mxu1 %vm1960_vm3, %v4306_v31 }
 0x9ea   : > { %8318 = vmatmul.mubr.msk.f32.gmra.mrb[108].mxu1 %vm1960_vm3, %v4307_v49 }
 0x9eb   : > { %8320 = vmatprep.mubr.msk.f32.mxu1 %vm1960_vm3, %v4308_v29  ;;  %v13302_v29 = vld [vmem:[#allocation19_spill] sm:$0xff] }
 0x9ed   : > { %v8238_v53 = vpop.f32.mrb[94].mxu1 }
 0x9ee   : > { %8321 = vmatmul.mubr.msk.f32.gmra.mrb[110].mxu1 %vm1960_vm3, %v4309_v54  ;;  %v4454_v16 = vpop.f32.mrb[95].mxu1 }
 0x9ef   : > { %8327 = vmatprep.mubr.msk.f32.mxu1 %vm1307_vm1, %v4424_v17 }
 0x9f2   : > { %8328 = vmatmul.mubr.msk.f32.vlgmr.msra.gmra.mrb[48].mxu1 %vm1307_vm1, %v8229_v55  ;;  %v13293_v55 = vld [vmem:[#allocation12_spill] sm:$0xff] }
 0x9f3   : > { %8330 = vmatprep.mubr.msk.f32.mxu1 %vm1307_vm1, %v4434_v36 }
 0x9f6   : > { %8331 = vmatmul.mubr.msk.f32.gmra.mrb[50].mxu1 %vm1307_vm1, %v8232_v51 }
 0x9f7   : > { %8333 = vmatprep.mubr.msk.f32.mxu1 %vm1307_vm1, %v4444_v56 }
 0x9f9   : > { %v8257_v8 = vpop.f32.mrb[96].mxu1 }
 0x9fa   : > { %8334 = vmatmul.mubr.msk.f32.gmra.mrb[52].mxu1 %vm1307_vm1, %v8235_v20  ;;  %v4577_v33 = vpop.f32.mrb[97].mxu1  ;;  %v13300_v20 = vld [vmem:[#allocation16_spill] sm:$0xff] }
 0x9fb   : > { %8336 = vmatprep.mubr.msk.f32.mxu1 %vm1307_vm1, %v4454_v16 }
 0x9fe   : > { %8337 = vmatmul.mubr.msk.f32.gmra.mrb[54].mxu1 %vm1307_vm1, %v8238_v53 }
 0x9ff   : > { %8339 = vmatprep.mubr.msk.f32.mxu1 %vm1307_vm1, %v4577_v33 }
 0xa00   : > { %v8260_v50 = vpop.f32.mrb[98].mxu1 }
 0xa01   : > { %v4587_v18 = vpop.f32.mrb[99].mxu1 }
 0xa02   : > { %8340 = vmatmul.mubr.msk.f32.gmra.mrb[56].mxu1 %vm1307_vm1, %v8257_v8 }
 0xa03   : > { %8342 = vmatprep.mubr.msk.f32.mxu1 %vm1307_vm1, %v4587_v18 }
 0xa06   : > { %8343 = vmatmul.mubr.msk.f32.gmra.mrb[58].mxu1 %vm1307_vm1, %v8260_v50  ;;  %v13304_v50 = vld [vmem:[#allocation18_spill] sm:$0xff] }
 0xa0a   : > { %v8263_v25 = vpop.f32.mrb[100].mxu1 }
 0xa0b   : > { %v4597_v7 = vpop.f32.mrb[101].mxu1 }
 0xa0c   : > { %8345 = vmatprep.mubr.msk.f32.mxu1 %vm1307_vm1, %v4597_v7 }
 0xa0d   : > { %8346 = vmatmul.mubr.msk.f32.gmra.mrb[60].mxu1 %vm1307_vm1, %v8263_v25 }
 0xa12   : > { %v8266_v22 = vpop.f32.mrb[102].mxu1 }
 0xa13   : > { %v4607_v32 = vpop.f32.mrb[103].mxu1 }
 0xa14   : > { %8348 = vmatprep.mubr.msk.f32.mxu1 %vm1307_vm1, %v4607_v32 }
 0xa15   : > { %8349 = vmatmul.mubr.msk.f32.gmra.mrb[62].mxu1 %vm1307_vm1, %v8266_v22  ;;  %v13306_v22 = vld [vmem:[#allocation21_spill] sm:$0xff] }
 0xaa3   : > { %v8285_v14 = vpop.f32.mrb[72].mxu0 }
 0xaa4   : > { %v4730_v27 = vpop.f32.mrb[73].mxu0 }
 0xaa5   : > { %8351 = vmatprep.mubr.msk.f32.mxu1 %vm1307_vm1, %v4730_v27 }
 0xaa6   : > { %8352 = vmatmul.mubr.msk.f32.gmra.mrb[64].mxu1 %vm1307_vm1, %v8285_v14 }
 0xaab   : > { %v8288_v60 = vpop.f32.mrb[74].mxu0 }
 0xaac   : > { %v4740_v13 = vpop.f32.mrb[75].mxu0 }
 0xaad   : > { %8354 = vmatprep.mubr.msk.f32.mxu1 %vm1307_vm1, %v4740_v13 }
 0xaae   : > { %8355 = vmatmul.mubr.msk.f32.gmra.mrb[66].mxu1 %vm1307_vm1, %v8288_v60 }
 0xab1   : > { %v8291_v3 = vpop.f32.mrb[76].mxu0 }
 0xab2   : > { %v4750_v19 = vpop.f32.mrb[77].mxu0 }
 0xab3   : > { %8357 = vmatprep.mubr.msk.f32.mxu1 %vm1307_vm1, %v4750_v19 }
 0xab4   : > { %8358 = vmatmul.mubr.msk.f32.gmra.mrb[68].mxu1 %vm1307_vm1, %v8291_v3  ;;  %v13308_v3 = vld [vmem:[#allocation20_spill] sm:$0xff] }
 0xab5   : > { %v8313_v57 = vpop.f32.mrb[104].mxu1  ;;  %v8294_v9 = vpop.f32.mrb[78].mxu0 }
 0xab6   : > { %v4883_v37 = vpop.f32.mrb[105].mxu1  ;;  %v4760_v44 = vpop.f32.mrb[79].mxu0 }
 0xab7   : > { %8360 = vmatprep.mubr.msk.f32.mxu1 %vm1307_vm1, %v4760_v44 }
 0xab8   : > { %8361 = vmatmul.mubr.msk.f32.gmra.mrb[70].mxu1 %vm1307_vm1, %v8294_v9 }
 0xab9   : > { %v8316_v34 = vpop.f32.mrb[106].mxu1  ;;  %8363 = vmatprep.mubr.msk.f32.mxu1 %vm1307_vm1, %v4883_v37  ;;  %v13310_v37 = vld [vmem:[#allocation23_spill] sm:$0xff] }
 0xaba   : > { %v4893_v23 = vpop.f32.mrb[107].mxu1 }
 0xabc   : > { %8364 = vmatmul.mubr.msk.f32.gmra.mrb[72].mxu1 %vm1307_vm1, %v8313_v57 }
 0xabd   : > { %v8319_v46 = vpop.f32.mrb[108].mxu1  ;;  %8366 = vmatprep.mubr.msk.f32.mxu1 %vm1307_vm1, %v4893_v23  ;;  %v13312_v23 = vld [vmem:[#allocation22_spill] sm:$0xff] }
 0xabe   : > { %v4903_v43 = vpop.f32.mrb[109].mxu1 }
 0xac0   : > { %8367 = vmatmul.mubr.msk.f32.gmra.mrb[74].mxu1 %vm1307_vm1, %v8316_v34 }
 0xac1   : > { %v8322_v38 = vpop.f32.mrb[110].mxu1  ;;  %8369 = vmatprep.mubr.msk.f32.mxu1 %vm1307_vm1, %v4903_v43 }
 0xac2   : > { %v4913_v58 = vpop.f32.mrb[111].mxu1 }
 0xac4   : > { %8370 = vmatmul.mubr.msk.f32.gmra.mrb[76].mxu1 %vm1307_vm1, %v8319_v46 }
 0xac5   : > { %v8329_v24 = vpop.f32.mrb[48].mxu1  ;;  %8372 = vmatprep.mubr.msk.f32.mxu1 %vm1307_vm1, %v4913_v58 }
 0xac6   : > { %v8847_v63 = vadd.f32 %v8329_v24, %v12247_v52  ;;  %v5084_v40 = vpop.f32.mrb[49].mxu1 }
 0xac7   : > { %v8848_v4 = vadd.f32 %v12247_v52, %v5084_v40  ;;  %v13314_v40 = vld [vmem:[#allocation25_spill] sm:$0xff] }
 0xac8   : > { %v12254_v62 = vadd.f32 %v8847_v63, %v13292_v47  ;;  %8373 = vmatmul.mubr.msk.f32.gmra.mrb[78].mxu1 %vm1307_vm1, %v8322_v38 }
 0xac9   : > { %v12258_v39 = vadd.f32 %v8848_v4, %v13293_v55  ;;  %v8332_v17 = vpop.f32.mrb[50].mxu1  ;;  %v13316_v55 = vld [vmem:[#allocation24_spill] sm:$0xff] }
 0xaca   : > { %v8849_v1 = vadd.f32 %v8332_v17, %v12247_v52  ;;  %v5094_v2 = vpop.f32.mrb[51].mxu1  ;;  %v5312_v12 = vsel %vm424_vm0, %v12254_v62, 0.0 }
 0xacb   : > { %v8850_v30 = vadd.f32 %v12247_v52, %v5094_v2  ;;  %5313 = vadd.xlane.f32.xlu0 %v5312_v12  ;;  %v5309_v59 = vsel %vm424_vm0, %v12258_v39, 0.0 }
 0xacc   : > { %v12267_v21 = vadd.f32 %v8849_v1, %v13294_v10  ;;  %5310 = vadd.xlane.f32.xlu1 %v5309_v59 }
 0xacd   : > { %v8335_v45 = vpop.f32.mrb[52].mxu1  ;;  %v12273_v51 = vadd.f32 %v8850_v30, %v13296_v35 }
 0xace   : > { %13295 = vst [vmem:[#allocation71_spill] sm:$0xff] %v12267_v21  ;;  %v8851_v15 = vadd.f32 %v8335_v45, %v12247_v52  ;;  %v5104_v61 = vpop.f32.mrb[53].mxu1  ;;  %v5318_v5 = vsel %vm424_vm0, %v12267_v21, 0.0  ;;  %v13318_v45 = vld [vmem:[#allocation27_spill] sm:$0xff] }
 0xacf   : > { %13297 = vst [vmem:[#allocation76_spill] sm:$0xff] %v12273_v51  ;;  %v8852_v28 = vadd.f32 %v12247_v52, %v5104_v61  ;;  %v5315_v26 = vsel %vm424_vm0, %v12273_v51, 0.0  ;;  %v13320_v61 = vld [vmem:[#allocation26_spill] sm:$0xff] }
 0xad0   : > { %v12277_v36 = vadd.f32 %v8851_v15, %v13298_v6  ;;  %5319 = vadd.xlane.f32.xlu1 %v5318_v5 }
 0xad1   : > { %v8338_v11 = vpop.f32.mrb[54].mxu1  ;;  %v12283_v56 = vadd.f32 %v8852_v28, %v13300_v20 }
 0xad2   : > { %13299 = vst [vmem:[#allocation50_spill] sm:$0xff] %v12277_v36  ;;  %v8853_v41 = vadd.f32 %v8338_v11, %v12247_v52  ;;  %v5114_v31 = vpop.f32.mrb[55].mxu1  ;;  %v5324_v48 = vsel %vm424_vm0, %v12277_v36, 0.0 }
 0xad3   : > { %13301 = vst [vmem:[#allocation55_spill] sm:$0xff] %v12283_v56  ;;  %v8854_v49 = vadd.f32 %v12247_v52, %v5114_v31  ;;  %5325 = vadd.xlane.f32.xlu0 %v5324_v48  ;;  %v5321_v7 = vsel %vm424_vm0, %v12283_v56, 0.0 }
 0xad4   : > { %v12289_v54 = vadd.f32 %v8853_v41, %v13302_v29  ;;  %5316 = vadd.xlane.f32.xlu1 %v5315_v26 }
 0xad5   : > { %v8341_v53 = vpop.f32.mrb[56].mxu1  ;;  %v12295_v18 = vadd.f32 %v8854_v49, %v13304_v50 }
 0xad6   : > { %13303 = vst [vmem:[#allocation78_spill] sm:$0xff] %v12289_v54  ;;  %v8855_v16 = vadd.f32 %v8341_v53, %v12247_v52  ;;  %v5124_v8 = vpop.f32.mrb[57].mxu1  ;;  %v5330_v33 = vsel %vm424_vm0, %v12289_v54, 0.0 }
 0xad7   : > { %13305 = vst [vmem:[#allocation44_spill] sm:$0xff] %v12295_v18  ;;  %v8856_v25 = vadd.f32 %v12247_v52, %v5124_v8  ;;  %5331 = vadd.xlane.f32.xlu0 %v5330_v33  ;;  %v5327_v9 = vsel %vm424_vm0, %v12295_v18, 0.0 }
 0xad8   : > { %v12301_v32 = vadd.f32 %v8855_v16, %v13306_v22  ;;  %5322 = vadd.xlane.f32.xlu1 %v5321_v7 }
 0xad9   : > { %v8344_v14 = vpop.f32.mrb[58].mxu1  ;;  %v12307_v19 = vadd.f32 %v8856_v25, %v13308_v3 }
 0xada   : > { %13307 = vst [vmem:[#allocation49_spill] sm:$0xff] %v12301_v32  ;;  %v8857_v27 = vadd.f32 %v8344_v14, %v12247_v52  ;;  %v5134_v60 = vpop.f32.mrb[59].mxu1  ;;  %v5336_v13 = vsel %vm424_vm0, %v12301_v32, 0.0 }
 0xadb   : > { %13309 = vst [vmem:[#allocation45_spill] sm:$0xff] %v12307_v19  ;;  %v8858_v57 = vadd.f32 %v12247_v52, %v5134_v60  ;;  %5337 = vadd.xlane.f32.xlu0 %v5336_v13  ;;  %v5333_v43 = vsel %vm424_vm0, %v12307_v19, 0.0 }
 0xadc   : > { %v12313_v44 = vadd.f32 %v8857_v27, %v13310_v37  ;;  %5328 = vadd.xlane.f32.xlu1 %v5327_v9 }
 0xadd   : > { %v12318_v46 = vadd.f32 %v8858_v57, %v13312_v23 }
 0xade   : > { %13311 = vst [vmem:[#allocation57_spill] sm:$0xff] %v12313_v44  ;;  %v5342_v34 = vsel %vm424_vm0, %v12313_v44, 0.0 }
 0xadf   : > { %13313 = vst [vmem:[#allocation51_spill] sm:$0xff] %v12318_v46  ;;  %5343 = vadd.xlane.f32.xlu0 %v5342_v34  ;;  %v5339_v47 = vsel %vm424_vm0, %v12318_v46, 0.0 }
 0xae0   : > { %v8347_v38 = vpop.f32.mrb[60].mxu1  ;;  %5334 = vadd.xlane.f32.xlu1 %v5333_v43 }
 0xae1   : > { %v8859_v58 = vadd.f32 %v8347_v38, %v12247_v52  ;;  %v5144_v24 = vpop.f32.mrb[61].mxu1 }
 0xae2   : > { %v8860_v63 = vadd.f32 %v12247_v52, %v5144_v24 }
 0xae3   : > { %v12325_v4 = vadd.f32 %v8859_v58, %v13314_v40 }
 0xae4   : > { %v12330_v17 = vadd.f32 %v8860_v63, %v13316_v55  ;;  %5340 = vadd.xlane.f32.xlu1 %v5339_v47 }
 0xae5   : > { %13315 = vst [vmem:[#allocation59_spill] sm:$0xff] %v12325_v4  ;;  %v5348_v1 = vsel %vm424_vm0, %v12325_v4, 0.0 }
 0xae6   : > { %13317 = vst [vmem:[#allocation47_spill] sm:$0xff] %v12330_v17  ;;  %5349 = vadd.xlane.f32.xlu0 %v5348_v1  ;;  %v5345_v2 = vsel %vm424_vm0, %v12330_v17, 0.0 }
 0xae8   : > { %v8350_v12 = vpop.f32.mrb[62].mxu1  ;;  %5346 = vadd.xlane.f32.xlu1 %v5345_v2 }
 0xae9   : > { %v8861_v30 = vadd.f32 %v8350_v12, %v12247_v52  ;;  %v5154_v59 = vpop.f32.mrb[63].mxu1 }
 0xaea   : > { %v8862_v10 = vadd.f32 %v12247_v52, %v5154_v59 }
 0xaeb   : > { %v12339_v15 = vadd.f32 %v8861_v30, %v13318_v45 }
 0xaec   : > { %v12342_v5 = vadd.f32 %v8862_v10, %v13320_v61 }
 0xaed   : > { %13319 = vst [vmem:[#allocation52_spill] sm:$0xff] %v12339_v15  ;;  %v5354_v35 = vsel %vm424_vm0, %v12339_v15, 0.0 }
 0xaee   : > { %13321 = vst [vmem:[#allocation60_spill] sm:$0xff] %v12342_v5  ;;  %5355 = vadd.xlane.f32.xlu0 %v5354_v35  ;;  %v5351_v28 = vsel %vm424_vm0, %v12342_v5, 0.0 }
 0xaef   : > { %5352 = vadd.xlane.f32.xlu1 %v5351_v28 }
 0xb58   : > { %v5314_v6 = vpop.xlane.xlu0 %5313 }
 0xb59   : > { %v5406_v11 = vmul.f32 0.03125, %v5314_v6  ;;  %v5311_v41 = vpop.xlane.xlu1 %5310 }
 0xb5a   : > { %v5405_v31 = vmul.f32 0.03125, %v5311_v41 }
 0xb5b   : > { %v12349_v48 = vsub.f32 %v12254_v62, %v5406_v11 }
 0xb5c   : > { %v12352_v20 = vsub.f32 %v12258_v39, %v5405_v31 }
 0xb5d   : > { %v5320_v49 = vpop.xlane.xlu1 %5319  ;;  %v5470_v26 = vmul.f32 %v12349_v48, %v12349_v48 }
 0xb5e   : > { %v5408_v29 = vmul.f32 0.03125, %v5320_v49  ;;  %v5469_v53 = vmul.f32 %v12352_v20, %v12352_v20 }
 0xb5f   : > { %v5504_v16 = vsel %vm424_vm0, %v5470_v26, 0.0 }
 0xb60   : > { %v12360_v8 = vsub.f32 %v12267_v21, %v5408_v29  ;;  %v5326_v33 = vpop.xlane.xlu0 %5325  ;;  %5505 = vadd.xlane.f32.xlu0 %v5504_v16  ;;  %v5501_v50 = vsel %vm424_vm0, %v5469_v53, 0.0 }
 0xb61   : > { %v5410_v25 = vmul.f32 0.03125, %v5326_v33  ;;  %v5317_v7 = vpop.xlane.xlu1 %5316  ;;  %5502 = vadd.xlane.f32.xlu1 %v5501_v50 }
 0xb62   : > { %v5407_v22 = vmul.f32 0.03125, %v5317_v7  ;;  %v5472_v14 = vmul.f32 %v12360_v8, %v12360_v8 }
 0xb63   : > { %v12366_v27 = vsub.f32 %v12277_v36, %v5410_v25 }
 0xb64   : > { %v12369_v60 = vsub.f32 %v12273_v51, %v5407_v22  ;;  %v5332_v13 = vpop.xlane.xlu0 %5331  ;;  %v5510_v3 = vsel %vm424_vm0, %v5472_v14, 0.0 }
 0xb65   : > { %v5412_v57 = vmul.f32 0.03125, %v5332_v13  ;;  %v5323_v9 = vpop.xlane.xlu1 %5322  ;;  %5511 = vadd.xlane.f32.xlu0 %v5510_v3  ;;  %v5474_v37 = vmul.f32 %v12366_v27, %v12366_v27 }
 0xb66   : > { %v5409_v34 = vmul.f32 0.03125, %v5323_v9  ;;  %v5471_v23 = vmul.f32 %v12369_v60, %v12369_v60 }
 0xb67   : > { %v12377_v43 = vsub.f32 %v12289_v54, %v5412_v57  ;;  %v5516_v38 = vsel %vm424_vm0, %v5474_v37, 0.0 }
 0xb68   : > { %v12381_v58 = vsub.f32 %v12283_v56, %v5409_v34  ;;  %v5338_v24 = vpop.xlane.xlu0 %5337  ;;  %v5507_v63 = vsel %vm424_vm0, %v5471_v23, 0.0 }
 0xb69   : > { %v5414_v40 = vmul.f32 0.03125, %v5338_v24  ;;  %v5329_v47 = vpop.xlane.xlu1 %5328  ;;  %5517 = vadd.xlane.f32.xlu0 %v5516_v38  ;;  %5508 = vadd.xlane.f32.xlu1 %v5507_v63  ;;  %v5476_v55 = vmul.f32 %v12377_v43, %v12377_v43 }
 0xb6a   : > { %v5411_v1 = vmul.f32 0.03125, %v5329_v47  ;;  %v5473_v2 = vmul.f32 %v12381_v58, %v12381_v58 }
 0xb6b   : > { %v12389_v12 = vsub.f32 %v12301_v32, %v5414_v40  ;;  %v5522_v30 = vsel %vm424_vm0, %v5476_v55, 0.0 }
 0xb6c   : > { %v12393_v59 = vsub.f32 %v12295_v18, %v5411_v1  ;;  %v5344_v10 = vpop.xlane.xlu0 %5343  ;;  %v5513_v45 = vsel %vm424_vm0, %v5473_v2, 0.0  ;;  %v13322_v1 = vld [vmem:[#allocation29_spill] sm:$0xff] }
 0xb6d   : > { %v5416_v61 = vmul.f32 0.03125, %v5344_v10  ;;  %v5335_v35 = vpop.xlane.xlu1 %5334  ;;  %5523 = vadd.xlane.f32.xlu0 %v5522_v30  ;;  %5514 = vadd.xlane.f32.xlu1 %v5513_v45  ;;  %v5478_v28 = vmul.f32 %v12389_v12, %v12389_v12  ;;  %v13324_v10 = vld [vmem:[#allocation28_spill] sm:$0xff] }
 0xb6e   : > { %v5413_v6 = vmul.f32 0.03125, %v5335_v35  ;;  %v5475_v11 = vmul.f32 %v12393_v59, %v12393_v59 }
 0xb6f   : > { %v12401_v41 = vsub.f32 %v12313_v44, %v5416_v61  ;;  %v5528_v31 = vsel %vm424_vm0, %v5478_v28, 0.0 }
 0xb70   : > { %v12405_v49 = vsub.f32 %v12307_v19, %v5413_v6  ;;  %v5519_v26 = vsel %vm424_vm0, %v5475_v11, 0.0 }
 0xb71   : > { %v5341_v29 = vpop.xlane.xlu1 %5340  ;;  %5529 = vadd.xlane.f32.xlu0 %v5528_v31  ;;  %5520 = vadd.xlane.f32.xlu1 %v5519_v26  ;;  %v5480_v53 = vmul.f32 %v12401_v41, %v12401_v41  ;;  %v13326_v26 = vld [vmem:[#allocation31_spill] sm:$0xff] }
 0xb72   : > { %v5415_v16 = vmul.f32 0.03125, %v5341_v29  ;;  %v5477_v33 = vmul.f32 %v12405_v49, %v12405_v49 }
 0xb73   : > { %v5350_v50 = vpop.xlane.xlu0 %5349  ;;  %v5534_v25 = vsel %vm424_vm0, %v5480_v53, 0.0  ;;  %v13328_v53 = vld [vmem:[#allocation30_spill] sm:$0xff] }
 0xb74   : > { %v12414_v7 = vsub.f32 %v12318_v46, %v5415_v16  ;;  %v5418_v22 = vmul.f32 0.03125, %v5350_v50  ;;  %v5525_v14 = vsel %vm424_vm0, %v5477_v33, 0.0 }
 0xb75   : > { %v5347_v13 = vpop.xlane.xlu1 %5346  ;;  %5535 = vadd.xlane.f32.xlu0 %v5534_v25  ;;  %5526 = vadd.xlane.f32.xlu1 %v5525_v14 }
 0xb76   : > { %v12418_v3 = vsub.f32 %v12325_v4, %v5418_v22  ;;  %v5417_v57 = vmul.f32 0.03125, %v5347_v13  ;;  %v5479_v9 = vmul.f32 %v12414_v7, %v12414_v7 }
 0xb78   : > { %v12423_v37 = vsub.f32 %v12330_v17, %v5417_v57  ;;  %v5531_v34 = vsel %vm424_vm0, %v5479_v9, 0.0  ;;  %v5482_v23 = vmul.f32 %v12418_v3, %v12418_v3  ;;  %v13330_v57 = vld [vmem:[#allocation33_spill] sm:$0xff] }
 0xb79   : > { %5532 = vadd.xlane.f32.xlu1 %v5531_v34  ;;  %v8353_v38 = vpop.f32.mrb[64].mxu1  ;;  %v13332_v34 = vld [vmem:[#allocation32_spill] sm:$0xff] }
 0xb7a   : > { %v8863_v24 = vadd.f32 %v8353_v38, %v12247_v52  ;;  %v5540_v63 = vsel %vm424_vm0, %v5482_v23, 0.0  ;;  %v5164_v40 = vpop.f32.mrb[65].mxu1  ;;  %v5481_v47 = vmul.f32 %v12423_v37, %v12423_v37 }
 0xb7b   : > { %5541 = vadd.xlane.f32.xlu0 %v5540_v63  ;;  %v8864_v55 = vadd.f32 %v12247_v52, %v5164_v40 }
 0xb7c   : > { %v12434_v2 = vadd.f32 %v8863_v24, %v13322_v1  ;;  %v5537_v30 = vsel %vm424_vm0, %v5481_v47, 0.0  ;;  %v13334_v1 = vld [vmem:[#allocation35_spill] sm:$0xff] }
 0xb7d   : > { %v12438_v45 = vadd.f32 %v8864_v55, %v13324_v10  ;;  %5538 = vadd.xlane.f32.xlu1 %v5537_v30  ;;  %v13336_v10 = vld [vmem:[#allocation34_spill] sm:$0xff] }
 0xb7e   : > { %13323 = vst [vmem:[#allocation53_spill] sm:$0xff] %v12434_v2  ;;  %v5360_v61 = vsel %vm424_vm0, %v12434_v2, 0.0 }
 0xb7f   : > { %13325 = vst [vmem:[#allocation64_spill] sm:$0xff] %v12438_v45  ;;  %5361 = vadd.xlane.f32.xlu0 %v5360_v61  ;;  %v5357_v35 = vsel %vm424_vm0, %v12438_v45, 0.0 }
 0xb81   : > { %5358 = vadd.xlane.f32.xlu1 %v5357_v35  ;;  %v8356_v28 = vpop.f32.mrb[66].mxu1 }
 0xb82   : > { %v8865_v6 = vadd.f32 %v8356_v28, %v12247_v52  ;;  %v5174_v11 = vpop.f32.mrb[67].mxu1 }
 0xb83   : > { %v8866_v31 = vadd.f32 %v12247_v52, %v5174_v11 }
 0xb84   : > { %v12447_v29 = vadd.f32 %v8865_v6, %v13326_v26 }
 0xb85   : > { %v12450_v16 = vadd.f32 %v8866_v31, %v13328_v53  ;;  %v13338_v53 = vld [vmem:[#allocation37_spill] sm:$0xff] }
 0xb86   : > { %13327 = vst [vmem:[#allocation65_spill] sm:$0xff] %v12447_v29  ;;  %v5366_v33 = vsel %vm424_vm0, %v12447_v29, 0.0 }
 0xb87   : > { %13329 = vst [vmem:[#allocation54_spill] sm:$0xff] %v12450_v16  ;;  %5367 = vadd.xlane.f32.xlu0 %v5366_v33  ;;  %v5363_v50 = vsel %vm424_vm0, %v12450_v16, 0.0  ;;  %v8359_v25 = vpop.f32.mrb[68].mxu1 }
 0xb88   : > { %5364 = vadd.xlane.f32.xlu1 %v5363_v50  ;;  %v8867_v22 = vadd.f32 %v8359_v25, %v12247_v52  ;;  %v5184_v14 = vpop.f32.mrb[69].mxu1  ;;  %v13340_v50 = vld [vmem:[#allocation36_spill] sm:$0xff] }
 0xb89   : > { %v8868_v13 = vadd.f32 %v12247_v52, %v5184_v14 }
 0xb8a   : > { %v12459_v9 = vadd.f32 %v8867_v22, %v13330_v57 }
 0xb8b   : > { %v12462_v23 = vadd.f32 %v8868_v13, %v13332_v34  ;;  %v8362_v38 = vpop.f32.mrb[70].mxu1  ;;  %v5353_v34 = vpop.xlane.xlu1 %5352 }
 0xb8c   : > { %13331 = vst [vmem:[#allocation67_spill] sm:$0xff] %v12459_v9  ;;  %v8869_v24 = vadd.f32 %v8362_v38, %v12247_v52  ;;  %v5194_v63 = vpop.f32.mrb[71].mxu1  ;;  %v5372_v40 = vsel %vm424_vm0, %v12459_v9, 0.0 }
 0xb8d   : > { %13333 = vst [vmem:[#allocation56_spill] sm:$0xff] %v12462_v23  ;;  %v8870_v47 = vadd.f32 %v12247_v52, %v5194_v63  ;;  %5373 = vadd.xlane.f32.xlu0 %v5372_v40  ;;  %v5369_v55 = vsel %vm424_vm0, %v12462_v23, 0.0  ;;  %v13342_v63 = vld [vmem:[#allocation39_spill] sm:$0xff] }
 0xb8e   : > { %v12471_v30 = vadd.f32 %v8869_v24, %v13334_v1  ;;  %5370 = vadd.xlane.f32.xlu1 %v5369_v55 }
 0xb8f   : > { %v12474_v61 = vadd.f32 %v8870_v47, %v13336_v10  ;;  %v8365_v35 = vpop.f32.mrb[72].mxu1  ;;  %v13344_v47 = vld [vmem:[#allocation38_spill] sm:$0xff]  ;;  %v5419_v10 = vmul.f32 0.03125, %v5353_v34 }
 0xb90   : > { %13335 = vst [vmem:[#allocation63_spill] sm:$0xff] %v12471_v30  ;;  %v8871_v28 = vadd.f32 %v8365_v35, %v12247_v52  ;;  %v5204_v6 = vpop.f32.mrb[73].mxu1  ;;  %v5378_v11 = vsel %vm424_vm0, %v12471_v30, 0.0 }
 0xb91   : > { %13337 = vst [vmem:[#allocation70_spill] sm:$0xff] %v12474_v61  ;;  %v8872_v31 = vadd.f32 %v12247_v52, %v5204_v6  ;;  %5379 = vadd.xlane.f32.xlu0 %v5378_v11  ;;  %v5375_v26 = vsel %vm424_vm0, %v12474_v61, 0.0  ;;  %v5356_v11 = vpop.xlane.xlu0 %5355  ;;  %v12513_v34 = vsub.f32 %v12342_v5, %v5419_v10 }
 0xb92   : > { %v12483_v33 = vadd.f32 %v8871_v28, %v13338_v53  ;;  %5376 = vadd.xlane.f32.xlu1 %v5375_v26  ;;  %v13345_v53 = vld [vmem:[#allocation41_spill] sm:$0xff] }
 0xb93   : > { %v12486_v25 = vadd.f32 %v8872_v31, %v13340_v50  ;;  %v8368_v22 = vpop.f32.mrb[74].mxu1 }
 0xb94   : > { %13339 = vst [vmem:[#allocation58_spill] sm:$0xff] %v12483_v33  ;;  %v8873_v14 = vadd.f32 %v8368_v22, %v12247_v52  ;;  %v5214_v13 = vpop.f32.mrb[75].mxu1  ;;  %v5384_v57 = vsel %vm424_vm0, %v12483_v33, 0.0  ;;  %v13347_v22 = vld [vmem:[#allocation40_spill] sm:$0xff] }
 0xb95   : > { %13341 = vst [vmem:[#allocation73_spill] sm:$0xff] %v12486_v25  ;;  %v8874_v38 = vadd.f32 %v12247_v52, %v5214_v13  ;;  %5385 = vadd.xlane.f32.xlu0 %v5384_v57  ;;  %v5381_v24 = vsel %vm424_vm0, %v12486_v25, 0.0  ;;  %v5420_v57 = vmul.f32 0.03125, %v5356_v11 }
 0xb96   : > { %v12495_v40 = vadd.f32 %v8873_v14, %v13342_v63  ;;  %5382 = vadd.xlane.f32.xlu1 %v5381_v24 }
 0xb97   : > { %v12498_v55 = vadd.f32 %v8874_v38, %v13344_v47  ;;  %v8371_v1 = vpop.f32.mrb[76].mxu1  ;;  %v12528_v10 = vsub.f32 %v12339_v15, %v5420_v57  ;;  %v5797_v57 = vld [vmem:[#allocation7] sm:$0xff] }
 0xb98   : > { %13343 = vst [vmem:[#allocation61_spill] sm:$0xff] %v12495_v40  ;;  %v8875_v35 = vadd.f32 %v8371_v1, %v12247_v52  ;;  %v5224_v28 = vpop.f32.mrb[77].mxu1  ;;  %v5390_v6 = vsel %vm424_vm0, %v12495_v40, 0.0 }
 0xb99   : > { %v8876_v31 = vadd.f32 %v12247_v52, %v5224_v28  ;;  %5391 = vadd.xlane.f32.xlu0 %v5390_v6  ;;  %v5387_v26 = vsel %vm424_vm0, %v12498_v55, 0.0  ;;  %v13350_v6 = vld [vmem:[#allocation42_spill] sm:$0xff] }
 0xb9a   : > { %v12507_v50 = vadd.f32 %v8875_v35, %v13345_v53  ;;  %5388 = vadd.xlane.f32.xlu1 %v5387_v26  ;;  %v13348_v35 = vld [vmem:[#allocation43_spill] sm:$0xff] }
 0xb9b   : > { %v12510_v14 = vadd.f32 %v8876_v31, %v13347_v22  ;;  %v8374_v13 = vpop.f32.mrb[78].mxu1  ;;  %v5484_v22 = vmul.f32 %v12528_v10, %v12528_v10 }
 0xb9c   : > { %13346 = vst [vmem:[#allocation75_spill] sm:$0xff] %v12507_v50  ;;  %v8877_v38 = vadd.f32 %v8374_v13, %v12247_v52  ;;  %v5234_v24 = vpop.f32.mrb[79].mxu1  ;;  %v5396_v63 = vsel %vm424_vm0, %v12507_v50, 0.0 }
 0xb9d   : > { %v8878_v47 = vadd.f32 %v12247_v52, %v5234_v24  ;;  %5397 = vadd.xlane.f32.xlu0 %v5396_v63  ;;  %v5393_v1 = vsel %vm424_vm0, %v12510_v14, 0.0  ;;  %v5483_v52 = vmul.f32 %v12513_v34, %v12513_v34  ;;  %v5546_v13 = vsel %vm424_vm0, %v5484_v22, 0.0 }
 0xb9e   : > { %v12522_v28 = vadd.f32 %v8877_v38, %v13348_v35  ;;  %5394 = vadd.xlane.f32.xlu1 %v5393_v1  ;;  %v5798_v38 = vld [vmem:[#allocation7 + $0x8] sm:$0xff]  ;;  %v12546_v63 = vpack.i.bf16 %v12190_v0, %v12188_v42  ;;  %v12563_v0 = vld [vmem:[%s13073_s4 + $0x2] ss:$0 sm:$0xff] }
 0xb9f   : > { %v12525_v11 = vadd.f32 %v8878_v47, %v13350_v6  ;;  %v5543_v53 = vsel %vm424_vm0, %v5483_v52, 0.0  ;;  %v12540_v24 = vpack.i.bf16 %v5798_v38, %v5797_v57 }
 0xba0   : > { %13349 = vst [vmem:[#allocation46_spill] sm:$0xff] %v12522_v28  ;;  %v5402_v31 = vsel %vm424_vm0, %v12522_v28, 0.0 }
 0xba1   : > { %13351 = vst [vmem:[#allocation62_spill] sm:$0xff] %v12525_v11  ;;  %5403 = vadd.xlane.f32.xlu0 %v5402_v31  ;;  %v5399_v26 = vsel %vm424_vm0, %v12525_v11, 0.0 }
 0xba2   : > { %5400 = vadd.xlane.f32.xlu1 %v5399_v26 }
 0xba5   : > { %5544 = vadd.xlane.f32.xlu0 %v5543_v53 }
 0xba9   : > { %5547 = vadd.xlane.f32.xlu0 %v5546_v13 }
 0xbb3   : > { %9309 = vrot.lane.b32.xlu1 %v12540_v24, %s9939_s13 }
 0xbbf   : > { %9314 = vrot.lane.b32.xlu0 %v12546_v63, %s9939_s13 }
 0xbed   : > { %v5506_v47 = vpop.xlane.xlu0 %5505 }
 0xbee   : > { %v5503_v1 = vpop.xlane.xlu1 %5502 }
 0xbef   : > { %v5597_v35 = vmul.f32 0.03125, %v5503_v1  ;;  %v12573_v1 = vld [vmem:[%s13073_s4 + $0x3] ss:$0 sm:$0xff] }
 0xbf1   : > { %v5629_v6 = vadd.f32 1e-05, %v5597_v35 }
 0xbf2   : > { %v12550_v31 = vpop.xlane.xlu0 %5511 }
 0xbf3   : > { %9648 = vrsqrt.f32 %v5629_v6 }
 0xbf6   : > { %v12552_v52 = vpop.xlane.xlu0 %5517  ;;  %v12554_v26 = vpop.xlane.xlu1 %5508 }
 0xbfa   : > { %v12556_v53 = vpop.xlane.xlu0 %5523  ;;  %v12558_v22 = vpop.xlane.xlu1 %5514 }
 0xbfd   : > { %v9649_v42 = vpop.eup %9648 }
 0xbfe   : > { %v12565_v13 = vpop.xlane.xlu0 %5529  ;;  %v12567_v57 = vpop.xlane.xlu1 %5520  ;;  %v5693_v38 = vmul.f32 %v9649_v42, %v12352_v20 }
 0xc00   : > { %v5729_v35 = vmul.f32 %v12563_v0, %v5693_v38 }
 0xc02   : > { %v12576_v6 = vpop.xlane.xlu0 %5535  ;;  %v12578_v15 = vpop.xlane.xlu1 %5526  ;;  %v5765_v5 = vadd.f32 %v12573_v1, %v5729_v35 }
 0xc04   : > { %8383 = vmatprep.mubr.msk.f32.mxu0 %vm424_vm0, %v5765_v5 }
 0xc06   : > { %v12582_v4 = vpop.xlane.xlu1 %5532 }
 0xc08   : > { %v12584_v17 = vpop.xlane.xlu0 %5541 }
 0xc0a   : > { %v12586_v20 = vpop.xlane.xlu1 %5538 }
 0xc0c   : > { %v5362_v42 = vpop.xlane.xlu0 %5361 }
 0xc0d   : > { %v5422_v44 = vmul.f32 0.03125, %v5362_v42 }
 0xc0e   : > { %v5359_v54 = vpop.xlane.xlu1 %5358 }
 0xc0f   : > { %v12589_v46 = vsub.f32 %v12434_v2, %v5422_v44  ;;  %v5421_v38 = vmul.f32 0.03125, %v5359_v54 }
 0xc11   : > { %v12592_v18 = vsub.f32 %v12438_v45, %v5421_v38  ;;  %v5486_v35 = vmul.f32 %v12589_v46, %v12589_v46 }
 0xc13   : > { %v5552_v5 = vsel %vm424_vm0, %v5486_v35, 0.0  ;;  %v5485_v32 = vmul.f32 %v12592_v18, %v12592_v18 }
 0xc14   : > { %v5368_v36 = vpop.xlane.xlu0 %5367  ;;  %5553 = vadd.xlane.f32.xlu0 %v5552_v5 }
 0xc15   : > { %v5424_v19 = vmul.f32 0.03125, %v5368_v36  ;;  %v5365_v42 = vpop.xlane.xlu1 %5364  ;;  %v5549_v56 = vsel %vm424_vm0, %v5485_v32, 0.0 }
 0xc16   : > { %v5423_v44 = vmul.f32 0.03125, %v5365_v42  ;;  %5550 = vadd.xlane.f32.xlu1 %v5549_v56 }
 0xc17   : > { %v12601_v54 = vsub.f32 %v12447_v29, %v5424_v19 }
 0xc18   : > { %v12604_v38 = vsub.f32 %v12450_v16, %v5423_v44 }
 0xc19   : > { %v5488_v35 = vmul.f32 %v12601_v54, %v12601_v54 }
 0xc1a   : > { %v5374_v2 = vpop.xlane.xlu0 %5373  ;;  %v5487_v36 = vmul.f32 %v12604_v38, %v12604_v38 }
 0xc1b   : > { %v5426_v45 = vmul.f32 0.03125, %v5374_v2  ;;  %v5371_v21 = vpop.xlane.xlu1 %5370  ;;  %v5558_v5 = vsel %vm424_vm0, %v5488_v35, 0.0 }
 0xc1c   : > { %v5425_v32 = vmul.f32 0.03125, %v5371_v21  ;;  %5559 = vadd.xlane.f32.xlu1 %v5558_v5  ;;  %v5555_v16 = vsel %vm424_vm0, %v5487_v36, 0.0 }
 0xc1d   : > { %v12612_v56 = vsub.f32 %v12459_v9, %v5426_v45 }
 0xc1e   : > { %v12615_v19 = vsub.f32 %v12462_v23, %v5425_v32  ;;  %v5380_v42 = vpop.xlane.xlu0 %5379  ;;  %v5598_v32 = vmul.f32 0.03125, %v5506_v47 }
 0xc1f   : > { %v5428_v44 = vmul.f32 0.03125, %v5380_v42  ;;  %v5377_v29 = vpop.xlane.xlu1 %5376  ;;  %v5490_v2 = vmul.f32 %v12612_v56, %v12612_v56 }
 0xc20   : > { %v5427_v35 = vmul.f32 0.03125, %v5377_v29  ;;  %5556 = vadd.xlane.f32.xlu1 %v5555_v16  ;;  %v5489_v21 = vmul.f32 %v12615_v19, %v12615_v19 }
 0xc21   : > { %v12623_v5 = vsub.f32 %v12471_v30, %v5428_v44  ;;  %v5564_v45 = vsel %vm424_vm0, %v5490_v2, 0.0  ;;  %v5599_v2 = vmul.f32 0.03125, %v12554_v26 }
 0xc22   : > { %v12627_v9 = vsub.f32 %v12474_v61, %v5427_v35  ;;  %v5386_v42 = vpop.xlane.xlu0 %5385  ;;  %5565 = vadd.xlane.f32.xlu0 %v5564_v45  ;;  %v5561_v36 = vsel %vm424_vm0, %v5489_v21, 0.0  ;;  %v5630_v45 = vadd.f32 1e-05, %v5598_v32  ;;  %v5600_v21 = vmul.f32 0.03125, %v12550_v31 }
 0xc23   : > { %v5430_v23 = vmul.f32 0.03125, %v5386_v42  ;;  %v5383_v51 = vpop.xlane.xlu1 %5382  ;;  %v5492_v29 = vmul.f32 %v12623_v5, %v12623_v5  ;;  %v5631_v31 = vadd.f32 1e-05, %v5599_v2 }
 0xc24   : > { %v5429_v16 = vmul.f32 0.03125, %v5383_v51  ;;  %5562 = vadd.xlane.f32.xlu1 %v5561_v36  ;;  %v5491_v44 = vmul.f32 %v12627_v9, %v12627_v9  ;;  %9650 = vrsqrt.f32 %v5630_v45 }
 0xc25   : > { %v12636_v47 = vsub.f32 %v12483_v33, %v5430_v23  ;;  %v5570_v35 = vsel %vm424_vm0, %v5492_v29, 0.0  ;;  %v5601_v23 = vmul.f32 0.03125, %v12558_v22  ;;  %9652 = vrsqrt.f32 %v5631_v31 }
 0xc26   : > { %v12641_v42 = vsub.f32 %v12486_v25, %v5429_v16  ;;  %v5392_v30 = vpop.xlane.xlu0 %5391  ;;  %5571 = vadd.xlane.f32.xlu0 %v5570_v35  ;;  %v5567_v51 = vsel %vm424_vm0, %v5491_v44, 0.0  ;;  %v5632_v44 = vadd.f32 1e-05, %v5600_v21 }
 0xc27   : > { %v5432_v36 = vmul.f32 0.03125, %v5392_v30  ;;  %v5389_v61 = vpop.xlane.xlu1 %5388  ;;  %v5494_v26 = vmul.f32 %v12636_v47, %v12636_v47 }
 0xc28   : > { %v5431_v33 = vmul.f32 0.03125, %v5389_v61  ;;  %5568 = vadd.xlane.f32.xlu1 %v5567_v51  ;;  %v5493_v32 = vmul.f32 %v12641_v42, %v12641_v42  ;;  %v5602_v61 = vmul.f32 0.03125, %v12552_v52  ;;  %9654 = vrsqrt.f32 %v5632_v44 }
 0xc29   : > { %v12650_v29 = vsub.f32 %v12495_v40, %v5432_v36  ;;  %v5576_v16 = vsel %vm424_vm0, %v5494_v26, 0.0  ;;  %v5633_v36 = vadd.f32 1e-05, %v5601_v23 }
 0xc2a   : > { %v12654_v30 = vsub.f32 %v12498_v55, %v5431_v33  ;;  %v5398_v35 = vpop.xlane.xlu0 %5397  ;;  %5577 = vadd.xlane.f32.xlu0 %v5576_v16  ;;  %v5573_v22 = vsel %vm424_vm0, %v5493_v32, 0.0  ;;  %v5603_v33 = vmul.f32 0.03125, %v12567_v57  ;;  %v5634_v23 = vadd.f32 1e-05, %v5602_v61 }
 0xc2b   : > { %v5434_v51 = vmul.f32 0.03125, %v5398_v35  ;;  %v5395_v25 = vpop.xlane.xlu1 %5394  ;;  %v5496_v2 = vmul.f32 %v12650_v29, %v12650_v29  ;;  %v5604_v16 = vmul.f32 0.03125, %v12556_v53  ;;  %9656 = vrsqrt.f32 %v5633_v36 }
 0xc2c   : > { %v5433_v40 = vmul.f32 0.03125, %v5395_v25  ;;  %5574 = vadd.xlane.f32.xlu1 %v5573_v22  ;;  %v5495_v45 = vmul.f32 %v12654_v30, %v12654_v30  ;;  %9658 = vrsqrt.f32 %v5634_v23 }
 0xc2d   : > { %v12664_v21 = vsub.f32 %v12507_v50, %v5434_v51  ;;  %v5582_v26 = vsel %vm424_vm0, %v5496_v2, 0.0  ;;  %v5605_v51 = vmul.f32 0.03125, %v12578_v15  ;;  %v5606_v15 = vmul.f32 0.03125, %v12565_v13 }
 0xc2e   : > { %v12668_v52 = vsub.f32 %v12510_v14, %v5433_v40  ;;  %5583 = vadd.xlane.f32.xlu0 %v5582_v26  ;;  %v5404_v32 = vpop.xlane.xlu0 %5403  ;;  %v5579_v25 = vsel %vm424_vm0, %v5495_v45, 0.0  ;;  %v5635_v40 = vadd.f32 1e-05, %v5603_v33  ;;  %v5636_v26 = vadd.f32 1e-05, %v5604_v16 }
 0xc2f   : > { %v5436_v35 = vmul.f32 0.03125, %v5404_v32  ;;  %v5401_v31 = vpop.xlane.xlu1 %5400  ;;  %v5498_v57 = vmul.f32 %v12664_v21, %v12664_v21  ;;  %v5608_v50 = vmul.f32 0.03125, %v12576_v6 }
 0xc30   : > { %5580 = vadd.xlane.f32.xlu1 %v5579_v25  ;;  %v5435_v22 = vmul.f32 0.03125, %v5401_v31  ;;  %v5497_v44 = vmul.f32 %v12668_v52, %v12668_v52  ;;  %v9651_v25 = vpop.eup %9650  ;;  %9660 = vrsqrt.f32 %v5635_v40 }
 0xc31   : > { %v12678_v2 = vsub.f32 %v12522_v28, %v5436_v35  ;;  %v5588_v61 = vsel %vm424_vm0, %v5498_v57, 0.0  ;;  %v5694_v13 = vmul.f32 %v9651_v25, %v12349_v48  ;;  %9662 = vrsqrt.f32 %v5636_v26 }
 0xc32   : > { %v12682_v53 = vsub.f32 %v12525_v11, %v5435_v22  ;;  %5589 = vadd.xlane.f32.xlu0 %v5588_v61  ;;  %v5545_v45 = vpop.xlane.xlu0 %5544  ;;  %v5585_v36 = vsel %vm424_vm0, %v5497_v44, 0.0  ;;  %v5637_v22 = vadd.f32 1e-05, %v5605_v51  ;;  %v5607_v61 = vmul.f32 0.03125, %v12582_v4  ;;  %v9653_v11 = vpop.eup %9652 }
 0xc33   : > { %v5500_v32 = vmul.f32 %v12678_v2, %v12678_v2  ;;  %v9310_v33 = vpop.permute.xlu1 %9309  ;;  %v5609_v4 = vmul.f32 0.03125, %v12586_v20  ;;  %v5730_v48 = vmul.f32 %v12563_v0, %v5694_v13 }
 0xc34   : > { %5586 = vadd.xlane.f32.xlu1 %v5585_v36  ;;  %v9312_v35 = vunpack.i.h.bf16 %v9310_v33  ;;  %v9311_v31 = vunpack.i.l.bf16 %v9310_v33  ;;  %v5499_v57 = vmul.f32 %v12682_v53, %v12682_v53  ;;  %v9655_v36 = vpop.eup %9654  ;;  %v5638_v33 = vadd.f32 1e-05, %v5606_v15 }
 0xc35   : > { %v5594_v23 = vsel %vm424_vm0, %v5500_v32, 0.0  ;;  %9664 = vrsqrt.f32 %v5637_v22  ;;  %v5639_v40 = vadd.f32 1e-05, %v5607_v61  ;;  %v9657_v51 = vpop.eup %9656  ;;  %v5640_v15 = vadd.f32 1e-05, %v5608_v50 }
 0xc36   : > { %5595 = vadd.xlane.f32.xlu0 %v5594_v23  ;;  %v5548_v16 = vpop.xlane.xlu0 %5547  ;;  %v8823_v44 = vpack.c.bf16 %v9312_v35, %v9311_v31  ;;  %v5591_v28 = vsel %vm424_vm0, %v5499_v57, 0.0  ;;  %v5695_v35 = vmul.f32 %v9653_v11, %v12369_v60  ;;  %9666 = vrsqrt.f32 %v5638_v33  ;;  %v9659_v31 = vpop.eup %9658 }
 0xc37   : > { %v5696_v6 = vmul.f32 %v9655_v36, %v12360_v8  ;;  %9668 = vrsqrt.f32 %v5639_v40  ;;  %v5641_v20 = vadd.f32 1e-05, %v5609_v4  ;;  %v5611_v57 = vmul.f32 0.03125, %v5545_v45 }
 0xc38   : > { %5592 = vadd.xlane.f32.xlu1 %v5591_v28  ;;  %8824 = vmatprep.subr.bf16.mxu0 %v8823_v44  ;;  %v5610_v28 = vmul.f32 0.03125, %v12584_v17  ;;  %v5731_v61 = vmul.f32 %v12563_v0, %v5695_v35  ;;  %v5697_v60 = vmul.f32 %v9657_v51, %v12381_v58  ;;  %9670 = vrsqrt.f32 %v5640_v15 }
 0xc39   : > { %8826 = vmatpush3.bf16.msra.mxu0 %v8823_v44  ;;  %8843 = vmatprep.subr.bf16.mxu1 %v8823_v44  ;;  %v5732_v17 = vmul.f32 %v12563_v0, %v5696_v6  ;;  %v5766_v8 = vadd.f32 %v12573_v1, %v5730_v48  ;;  %9672 = vrsqrt.f32 %v5641_v20  ;;  %v5643_v50 = vadd.f32 1e-05, %v5611_v57 }
 0xc3a   : > { %v9315_v32 = vpop.permute.xlu0 %9314  ;;  %8845 = vmatpush3.bf16.msra.mxu1 %v8823_v44  ;;  %v9661_v11 = vpop.eup %9660  ;;  %v5642_v23 = vadd.f32 1e-05, %v5610_v28  ;;  %v5612_v44 = vmul.f32 0.03125, %v5548_v16  ;;  %v5698_v45 = vmul.f32 %v9659_v31, %v12366_v27  ;;  %v5767_v36 = vadd.f32 %v12573_v1, %v5731_v61 }
 0xc3b   : > { %v9317_v25 = vunpack.i.h.bf16 %v9315_v32  ;;  %v9316_v26 = vunpack.i.l.bf16 %v9315_v32  ;;  %v9663_v13 = vpop.eup %9662  ;;  %v5733_v58 = vmul.f32 %v12563_v0, %v5697_v60  ;;  %v5699_v33 = vmul.f32 %v9661_v11, %v12393_v59 }
 0xc3c   : > { %9674 = vrsqrt.f32 %v5642_v23  ;;  %v5644_v16 = vadd.f32 1e-05, %v5612_v44  ;;  %v5768_v4 = vadd.f32 %v12573_v1, %v5732_v17  ;;  %v5734_v51 = vmul.f32 %v12563_v0, %v5698_v45 }
 0xc3d   : > { %v8827_v22 = vpack.c.bf16 %v9317_v25, %v9316_v26  ;;  %9676 = vrsqrt.f32 %v5643_v50  ;;  %v5700_v27 = vmul.f32 %v9663_v13, %v12377_v43  ;;  %v5769_v35 = vadd.f32 %v12573_v1, %v5733_v58 }
 0xc3e   : > { %v5735_v48 = vmul.f32 %v12563_v0, %v5699_v33  ;;  %9678 = vrsqrt.f32 %v5644_v16  ;;  %v5770_v26 = vadd.f32 %v12573_v1, %v5734_v51 }
 0xc3f   : > { %8828 = vmatprep.subr.bf16.mxu0 %v8827_v22  ;;  %8844 = vmatprep.subr.bf16.mxu1 %v8827_v22  ;;  %v9665_v40 = vpop.eup %9664  ;;  %v5736_v15 = vmul.f32 %v12563_v0, %v5700_v27 }
 0xc40   : > { %8830 = vmatpush3.bf16.msra.mxu0 %v8827_v22  ;;  %8846 = vmatpush3.bf16.msra.mxu1 %v8827_v22  ;;  %v9667_v32 = vpop.eup %9666  ;;  %v5701_v59 = vmul.f32 %v9665_v40, %v12405_v49  ;;  %v5771_v6 = vadd.f32 %v12573_v1, %v5735_v48 }
 0xc41   : > { %v9669_v25 = vpop.eup %9668  ;;  %v5702_v28 = vmul.f32 %v9667_v32, %v12389_v12  ;;  %v5772_v12 = vadd.f32 %v12573_v1, %v5736_v15 }
 0xc42   : > { %v9671_v43 = vpop.eup %9670  ;;  %v5737_v49 = vmul.f32 %v12563_v0, %v5701_v59  ;;  %v5703_v31 = vmul.f32 %v9669_v25, %v12414_v7 }
 0xc43   : > { %8384 = vmatmul.mubr.msk.f32.vlgmr.msra.gmra.mrb[80].mxu0 %vm424_vm0, %v5766_v8  ;;  %v9673_v20 = vpop.eup %9672  ;;  %v5738_v57 = vmul.f32 %v12563_v0, %v5702_v28 }
 0xc44   : > { %8386 = vmatprep.mubr.msk.f32.mxu0 %vm424_vm0, %v5767_v36  ;;  %v5773_v61 = vadd.f32 %v12573_v1, %v5737_v49  ;;  %v5739_v60 = vmul.f32 %v12563_v0, %v5703_v31  ;;  %v5705_v7 = vmul.f32 %v9673_v20, %v12423_v37 }
 0xc46   : > { %v9675_v22 = vpop.eup %9674  ;;  %v5741_v8 = vmul.f32 %v12563_v0, %v5705_v7 }
 0xc47   : > { %8387 = vmatmul.mubr.msk.f32.gmra.mrb[82].mxu0 %vm424_vm0, %v5768_v4  ;;  %v9677_v11 = vpop.eup %9676  ;;  %v5706_v44 = vmul.f32 %v9675_v22, %v12418_v3 }
 0xc48   : > { %8389 = vmatprep.mubr.msk.f32.mxu0 %vm424_vm0, %v5769_v35  ;;  %v9679_v17 = vpop.eup %9678  ;;  %v5707_v50 = vmul.f32 %v9677_v11, %v12513_v34  ;;  %v5777_v36 = vadd.f32 %v12573_v1, %v5741_v8 }
 0xc49   : > { %9319 = vrot.lane.b32.xlu1 %v12540_v24, %s9940_s9  ;;  %v5704_v24 = vmul.f32 %v9671_v43, %v12401_v41  ;;  %v5775_v41 = vadd.f32 %v12573_v1, %v5739_v60  ;;  %v5742_v45 = vmul.f32 %v12563_v0, %v5706_v44  ;;  %v5708_v13 = vmul.f32 %v9679_v17, %v12528_v10 }
 0xc4a   : > { %v5743_v3 = vmul.f32 %v12563_v0, %v5707_v50 }
 0xc4b   : > { %8390 = vmatmul.mubr.msk.f32.gmra.mrb[84].mxu0 %vm424_vm0, %v5770_v26  ;;  %v5740_v23 = vmul.f32 %v12563_v0, %v5704_v24  ;;  %v5778_v34 = vadd.f32 %v12573_v1, %v5742_v45  ;;  %v5744_v58 = vmul.f32 %v12563_v0, %v5708_v13 }
 0xc4c   : > { %8392 = vmatprep.mubr.msk.f32.mxu0 %vm424_vm0, %v5771_v6  ;;  %9324 = vrot.lane.b32.xlu0 %v12546_v63, %s9940_s9  ;;  %v5774_v63 = vadd.f32 %v12573_v1, %v5738_v57  ;;  %v5779_v33 = vadd.f32 %v12573_v1, %v5743_v3  ;;  %s12959_s9 = scalar_lea.vmem [#allocation8], %s6937_s6  ;;  %s7334_s6 = sshll.u32 %s9998_s22, 11 }
 0xc4d   : > { %v5776_v37 = vadd.f32 %v12573_v1, %v5740_v23  ;;  %v5780_v10 = vadd.f32 %v12573_v1, %v5744_v58  ;;  %s6835_s30 = sshll.u32 %s12959_s9, 4  ;;  %s13021_s7 = scalar_lea.hbm %s13074_s5, %s7334_s6  ;;  %s13023_s30 = int_to_ptr.vmem [resolvable:$true] %s6835_s30 }
 0xc4e   : > { %s9862_s12 = scalar_lea.vmem %s13023_s30, 2048  ;;  %s9944_s22 = smov [#allocation8]  }
 0xc4f   : > { %8393 = vmatmul.mubr.msk.f32.gmra.mrb[86].mxu0 %vm424_vm0, %v5772_v12  ;;  %p9863_p11 = scmp.ne.s32.totalorder %s13023_s30, %s9862_s12  ;;  %s9866_s24 = sshll.u32 %s9944_s22, 4  ;;  %s9867_s24 = int_to_ptr.vmem [resolvable:$false] %s9866_s24 }
 0xc50   : > { %8395 = vmatprep.mubr.msk.f32.mxu0 %vm424_vm0, %v5773_v61  ;;  %s9868_s26 = scalar_lea.vmem %s9867_s24, 4096  ;;  %p9869_p7 = scmp.lt.s32.totalorder %s13023_s30, %s9867_s24 }
 0xc51   : > { %p9864_p2 = pnand %p9863_p11, %p13380_p0  ;;  %p9870_p9 = scmp.lt.s32.totalorder %s9868_s26, %s9862_s12 }
 0xc53   : > { %8396 = vmatmul.mubr.msk.f32.gmra.mrb[88].mxu0 %vm424_vm0, %v5774_v63  ;;  %p9865_p3 = pneg %p9864_p2  ;;  %p9871_p12 = por %p9870_p9, %p9869_p7 }
 0xc54   : > { %8398 = vmatprep.mubr.msk.f32.mxu0 %vm424_vm0, %v5775_v41 }
 0xc55   : > { %p9872_p1 = pnand %p9871_p12, %p9865_p3 }
 0xc57   : > { %8399 = vmatmul.mubr.msk.f32.gmra.mrb[90].mxu0 %vm424_vm0, %v5776_v37 }
 0xc58   : > { %8401 = vmatprep.mubr.msk.f32.mxu0 %vm424_vm0, %v5777_v36 }
 0xc5b   : > { %8402 = vmatmul.mubr.msk.f32.gmra.mrb[92].mxu0 %vm424_vm0, %v5778_v34 }
 0xc5c   : > { %8404 = vmatprep.mubr.msk.f32.mxu0 %vm424_vm0, %v5779_v33 }
 0xc5f   : > { %8405 = vmatmul.mubr.msk.f32.gmra.mrb[94].mxu0 %vm424_vm0, %v5780_v10 }
 0xca1   : > { %v5554_v40 = vpop.xlane.xlu0 %5553 }
 0xca2   : > { %v5614_v16 = vmul.f32 0.03125, %v5554_v40 }
 0xca3   : > { %v5551_v4 = vpop.xlane.xlu1 %5550 }
 0xca4   : > { %v5646_v51 = vadd.f32 1e-05, %v5614_v16  ;;  %v5613_v27 = vmul.f32 0.03125, %v5551_v4 }
 0xca6   : > { %9680 = vrsqrt.f32 %v5646_v51  ;;  %v5645_v32 = vadd.f32 1e-05, %v5613_v27 }
 0xca8   : > { %9682 = vrsqrt.f32 %v5645_v32 }
 0xca9   : > { %v5560_v35 = vpop.xlane.xlu1 %5559 }
 0xcaa   : > { %v5616_v48 = vmul.f32 0.03125, %v5560_v35 }
 0xcac   : > { %v5648_v59 = vadd.f32 1e-05, %v5616_v48 }
 0xcad   : > { %v5557_v25 = vpop.xlane.xlu1 %5556 }
 0xcae   : > { %9684 = vrsqrt.f32 %v5648_v59  ;;  %v5615_v26 = vmul.f32 0.03125, %v5557_v25 }
 0xcaf   : > { %v5566_v15 = vpop.xlane.xlu0 %5565 }
 0xcb0   : > { %v9681_v28 = vpop.eup %9680  ;;  %v5647_v43 = vadd.f32 1e-05, %v5615_v26  ;;  %v5618_v6 = vmul.f32 0.03125, %v5566_v15 }
 0xcb1   : > { %v5563_v49 = vpop.xlane.xlu1 %5562  ;;  %v5710_v31 = vmul.f32 %v9681_v28, %v12589_v46 }
 0xcb2   : > { %v9683_v20 = vpop.eup %9682  ;;  %9686 = vrsqrt.f32 %v5647_v43  ;;  %v5650_v12 = vadd.f32 1e-05, %v5618_v6  ;;  %v5617_v57 = vmul.f32 0.03125, %v5563_v49 }
 0xcb3   : > { %v5572_v24 = vpop.xlane.xlu0 %5571  ;;  %v5709_v22 = vmul.f32 %v9683_v20, %v12592_v18  ;;  %v5746_v7 = vmul.f32 %v12563_v0, %v5710_v31 }
 0xcb4   : > { %9688 = vrsqrt.f32 %v5650_v12  ;;  %v5649_v61 = vadd.f32 1e-05, %v5617_v57  ;;  %v5620_v60 = vmul.f32 0.03125, %v5572_v24 }
 0xcb5   : > { %v5569_v11 = vpop.xlane.xlu1 %5568  ;;  %v5745_v63 = vmul.f32 %v12563_v0, %v5709_v22  ;;  %v5782_v18 = vadd.f32 %v12573_v1, %v5746_v7 }
 0xcb6   : > { %9690 = vrsqrt.f32 %v5649_v61  ;;  %v5652_v23 = vadd.f32 1e-05, %v5620_v60  ;;  %v5619_v44 = vmul.f32 0.03125, %v5569_v11 }
 0xcb7   : > { %v5578_v17 = vpop.xlane.xlu0 %5577  ;;  %v5781_v46 = vadd.f32 %v12573_v1, %v5745_v63 }
 0xcb8   : > { %v9685_v41 = vpop.eup %9684  ;;  %9692 = vrsqrt.f32 %v5652_v23  ;;  %v5651_v8 = vadd.f32 1e-05, %v5619_v44  ;;  %v5622_v50 = vmul.f32 0.03125, %v5578_v17 }
 0xcb9   : > { %v5575_v37 = vpop.xlane.xlu1 %5574  ;;  %8407 = vmatprep.mubr.msk.f32.mxu0 %vm424_vm0, %v5781_v46  ;;  %v5712_v45 = vmul.f32 %v9685_v41, %v12601_v54 }
 0xcba   : > { %9694 = vrsqrt.f32 %v5651_v8  ;;  %v5654_v13 = vadd.f32 1e-05, %v5622_v50  ;;  %v5621_v36 = vmul.f32 0.03125, %v5575_v37  ;;  %8408 = vmatmul.mubr.msk.f32.gmra.mrb[96].mxu0 %vm424_vm0, %v5782_v18 }
 0xcbb   : > { %v5584_v3 = vpop.xlane.xlu0 %5583  ;;  %v5748_v16 = vmul.f32 %v12563_v0, %v5712_v45 }
 0xcbc   : > { %v9687_v34 = vpop.eup %9686  ;;  %9696 = vrsqrt.f32 %v5654_v13  ;;  %v5653_v58 = vadd.f32 1e-05, %v5621_v36  ;;  %v5624_v33 = vmul.f32 0.03125, %v5584_v3 }
 0xcbd   : > { %v5581_v10 = vpop.xlane.xlu1 %5580  ;;  %v5711_v40 = vmul.f32 %v9687_v34, %v12604_v38  ;;  %v5784_v38 = vadd.f32 %v12573_v1, %v5748_v16 }
 0xcbe   : > { %v9689_v4 = vpop.eup %9688  ;;  %9698 = vrsqrt.f32 %v5653_v58  ;;  %v5656_v51 = vadd.f32 1e-05, %v5624_v33  ;;  %v5623_v27 = vmul.f32 0.03125, %v5581_v10 }
 0xcbf   : > { %v5590_v54 = vpop.xlane.xlu0 %5589  ;;  %v5747_v32 = vmul.f32 %v12563_v0, %v5711_v40  ;;  %v5714_v35 = vmul.f32 %v9689_v4, %v12612_v56 }
 0xcc0   : > { %v9691_v48 = vpop.eup %9690  ;;  %9700 = vrsqrt.f32 %v5656_v51  ;;  %v5655_v59 = vadd.f32 1e-05, %v5623_v27  ;;  %v5626_v25 = vmul.f32 0.03125, %v5590_v54 }
 0xcc1   : > { %v5587_v26 = vpop.xlane.xlu1 %5586  ;;  %v5783_v15 = vadd.f32 %v12573_v1, %v5747_v32  ;;  %v5713_v28 = vmul.f32 %v9691_v48, %v12615_v19  ;;  %v5750_v31 = vmul.f32 %v12563_v0, %v5714_v35 }
 0xcc2   : > { %v9693_v43 = vpop.eup %9692  ;;  %9702 = vrsqrt.f32 %v5655_v59  ;;  %v5658_v6 = vadd.f32 1e-05, %v5626_v25  ;;  %v5625_v49 = vmul.f32 0.03125, %v5587_v26 }
 0xcc3   : > { %8410 = vmatprep.mubr.msk.f32.mxu0 %vm424_vm0, %v5783_v15  ;;  %v5596_v56 = vpop.xlane.xlu0 %5595  ;;  %v5749_v20 = vmul.f32 %v12563_v0, %v5713_v28  ;;  %v5716_v12 = vmul.f32 %v9693_v43, %v12623_v5  ;;  %v5786_v44 = vadd.f32 %v12573_v1, %v5750_v31 }
 0xcc4   : > { %v9695_v57 = vpop.eup %9694  ;;  %9704 = vrsqrt.f32 %v5658_v6  ;;  %v5657_v24 = vadd.f32 1e-05, %v5625_v49  ;;  %v5628_v22 = vmul.f32 0.03125, %v5596_v56  ;;  %8411 = vmatmul.mubr.msk.f32.gmra.mrb[98].mxu0 %vm424_vm0, %v5784_v38 }
 0xcc5   : > { %v5593_v19 = vpop.xlane.xlu1 %5592  ;;  %v5785_v61 = vadd.f32 %v12573_v1, %v5749_v20  ;;  %v5715_v60 = vmul.f32 %v9695_v57, %v12627_v9  ;;  %v5752_v7 = vmul.f32 %v12563_v0, %v5716_v12 }
 0xcc6   : > { %v9697_v11 = vpop.eup %9696  ;;  %9706 = vrsqrt.f32 %v5657_v24  ;;  %v5660_v63 = vadd.f32 1e-05, %v5628_v22  ;;  %v5627_v23 = vmul.f32 0.03125, %v5593_v19 }
 0xcc7   : > { %8413 = vmatprep.mubr.msk.f32.mxu0 %vm424_vm0, %v5785_v61  ;;  %v5751_v5 = vmul.f32 %v12563_v0, %v5715_v60  ;;  %v5718_v17 = vmul.f32 %v9697_v11, %v12636_v47  ;;  %v9325_v46 = vpop.permute.xlu0 %9324  ;;  %v5788_v37 = vadd.f32 %v12573_v1, %v5752_v7 }
 0xcc8   : > { %v9699_v41 = vpop.eup %9698  ;;  %9708 = vrsqrt.f32 %v5660_v63  ;;  %v5659_v8 = vadd.f32 1e-05, %v5627_v23  ;;  %8414 = vmatmul.mubr.msk.f32.gmra.mrb[100].mxu0 %vm424_vm0, %v5786_v44  ;;  %v9327_v9 = vunpack.i.h.bf16 %v9325_v46  ;;  %v9326_v50 = vunpack.i.l.bf16 %v9325_v46 }
 0xcc9   : > { %v5787_v18 = vadd.f32 %v12573_v1, %v5751_v5  ;;  %v5717_v45 = vmul.f32 %v9699_v41, %v12641_v42  ;;  %v9320_v13 = vpop.permute.xlu1 %9319  ;;  %v5754_v3 = vmul.f32 %v12563_v0, %v5718_v17 }
 0xcca   : > { %v9701_v36 = vpop.eup %9700  ;;  %9710 = vrsqrt.f32 %v5659_v8  ;;  %v9322_v47 = vunpack.i.h.bf16 %v9320_v13  ;;  %v9321_v34 = vunpack.i.l.bf16 %v9320_v13  ;;  %v8835_v16 = vpack.c.bf16 %v9327_v9, %v9326_v50 }
 0xccb   : > { %8416 = vmatprep.mubr.msk.f32.mxu0 %vm424_vm0, %v5787_v18  ;;  %v5753_v58 = vmul.f32 %v12563_v0, %v5717_v45  ;;  %v5720_v33 = vmul.f32 %v9701_v36, %v12650_v29  ;;  %v5790_v27 = vadd.f32 %v12573_v1, %v5754_v3 }
 0xccc   : > { %v9703_v10 = vpop.eup %9702  ;;  %8417 = vmatmul.mubr.msk.f32.gmra.mrb[102].mxu0 %vm424_vm0, %v5788_v37  ;;  %v8831_v40 = vpack.c.bf16 %v9322_v47, %v9321_v34 }
 0xccd   : > { %v5789_v42 = vadd.f32 %v12573_v1, %v5753_v58  ;;  %v5719_v4 = vmul.f32 %v9703_v10, %v12654_v30  ;;  %v5756_v54 = vmul.f32 %v12563_v0, %v5720_v33 }
 0xcce   : > { %v9705_v51 = vpop.eup %9704  ;;  %8832 = vmatprep.subr.bf16.mxu0 %v8831_v40 }
 0xccf   : > { %v5722_v32 = vmul.f32 %v9705_v51, %v12664_v21  ;;  %8419 = vmatprep.mubr.msk.f32.mxu0 %vm424_vm0, %v5789_v42  ;;  %v5755_v29 = vmul.f32 %v12563_v0, %v5719_v4  ;;  %8834 = vmatpush3.bf16.msra.mxu0 %v8831_v40  ;;  %v5792_v26 = vadd.f32 %v12573_v1, %v5756_v54 }
 0xcd0   : > { %v9707_v35 = vpop.eup %9706  ;;  %8420 = vmatmul.mubr.msk.f32.gmra.mrb[104].mxu0 %vm424_vm0, %v5790_v27  ;;  %8836 = vmatprep.subr.bf16.mxu0 %v8835_v16 }
 0xcd1   : > { %v5791_v48 = vadd.f32 %v12573_v1, %v5755_v29  ;;  %v5721_v30 = vmul.f32 %v9707_v35, %v12668_v52  ;;  %v5758_v25 = vmul.f32 %v12563_v0, %v5722_v32 }
 0xcd2   : > { %v9709_v59 = vpop.eup %9708 }
 0xcd3   : > { %8422 = vmatprep.mubr.msk.f32.mxu0 %vm424_vm0, %v5791_v48  ;;  %v5757_v21 = vmul.f32 %v12563_v0, %v5721_v30  ;;  %v5724_v15 = vmul.f32 %v9709_v59, %v12678_v2  ;;  %8838 = vmatpush3.bf16.msra.mxu0 %v8835_v16  ;;  %v5794_v52 = vadd.f32 %v12573_v1, %v5758_v25 }
 0xcd4   : > { %v9711_v38 = vpop.eup %9710  ;;  %8423 = vmatmul.mubr.msk.f32.gmra.mrb[106].mxu0 %vm424_vm0, %v5792_v26 }
 0xcd5   : > { %v5793_v28 = vadd.f32 %v12573_v1, %v5757_v21  ;;  %v5723_v43 = vmul.f32 %v9711_v38, %v12682_v53  ;;  %v5760_v6 = vmul.f32 %v12563_v0, %v5724_v15  ;;  %v12827_v53 = vld [vmem:[%s13073_s4 + $0x5] ss:$0 sm:$0xff] }
 0xcd7   : > { %8425 = vmatprep.mubr.msk.f32.mxu1 %vm424_vm0, %v5793_v28  ;;  %v5759_v49 = vmul.f32 %v12563_v0, %v5723_v43  ;;  %v5796_v31 = vadd.f32 %v12573_v1, %v5760_v6 }
 0xcd8   : > { %8426 = vmatmul.mubr.msk.f32.vlgmr.msra.gmra.mrb[112].mxu1 %vm424_vm0, %v5794_v52 }
 0xcd9   : > { %v5795_v2 = vadd.f32 %v12573_v1, %v5759_v49 }
 0xcdb   : > { %8428 = vmatprep.mubr.msk.f32.mxu1 %vm424_vm0, %v5795_v2 }
 0xcdc   : > { %8429 = vmatmul.mubr.msk.f32.gmra.mrb[114].mxu1 %vm424_vm0, %v5796_v31 }
 0xd16   : > { %v8385_v56 = vpop.f32.mrb[80].mxu0 }
 0xd17   : > { %v5990_v20 = vadd.f32 %v8385_v56, %v12827_v53  ;;  %v5984_v12 = vpop.f32.mrb[81].mxu0 }
 0xd18   : > { %v5985_v0 = vadd.f32 %v12827_v53, %v5984_v12 }
 0xd19   : > { %v6176_v57 = vmul.f32 0.70710677, %v5990_v20  ;;  %v6144_v33 = vmul.f32 0.5, %v5990_v20 }
 0xd1a   : > { %v6175_v24 = vmul.f32 0.70710677, %v5985_v0  ;;  %v8388_v22 = vpop.f32.mrb[82].mxu0  ;;  %v6143_v3 = vmul.f32 0.5, %v5985_v0 }
 0xd1b   : > { %9712 = verf.f32 %v6176_v57  ;;  %v6000_v1 = vadd.f32 %v8388_v22, %v12827_v53  ;;  %v5994_v19 = vpop.f32.mrb[83].mxu0 }
 0xd1c   : > { %9714 = verf.f32 %v6175_v24  ;;  %v5995_v61 = vadd.f32 %v12827_v53, %v5994_v19 }
 0xd1d   : > { %v6178_v60 = vmul.f32 0.70710677, %v6000_v1  ;;  %v6146_v59 = vmul.f32 0.5, %v6000_v1 }
 0xd1e   : > { %v6177_v7 = vmul.f32 0.70710677, %v5995_v61  ;;  %v8391_v11 = vpop.f32.mrb[84].mxu0  ;;  %v6145_v29 = vmul.f32 0.5, %v5995_v61 }
 0xd1f   : > { %9716 = verf.f32 %v6178_v60  ;;  %v6010_v63 = vadd.f32 %v8391_v11, %v12827_v53  ;;  %v6004_v23 = vpop.f32.mrb[85].mxu0 }
 0xd20   : > { %9718 = verf.f32 %v6177_v7  ;;  %v6005_v44 = vadd.f32 %v12827_v53, %v6004_v23 }
 0xd21   : > { %v6180_v5 = vmul.f32 0.70710677, %v6010_v63  ;;  %v6148_v20 = vmul.f32 0.5, %v6010_v63 }
 0xd22   : > { %v6179_v17 = vmul.f32 0.70710677, %v6005_v44  ;;  %v8394_v46 = vpop.f32.mrb[86].mxu0  ;;  %v6147_v49 = vmul.f32 0.5, %v6005_v44 }
 0xd23   : > { %9720 = verf.f32 %v6180_v5  ;;  %v12836_v41 = vadd.f32 %v8394_v46, %v12827_v53  ;;  %v6014_v8 = vpop.f32.mrb[87].mxu0 }
 0xd24   : > { %9722 = verf.f32 %v6179_v17  ;;  %v6015_v9 = vadd.f32 %v12827_v53, %v6014_v8 }
 0xd25   : > { %v9713_v50 = vpop.eup %9712  ;;  %v6182_v18 = vmul.f32 0.70710677, %v12836_v41  ;;  %v6150_v63 = vmul.f32 0.5, %v12836_v41 }
 0xd26   : > { %v9715_v37 = vpop.eup %9714  ;;  %v6240_v45 = vadd.f32 1.0, %v9713_v50  ;;  %v6181_v13 = vmul.f32 0.70710677, %v6015_v9  ;;  %v8397_v36 = vpop.f32.mrb[88].mxu0  ;;  %v6149_v7 = vmul.f32 0.5, %v6015_v9 }
 0xd27   : > { %v6239_v47 = vadd.f32 1.0, %v9715_v37  ;;  %9724 = verf.f32 %v6182_v18  ;;  %v12841_v34 = vadd.f32 %v8397_v36, %v12827_v53  ;;  %v6024_v58 = vpop.f32.mrb[89].mxu0 }
 0xd28   : > { %9726 = verf.f32 %v6181_v13  ;;  %v6025_v10 = vadd.f32 %v12827_v53, %v6024_v58  ;;  %v6272_v51 = vmul.f32 %v6240_v45, %v6144_v33 }
 0xd29   : > { %v9717_v40 = vpop.eup %9716  ;;  %v6271_v16 = vmul.f32 %v6239_v47, %v6143_v3  ;;  %v6184_v42 = vmul.f32 0.70710677, %v12841_v34  ;;  %v6152_v36 = vmul.f32 0.5, %v12841_v34 }
 0xd2a   : > { %v9719_v4 = vpop.eup %9718  ;;  %v6242_v27 = vadd.f32 1.0, %v9717_v40  ;;  %v6183_v54 = vmul.f32 0.70710677, %v6025_v10  ;;  %v8400_v32 = vpop.f32.mrb[90].mxu0  ;;  %v6151_v45 = vmul.f32 0.5, %v6025_v10 }
 0xd2b   : > { %v6241_v35 = vadd.f32 1.0, %v9719_v4  ;;  %9728 = verf.f32 %v6184_v42  ;;  %v12846_v48 = vadd.f32 %v8400_v32, %v12827_v53  ;;  %v6034_v30 = vpop.f32.mrb[91].mxu0  ;;  %8439 = vmatprep.mubr.msk.f32.mxu0 %vm424_vm0, %v6271_v16 }
 0xd2c   : > { %9730 = verf.f32 %v6183_v54  ;;  %v6035_v25 = vadd.f32 %v12827_v53, %v6034_v30  ;;  %8440 = vmatmul.mubr.msk.f32.vlgmr.msra.gmra.mrb[108].mxu0 %vm424_vm0, %v6272_v51  ;;  %v6274_v28 = vmul.f32 %v6242_v27, %v6146_v59 }
 0xd2d   : > { %v9721_v26 = vpop.eup %9720  ;;  %v6273_v21 = vmul.f32 %v6241_v35, %v6145_v29  ;;  %v6186_v15 = vmul.f32 0.70710677, %v12846_v48  ;;  %v6154_v10 = vmul.f32 0.5, %v12846_v48 }
 0xd2e   : > { %v9723_v38 = vpop.eup %9722  ;;  %v6244_v43 = vadd.f32 1.0, %v9721_v26  ;;  %v6185_v52 = vmul.f32 0.70710677, %v6035_v25  ;;  %v8403_v6 = vpop.f32.mrb[92].mxu0  ;;  %v6153_v40 = vmul.f32 0.5, %v6035_v25 }
 0xd2f   : > { %v6243_v2 = vadd.f32 1.0, %v9723_v38  ;;  %9732 = verf.f32 %v6186_v15  ;;  %v6050_v31 = vadd.f32 %v8403_v6, %v12827_v53  ;;  %v6044_v56 = vpop.f32.mrb[93].mxu0  ;;  %8442 = vmatprep.mubr.msk.f32.mxu0 %vm424_vm0, %v6273_v21 }
 0xd30   : > { %9734 = verf.f32 %v6185_v52  ;;  %v6045_v12 = vadd.f32 %v12827_v53, %v6044_v56  ;;  %8443 = vmatmul.mubr.msk.f32.gmra.mrb[110].mxu0 %vm424_vm0, %v6274_v28  ;;  %v6276_v1 = vmul.f32 %v6244_v43, %v6148_v20 }
 0xd31   : > { %v9725_v0 = vpop.eup %9724  ;;  %v6275_v57 = vmul.f32 %v6243_v2, %v6147_v49  ;;  %v6188_v24 = vmul.f32 0.70710677, %v6050_v31  ;;  %v6156_v29 = vmul.f32 0.5, %v6050_v31 }
 0xd32   : > { %v9727_v22 = vpop.eup %9726  ;;  %v6246_v19 = vadd.f32 1.0, %v9725_v0  ;;  %v6187_v61 = vmul.f32 0.70710677, %v6045_v12  ;;  %v8406_v60 = vpop.f32.mrb[94].mxu0  ;;  %v6155_v54 = vmul.f32 0.5, %v6045_v12 }
 0xd33   : > { %v6245_v11 = vadd.f32 1.0, %v9727_v22  ;;  %9736 = verf.f32 %v6188_v24  ;;  %v6060_v23 = vadd.f32 %v8406_v60, %v12827_v53  ;;  %v6054_v44 = vpop.f32.mrb[95].mxu0  ;;  %8445 = vmatprep.mubr.msk.f32.mxu0 %vm424_vm0, %v6275_v57 }
 0xd34   : > { %9738 = verf.f32 %v6187_v61  ;;  %v6055_v5 = vadd.f32 %v12827_v53, %v6054_v44  ;;  %8446 = vmatmul.mubr.msk.f32.gmra.mrb[112].mxu0 %vm424_vm0, %v6276_v1  ;;  %v6278_v18 = vmul.f32 %v6246_v19, %v6150_v63 }
 0xd35   : > { %v9729_v17 = vpop.eup %9728  ;;  %v6277_v46 = vmul.f32 %v6245_v11, %v6149_v7  ;;  %v6190_v8 = vmul.f32 0.70710677, %v6060_v23  ;;  %v6158_v15 = vmul.f32 0.5, %v6060_v23 }
 0xd36   : > { %v9731_v50 = vpop.eup %9730  ;;  %v6248_v9 = vadd.f32 1.0, %v9729_v17  ;;  %v6189_v37 = vmul.f32 0.70710677, %v6055_v5  ;;  %v6157_v48 = vmul.f32 0.5, %v6055_v5 }
 0xd37   : > { %v6247_v13 = vadd.f32 1.0, %v9731_v50  ;;  %9740 = verf.f32 %v6190_v8  ;;  %8448 = vmatprep.mubr.msk.f32.mxu0 %vm424_vm0, %v6277_v46 }
 0xd38   : > { %9742 = verf.f32 %v6189_v37  ;;  %8449 = vmatmul.mubr.msk.f32.gmra.mrb[114].mxu0 %vm424_vm0, %v6278_v18  ;;  %v6280_v58 = vmul.f32 %v6248_v9, %v6152_v36 }
 0xd39   : > { %v9733_v41 = vpop.eup %9732  ;;  %v6279_v3 = vmul.f32 %v6247_v13, %v6151_v45 }
 0xd3a   : > { %v9735_v47 = vpop.eup %9734  ;;  %v6250_v33 = vadd.f32 1.0, %v9733_v41 }
 0xd3b   : > { %v6249_v16 = vadd.f32 1.0, %v9735_v47  ;;  %8451 = vmatprep.mubr.msk.f32.mxu0 %vm424_vm0, %v6279_v3 }
 0xd3c   : > { %8452 = vmatmul.mubr.msk.f32.gmra.mrb[116].mxu0 %vm424_vm0, %v6280_v58  ;;  %v6282_v34 = vmul.f32 %v6250_v33, %v6154_v10 }
 0xd3d   : > { %v9737_v42 = vpop.eup %9736  ;;  %v6281_v4 = vmul.f32 %v6249_v16, %v6153_v40 }
 0xd3e   : > { %v9739_v51 = vpop.eup %9738  ;;  %v6252_v27 = vadd.f32 1.0, %v9737_v42 }
 0xd3f   : > { %v6251_v32 = vadd.f32 1.0, %v9739_v51  ;;  %8454 = vmatprep.mubr.msk.f32.mxu0 %vm424_vm0, %v6281_v4 }
 0xd40   : > { %8455 = vmatmul.mubr.msk.f32.gmra.mrb[118].mxu0 %vm424_vm0, %v6282_v34  ;;  %v6284_v25 = vmul.f32 %v6252_v27, %v6156_v29 }
 0xd41   : > { %v9741_v35 = vpop.eup %9740  ;;  %v6283_v30 = vmul.f32 %v6251_v32, %v6155_v54 }
 0xd42   : > { %v9743_v59 = vpop.eup %9742  ;;  %v6254_v26 = vadd.f32 1.0, %v9741_v35 }
 0xd43   : > { %v6253_v21 = vadd.f32 1.0, %v9743_v59  ;;  %8457 = vmatprep.mubr.msk.f32.mxu0 %vm424_vm0, %v6283_v30 }
 0xd44   : > { %8458 = vmatmul.mubr.msk.f32.gmra.mrb[120].mxu0 %vm424_vm0, %v6284_v25  ;;  %v6286_v28 = vmul.f32 %v6254_v26, %v6158_v15 }
 0xd45   : > { %v6285_v38 = vmul.f32 %v6253_v21, %v6157_v48 }
 0xd47   : > { %8460 = vmatprep.mubr.msk.f32.mxu0 %vm424_vm0, %v6285_v38 }
 0xd48   : > { %8461 = vmatmul.mubr.msk.f32.gmra.mrb[122].mxu0 %vm424_vm0, %v6286_v28 }
 0xd8d   : > { %v8409_v43 = vpop.f32.mrb[96].mxu0 }
 0xd8e   : > { %v6070_v52 = vadd.f32 %v8409_v43, %v12827_v53  ;;  %v6064_v6 = vpop.f32.mrb[97].mxu0 }
 0xd8f   : > { %v6065_v49 = vadd.f32 %v12827_v53, %v6064_v6 }
 0xd90   : > { %v6192_v2 = vmul.f32 0.70710677, %v6070_v52  ;;  %v6160_v5 = vmul.f32 0.5, %v6070_v52 }
 0xd91   : > { %v6191_v31 = vmul.f32 0.70710677, %v6065_v49  ;;  %v6159_v23 = vmul.f32 0.5, %v6065_v49 }
 0xd92   : > { %9744 = verf.f32 %v6192_v2 }
 0xd93   : > { %9746 = verf.f32 %v6191_v31 }
 0xd97   : > { %v8412_v56 = vpop.f32.mrb[98].mxu0 }
 0xd98   : > { %v6080_v20 = vadd.f32 %v8412_v56, %v12827_v53  ;;  %v6074_v12 = vpop.f32.mrb[99].mxu0 }
 0xd99   : > { %v6075_v0 = vadd.f32 %v12827_v53, %v6074_v12 }
 0xd9a   : > { %v6194_v57 = vmul.f32 0.70710677, %v6080_v20  ;;  %v6162_v54 = vmul.f32 0.5, %v6080_v20 }
 0xd9b   : > { %v6193_v24 = vmul.f32 0.70710677, %v6075_v0  ;;  %v8415_v22 = vpop.f32.mrb[100].mxu0  ;;  %v6161_v4 = vmul.f32 0.5, %v6075_v0 }
 0xd9c   : > { %v9745_v1 = vpop.eup %9744  ;;  %9748 = verf.f32 %v6194_v57  ;;  %v6090_v19 = vadd.f32 %v8415_v22, %v12827_v53  ;;  %v6084_v61 = vpop.f32.mrb[101].mxu0 }
 0xd9d   : > { %v9747_v60 = vpop.eup %9746  ;;  %v6256_v7 = vadd.f32 1.0, %v9745_v1  ;;  %9750 = verf.f32 %v6193_v24  ;;  %v6085_v11 = vadd.f32 %v12827_v53, %v6084_v61 }
 0xd9e   : > { %v6255_v44 = vadd.f32 1.0, %v9747_v60  ;;  %v6196_v63 = vmul.f32 0.70710677, %v6090_v19  ;;  %v6164_v52 = vmul.f32 0.5, %v6090_v19 }
 0xd9f   : > { %v6195_v17 = vmul.f32 0.70710677, %v6085_v11  ;;  %v8418_v46 = vpop.f32.mrb[102].mxu0  ;;  %v6288_v9 = vmul.f32 %v6256_v7, %v6160_v5  ;;  %v6163_v15 = vmul.f32 0.5, %v6085_v11 }
 0xda0   : > { %v6287_v8 = vmul.f32 %v6255_v44, %v6159_v23  ;;  %9752 = verf.f32 %v6196_v63  ;;  %v6100_v50 = vadd.f32 %v8418_v46, %v12827_v53  ;;  %v6094_v18 = vpop.f32.mrb[103].mxu0 }
 0xda1   : > { %9754 = verf.f32 %v6195_v17  ;;  %v6095_v37 = vadd.f32 %v12827_v53, %v6094_v18 }
 0xda2   : > { %v6198_v45 = vmul.f32 0.70710677, %v6100_v50  ;;  %8463 = vmatprep.mubr.msk.f32.mxu0 %vm424_vm0, %v6287_v8  ;;  %v6166_v19 = vmul.f32 0.5, %v6100_v50 }
 0xda3   : > { %v6197_v13 = vmul.f32 0.70710677, %v6095_v37  ;;  %v8421_v36 = vpop.f32.mrb[104].mxu0  ;;  %8464 = vmatmul.mubr.msk.f32.gmra.mrb[124].mxu0 %vm424_vm0, %v6288_v9  ;;  %v6165_v24 = vmul.f32 0.5, %v6095_v37 }
 0xda4   : > { %9756 = verf.f32 %v6198_v45  ;;  %v12884_v41 = vadd.f32 %v8421_v36, %v12827_v53  ;;  %v6104_v3 = vpop.f32.mrb[105].mxu0 }
 0xda5   : > { %9758 = verf.f32 %v6197_v13  ;;  %v6105_v47 = vadd.f32 %v12827_v53, %v6104_v3 }
 0xda6   : > { %v9749_v58 = vpop.eup %9748  ;;  %v6200_v33 = vmul.f32 0.70710677, %v12884_v41  ;;  %v6168_v18 = vmul.f32 0.5, %v12884_v41 }
 0xda7   : > { %v9751_v40 = vpop.eup %9750  ;;  %v6258_v16 = vadd.f32 1.0, %v9749_v58  ;;  %v6199_v10 = vmul.f32 0.70710677, %v6105_v47  ;;  %v8424_v42 = vpop.f32.mrb[106].mxu0  ;;  %v6167_v46 = vmul.f32 0.5, %v6105_v47 }
 0xda8   : > { %v6257_v51 = vadd.f32 1.0, %v9751_v40  ;;  %9760 = verf.f32 %v6200_v33  ;;  %v12889_v34 = vadd.f32 %v8424_v42, %v12827_v53  ;;  %v6114_v27 = vpop.f32.mrb[107].mxu0 }
 0xda9   : > { %9762 = verf.f32 %v6199_v10  ;;  %v6115_v32 = vadd.f32 %v12827_v53, %v6114_v27  ;;  %v6290_v25 = vmul.f32 %v6258_v16, %v6162_v54 }
 0xdaa   : > { %v9753_v29 = vpop.eup %9752  ;;  %v6289_v35 = vmul.f32 %v6257_v51, %v6161_v4  ;;  %v6202_v30 = vmul.f32 0.70710677, %v12889_v34  ;;  %v6170_v3 = vmul.f32 0.5, %v12889_v34 }
 0xdab   : > { %v9755_v59 = vpop.eup %9754  ;;  %v6260_v26 = vadd.f32 1.0, %v9753_v29  ;;  %v6201_v48 = vmul.f32 0.70710677, %v6115_v32  ;;  %v8427_v21 = vpop.f32.mrb[112].mxu1  ;;  %v6169_v13 = vmul.f32 0.5, %v6115_v32 }
 0xdac   : > { %v6259_v38 = vadd.f32 1.0, %v9755_v59  ;;  %9764 = verf.f32 %v6202_v30  ;;  %v6130_v28 = vadd.f32 %v8427_v21, %v12827_v53  ;;  %v6124_v43 = vpop.f32.mrb[113].mxu1  ;;  %8466 = vmatprep.mubr.msk.f32.mxu0 %vm424_vm0, %v6289_v35 }
 0xdad   : > { %9766 = verf.f32 %v6201_v48  ;;  %v6125_v6 = vadd.f32 %v12827_v53, %v6124_v43  ;;  %8467 = vmatmul.mubr.msk.f32.gmra.mrb[126].mxu0 %vm424_vm0, %v6290_v25  ;;  %v6292_v20 = vmul.f32 %v6260_v26, %v6164_v52  ;;  %v12916_v25 = vld [vmem:[%s13073_s4 + $0x6] ss:$0 sm:$0xff] }
 0xdae   : > { %v9757_v49 = vpop.eup %9756  ;;  %v6291_v2 = vmul.f32 %v6259_v38, %v6163_v15  ;;  %v6204_v31 = vmul.f32 0.70710677, %v6130_v28  ;;  %v6172_v42 = vmul.f32 0.5, %v6130_v28 }
 0xdaf   : > { %v9759_v56 = vpop.eup %9758  ;;  %v6262_v12 = vadd.f32 1.0, %v9757_v49  ;;  %v6203_v0 = vmul.f32 0.70710677, %v6125_v6  ;;  %v8430_v57 = vpop.f32.mrb[114].mxu1  ;;  %v6171_v16 = vmul.f32 0.5, %v6125_v6 }
 0xdb0   : > { %v6261_v22 = vadd.f32 1.0, %v9759_v56  ;;  %9768 = verf.f32 %v6204_v31  ;;  %v6140_v1 = vadd.f32 %v8430_v57, %v12827_v53  ;;  %v6134_v61 = vpop.f32.mrb[115].mxu1  ;;  %8469 = vmatprep.mubr.msk.f32.mxu0 %vm424_vm0, %v6291_v2  ;;  %v13352_v56 = vld [vmem:[#allocation76_spill] sm:$0xff]  ;;  %v13353_v57 = vld [vmem:[#allocation71_spill] sm:$0xff] }
 0xdb1   : > { %9770 = verf.f32 %v6203_v0  ;;  %v6135_v60 = vadd.f32 %v12827_v53, %v6134_v61  ;;  %8470 = vmatmul.mubr.msk.f32.gmra.mrb[128].mxu0 %vm424_vm0, %v6292_v20  ;;  %v6294_v63 = vmul.f32 %v6262_v12, %v6166_v19  ;;  %v13354_v19 = vld [vmem:[#allocation55_spill] sm:$0xff] }
 0xdb2   : > { %v9761_v7 = vpop.eup %9760  ;;  %v6293_v11 = vmul.f32 %v6261_v22, %v6165_v24  ;;  %v6206_v23 = vmul.f32 0.70710677, %v6140_v1  ;;  %v6174_v35 = vmul.f32 0.5, %v6140_v1 }
 0xdb3   : > { %v9763_v44 = vpop.eup %9762  ;;  %v6264_v5 = vadd.f32 1.0, %v9761_v7  ;;  %v6205_v17 = vmul.f32 0.70710677, %v6135_v60  ;;  %v6173_v34 = vmul.f32 0.5, %v6135_v60 }
 0xdb4   : > { %v6263_v8 = vadd.f32 1.0, %v9763_v44  ;;  %9772 = verf.f32 %v6206_v23  ;;  %8472 = vmatprep.mubr.msk.f32.mxu0 %vm424_vm0, %v6293_v11  ;;  %v13355_v11 = vld [vmem:[#allocation45_spill] sm:$0xff] }
 0xdb5   : > { %9774 = verf.f32 %v6205_v17  ;;  %8473 = vmatmul.mubr.msk.f32.gmra.mrb[130].mxu0 %vm424_vm0, %v6294_v63  ;;  %v6296_v37 = vmul.f32 %v6264_v5, %v6168_v18  ;;  %v13356_v5 = vld [vmem:[#allocation50_spill] sm:$0xff] }
 0xdb6   : > { %v9765_v53 = vpop.eup %9764  ;;  %v6295_v50 = vmul.f32 %v6263_v8, %v6167_v46  ;;  %v13357_v8 = vld [vmem:[#allocation49_spill] sm:$0xff] }
 0xdb7   : > { %v9767_v9 = vpop.eup %9766  ;;  %v6266_v45 = vadd.f32 1.0, %v9765_v53 }
 0xdb8   : > { %v6265_v36 = vadd.f32 1.0, %v9767_v9  ;;  %8475 = vmatprep.mubr.msk.f32.mxu0 %vm424_vm0, %v6295_v50 }
 0xdb9   : > { %8476 = vmatmul.mubr.msk.f32.gmra.mrb[132].mxu0 %vm424_vm0, %v6296_v37  ;;  %v6298_v41 = vmul.f32 %v6266_v45, %v6170_v3  ;;  %v13358_v45 = vld [vmem:[#allocation44_spill] sm:$0xff]  ;;  %v13359_v3 = vld [vmem:[#allocation51_spill] sm:$0xff] }
 0xdba   : > { %v9769_v47 = vpop.eup %9768  ;;  %v6297_v58 = vmul.f32 %v6265_v36, %v6169_v13 }
 0xdbb   : > { %v9771_v33 = vpop.eup %9770  ;;  %v6268_v40 = vadd.f32 1.0, %v9769_v47 }
 0xdbc   : > { %v6267_v10 = vadd.f32 1.0, %v9771_v33  ;;  %8478 = vmatprep.mubr.msk.f32.mxu0 %vm424_vm0, %v6297_v58 }
 0xdbd   : > { %8479 = vmatmul.mubr.msk.f32.gmra.mrb[134].mxu0 %vm424_vm0, %v6298_v41  ;;  %v6300_v54 = vmul.f32 %v6268_v40, %v6172_v42  ;;  %v13360_v41 = vld [vmem:[#allocation78_spill] sm:$0xff] }
 0xdbe   : > { %v9773_v4 = vpop.eup %9772  ;;  %v6299_v51 = vmul.f32 %v6267_v10, %v6171_v16  ;;  %v13361_v16 = vld [vmem:[#allocation57_spill] sm:$0xff] }
 0xdbf   : > { %v9775_v27 = vpop.eup %9774  ;;  %v6270_v32 = vadd.f32 1.0, %v9773_v4 }
 0xdc0   : > { %v6269_v29 = vadd.f32 1.0, %v9775_v27  ;;  %8481 = vmatprep.mubr.msk.f32.mxu0 %vm424_vm0, %v6299_v51  ;;  %v13362_v51 = vld [vmem:[#allocation47_spill] sm:$0xff] }
 0xdc1   : > { %8482 = vmatmul.mubr.msk.f32.gmra.mrb[136].mxu0 %vm424_vm0, %v6300_v54  ;;  %v6302_v59 = vmul.f32 %v6270_v32, %v6174_v35  ;;  %v13363_v54 = vld [vmem:[#allocation59_spill] sm:$0xff]  ;;  %v13364_v35 = vld [vmem:[#allocation60_spill] sm:$0xff] }
 0xdc2   : > { %v6301_v30 = vmul.f32 %v6269_v29, %v6173_v34 }
 0xdc4   : > { %8484 = vmatprep.mubr.msk.f32.mxu0 %vm424_vm0, %v6301_v30 }
 0xdc5   : > { %8485 = vmatmul.mubr.msk.f32.gmra.mrb[138].mxu0 %vm424_vm0, %v6302_v59  ;;  %v13365_v59 = vld [vmem:[#allocation52_spill] sm:$0xff] }
 0xdff   : > { %v8441_v26 = vpop.f32.mrb[108].mxu0 }
 0xe00   : > { %v6482_v48 = vpop.f32.mrb[109].mxu0  ;;  %v6488_v15 = vadd.f32 %v8441_v26, %v12916_v25 }
 0xe01   : > { %v6483_v21 = vadd.f32 %v12916_v25, %v6482_v48 }
 0xe02   : > { %v6642_v52 = vadd.f32 %v6488_v15, %v12254_v62 }
 0xe03   : > { %v6641_v38 = vadd.f32 %v6483_v21, %v12258_v39  ;;  %v8444_v28 = vpop.f32.mrb[110].mxu0 }
 0xe04   : > { %v6492_v43 = vpop.f32.mrb[111].mxu0  ;;  %v6498_v31 = vadd.f32 %v8444_v28, %v12916_v25  ;;  %v13366_v28 = vld [vmem:[#allocation64_spill] sm:$0xff] }
 0xe05   : > { %6673 = vxpose.xlu1.b32.start [1/8] (short) (narrow) %v6641_v38, 32  ;;  %v6493_v6 = vadd.f32 %v12916_v25, %v6492_v43 }
 0xe06   : > { %v6644_v24 = vadd.f32 %v6498_v31, %v13353_v57 }
 0xe07   : > { %v8447_v49 = vpop.f32.mrb[112].mxu0  ;;  %v6643_v20 = vadd.f32 %v6493_v6, %v13352_v56 }
 0xe08   : > { %v6502_v2 = vpop.f32.mrb[113].mxu0  ;;  %v6508_v61 = vadd.f32 %v8447_v49, %v12916_v25 }
 0xe09   : > { %6674 = vxpose.xlu1.b32.cont [2/8] (short) (narrow) %v6642_v52, 32  ;;  %v6503_v39 = vadd.f32 %v12916_v25, %v6502_v2  ;;  %v13367_v52 = vld [vmem:[#allocation53_spill] sm:$0xff] }
 0xe0a   : > { %v6646_v17 = vadd.f32 %v6508_v61, %v13356_v5 }
 0xe0b   : > { %v8450_v12 = vpop.f32.mrb[114].mxu0  ;;  %v6645_v60 = vadd.f32 %v6503_v39, %v13354_v19  ;;  %v13369_v39 = vld [vmem:[#allocation65_spill] sm:$0xff] }
 0xe0c   : > { %v6512_v0 = vpop.f32.mrb[115].mxu0  ;;  %v6518_v37 = vadd.f32 %v8450_v12, %v12916_v25 }
 0xe0d   : > { %6675 = vxpose.xlu1.b32.cont [3/8] (short) (narrow) %v6643_v20, 32  ;;  %v6513_v46 = vadd.f32 %v12916_v25, %v6512_v0  ;;  %v13368_v20 = vld [vmem:[#allocation54_spill] sm:$0xff] }
 0xe0e   : > { %v6648_v40 = vadd.f32 %v6518_v37, %v13360_v41 }
 0xe0f   : > { %v8453_v22 = vpop.f32.mrb[116].mxu0  ;;  %v6647_v13 = vadd.f32 %v6513_v46, %v13358_v45 }
 0xe10   : > { %v6522_v1 = vpop.f32.mrb[117].mxu0  ;;  %v6528_v7 = vadd.f32 %v8453_v22, %v12916_v25 }
 0xe11   : > { %v6523_v62 = vadd.f32 %v12916_v25, %v6522_v1  ;;  %6676 = vxpose.xlu1.b32.cont [4/8] (short) (narrow) %v6644_v24, 32 }
 0xe12   : > { %v6650_v18 = vadd.f32 %v6528_v7, %v13357_v8  ;;  %v13370_v7 = vld [vmem:[#allocation56_spill] sm:$0xff] }
 0xe13   : > { %v6649_v23 = vadd.f32 %v6523_v62, %v13355_v11  ;;  %v8456_v44 = vpop.f32.mrb[118].mxu0 }
 0xe14   : > { %v6532_v63 = vpop.f32.mrb[119].mxu0  ;;  %v6538_v36 = vadd.f32 %v8456_v44, %v12916_v25 }
 0xe15   : > { %6709 = vxpose.xlu0.b32.start [1/8] (short) (narrow) %v6649_v23, 32  ;;  %6677 = vxpose.xlu1.b32.cont [5/8] (short) (narrow) %v6645_v60, 32  ;;  %v6533_v53 = vadd.f32 %v12916_v25, %v6532_v63 }
 0xe16   : > { %v6652_v10 = vadd.f32 %v6538_v36, %v13361_v16  ;;  %v13373_v36 = vld [vmem:[#allocation70_spill] sm:$0xff] }
 0xe17   : > { %v8459_v50 = vpop.f32.mrb[120].mxu0  ;;  %v6651_v47 = vadd.f32 %v6533_v53, %v13359_v3  ;;  %v13372_v53 = vld [vmem:[#allocation73_spill] sm:$0xff] }
 0xe18   : > { %v6542_v9 = vpop.f32.mrb[121].mxu0  ;;  %v6548_v4 = vadd.f32 %v8459_v50, %v12916_v25 }
 0xe19   : > { %6710 = vxpose.xlu0.b32.cont [2/8] (short) (narrow) %v6650_v18, 32  ;;  %6678 = vxpose.xlu1.b32.cont [6/8] (short) (narrow) %v6646_v17, 32  ;;  %v6543_v42 = vadd.f32 %v12916_v25, %v6542_v9  ;;  %v13371_v17 = vld [vmem:[#allocation67_spill] sm:$0xff] }
 0xe1a   : > { %v6654_v32 = vadd.f32 %v6548_v4, %v13363_v54 }
 0xe1b   : > { %v8462_v58 = vpop.f32.mrb[122].mxu0  ;;  %v6653_v27 = vadd.f32 %v6543_v42, %v13362_v51 }
 0xe1c   : > { %v6552_v33 = vpop.f32.mrb[123].mxu0  ;;  %v6558_v29 = vadd.f32 %v8462_v58, %v12916_v25 }
 0xe1d   : > { %6711 = vxpose.xlu0.b32.cont [3/8] (short) (narrow) %v6651_v47, 32  ;;  %6679 = vxpose.xlu1.b32.cont [7/8] (short) (narrow) %v6647_v13, 32  ;;  %v6553_v34 = vadd.f32 %v12916_v25, %v6552_v33  ;;  %v13374_v47 = vld [vmem:[#allocation58_spill] sm:$0xff] }
 0xe1e   : > { %v6656_v26 = vadd.f32 %v6558_v29, %v13365_v59 }
 0xe1f   : > { %v6655_v30 = vadd.f32 %v6553_v34, %v13364_v35  ;;  %v13376_v34 = vld [vmem:[#allocation61_spill] sm:$0xff] }
 0xe21   : > { %6712 = vxpose.xlu0.b32.cont [4/8] (short) (narrow) %v6652_v10, 32  ;;  %6680 = vxpose.xlu1.b32.end [8/8] (short) (narrow) %v6648_v40, 32  ;;  %v13375_v10 = vld [vmem:[#allocation63_spill] sm:$0xff] }
 0xe25   : > { %6713 = vxpose.xlu0.b32.cont [5/8] (short) (narrow) %v6653_v27, 32 }
 0xe29   : > { %6714 = vxpose.xlu0.b32.cont [6/8] (short) (narrow) %v6654_v32, 32 }
 0xe2d   : > { %6715 = vxpose.xlu0.b32.cont [7/8] (short) (narrow) %v6655_v30, 32 }
 0xe31   : > { %6716 = vxpose.xlu0.b32.end [8/8] (short) (narrow) %v6656_v26, 32 }
 0xe76   : > { %v8465_v48 = vpop.f32.mrb[124].mxu0 }
 0xe77   : > { %v6562_v21 = vpop.f32.mrb[125].mxu0  ;;  %v6568_v38 = vadd.f32 %v8465_v48, %v12916_v25  ;;  %v13377_v48 = vld [vmem:[#allocation75_spill] sm:$0xff] }
 0xe78   : > { %v6563_v15 = vadd.f32 %v12916_v25, %v6562_v21 }
 0xe79   : > { %v6658_v6 = vadd.f32 %v6568_v38, %v13367_v52 }
 0xe7a   : > { %v6657_v43 = vadd.f32 %v6563_v15, %v13366_v28  ;;  %v13378_v28 = vld [vmem:[#allocation62_spill] sm:$0xff] }
 0xe7c   : > { %6746 = vxpose.xlu0.b32.start [1/8] (short) (narrow) %v6657_v43, 32 }
 0xe80   : > { %v8468_v49 = vpop.f32.mrb[126].mxu0  ;;  %6747 = vxpose.xlu0.b32.cont [2/8] (short) (narrow) %v6658_v6, 32 }
 0xe81   : > { %v6572_v2 = vpop.f32.mrb[127].mxu0  ;;  %v6578_v56 = vadd.f32 %v8468_v49, %v12916_v25 }
 0xe82   : > { %v6573_v31 = vadd.f32 %v12916_v25, %v6572_v2 }
 0xe83   : > { %v6660_v22 = vadd.f32 %v6578_v56, %v13369_v39 }
 0xe84   : > { %v6659_v12 = vadd.f32 %v6573_v31, %v13368_v20  ;;  %v8471_v0 = vpop.f32.mrb[128].mxu0 }
 0xe85   : > { %v6582_v57 = vpop.f32.mrb[129].mxu0  ;;  %v6689_v24 = vpop.trf.xlu1  ;;  %v6588_v60 = vadd.f32 %v8471_v0, %v12916_v25 }
 0xe86   : > { %6748 = vxpose.xlu0.b32.cont [3/8] (short) (narrow) %v6659_v12, 32  ;;  %6705 = vst.msk [vmem:[%s12959_s9] sm:$0xff] %vm1960_vm3, %v6689_v24  ;;  %v6583_v1 = vadd.f32 %v12916_v25, %v6582_v57 }
 0xe87   : > { %v6662_v46 = vadd.f32 %v6588_v60, %v13371_v17 }
 0xe88   : > { %v8474_v62 = vpop.f32.mrb[130].mxu0  ;;  %v6661_v11 = vadd.f32 %v6583_v1, %v13370_v7 }
 0xe89   : > { %v6592_v61 = vpop.f32.mrb[131].mxu0  ;;  %v6690_v19 = vpop.trf.xlu1  ;;  %v6598_v13 = vadd.f32 %v8474_v62, %v12916_v25 }
 0xe8a   : > { %6749 = vxpose.xlu0.b32.cont [4/8] (short) (narrow) %v6660_v22, 32  ;;  %6706 = vst.msk [vmem:[%s12959_s9 + $0x8] sm:$0xff] %vm1960_vm3, %v6690_v19  ;;  %v6593_v8 = vadd.f32 %v12916_v25, %v6592_v61 }
 0xe8b   : > { %v6664_v42 = vadd.f32 %v6598_v13, %v13375_v10 }
 0xe8c   : > { %v8477_v23 = vpop.f32.mrb[132].mxu0  ;;  %v6663_v3 = vadd.f32 %v6593_v8, %v13373_v36 }
 0xe8d   : > { %v6602_v44 = vpop.f32.mrb[133].mxu0  ;;  %v6691_v63 = vpop.trf.xlu1  ;;  %v6608_v18 = vadd.f32 %v8477_v23, %v12916_v25 }
 0xe8e   : > { %v6603_v5 = vadd.f32 %v12916_v25, %v6602_v44  ;;  %6750 = vxpose.xlu0.b32.cont [5/8] (short) (narrow) %v6661_v11, 32  ;;  %6707 = vst.msk [vmem:[%s12959_s9 + $0x10] sm:$0xff] %vm1960_vm3, %v6691_v63 }
 0xe8f   : > { %v6666_v58 = vadd.f32 %v6608_v18, %v13374_v47 }
 0xe90   : > { %v6665_v50 = vadd.f32 %v6603_v5, %v13372_v53  ;;  %v8480_v9 = vpop.f32.mrb[134].mxu0 }
 0xe91   : > { %v6612_v37 = vpop.f32.mrb[135].mxu0  ;;  %v6692_v45 = vpop.trf.xlu1  ;;  %v6618_v4 = vadd.f32 %v8480_v9, %v12916_v25 }
 0xe92   : > { %6751 = vxpose.xlu0.b32.cont [6/8] (short) (narrow) %v6662_v46, 32  ;;  %6783 = vxpose.xlu1.b32.start [1/8] (short) (narrow) %v6665_v50, 32  ;;  %6708 = vst.msk [vmem:[%s12959_s9 + $0x18] sm:$0xff] %vm1960_vm3, %v6692_v45  ;;  %v6613_v33 = vadd.f32 %v12916_v25, %v6612_v37 }
 0xe93   : > { %v6668_v29 = vadd.f32 %v6618_v4, %v13376_v34 }
 0xe94   : > { %v8483_v41 = vpop.f32.mrb[136].mxu0  ;;  %v6667_v51 = vadd.f32 %v6613_v33, %v12498_v55 }
 0xe95   : > { %v6622_v40 = vpop.f32.mrb[137].mxu0  ;;  %v6725_v16 = vpop.trf.xlu0  ;;  %v6628_v59 = vadd.f32 %v8483_v41, %v12916_v25 }
 0xe96   : > { %6752 = vxpose.xlu0.b32.cont [7/8] (short) (narrow) %v6663_v3, 32  ;;  %6784 = vxpose.xlu1.b32.cont [2/8] (short) (narrow) %v6666_v58, 32  ;;  %7313 = vst.msk [vmem:[%s12959_s9 + $0x20] sm:$0xff] %vm1960_vm3, %v6725_v16  ;;  %v6623_v35 = vadd.f32 %v12916_v25, %v6622_v40 }
 0xe97   : > { %v6670_v21 = vadd.f32 %v6628_v59, %v13377_v48 }
 0xe98   : > { %v8486_v27 = vpop.f32.mrb[138].mxu0  ;;  %v6669_v55 = vadd.f32 %v6623_v35, %v12510_v14  ;;  %v13379_v14 = vld [vmem:[#allocation46_spill] sm:$0xff] }
 0xe99   : > { %v6632_v54 = vpop.f32.mrb[139].mxu0  ;;  %v6726_v32 = vpop.trf.xlu0  ;;  %v6638_v38 = vadd.f32 %v8486_v27, %v12916_v25 }
 0xe9a   : > { %6753 = vxpose.xlu0.b32.end [8/8] (short) (narrow) %v6664_v42, 32  ;;  %6785 = vxpose.xlu1.b32.cont [3/8] (short) (narrow) %v6667_v51, 32  ;;  %7314 = vst.msk [vmem:[%s12959_s9 + $0x28] sm:$0xff] %vm1960_vm3, %v6726_v32  ;;  %v6633_v15 = vadd.f32 %v12916_v25, %v6632_v54 }
 0xe9b   : > { %v6672_v52 = vadd.f32 %v6638_v38, %v13379_v14 }
 0xe9c   : > { %v6671_v43 = vadd.f32 %v6633_v15, %v13378_v28 }
 0xe9d   : > { %v6727_v30 = vpop.trf.xlu0 }
 0xe9e   : > { %6786 = vxpose.xlu1.b32.cont [4/8] (short) (narrow) %v6668_v29, 32  ;;  %7315 = vst.msk [vmem:[%s12959_s9 + $0x30] sm:$0xff] %vm1960_vm3, %v6727_v30 }
 0xea1   : > { %v6728_v26 = vpop.trf.xlu0 }
 0xea2   : > { %6787 = vxpose.xlu1.b32.cont [5/8] (short) (narrow) %v6669_v55, 32  ;;  %7316 = vst.msk [vmem:[%s12959_s9 + $0x38] sm:$0xff] %vm1960_vm3, %v6728_v26 }
 0xea6   : > { %6788 = vxpose.xlu1.b32.cont [6/8] (short) (narrow) %v6670_v21, 32 }
 0xeaa   : > { %6789 = vxpose.xlu1.b32.cont [7/8] (short) (narrow) %v6671_v43, 32 }
 0xeae   : > { %6790 = vxpose.xlu1.b32.end [8/8] (short) (narrow) %v6672_v52, 32 }
 0xefe   : > { %v6762_v6 = vpop.trf.xlu0 }
 0xeff   : > { %7317 = vst.msk [vmem:[%s12959_s9 + $0x40] sm:$0xff] %vm1960_vm3, %v6762_v6 }
 0xf02   : > { %v6763_v49 = vpop.trf.xlu0 }
 0xf03   : > { %7318 = vst.msk [vmem:[%s12959_s9 + $0x48] sm:$0xff] %vm1960_vm3, %v6763_v49 }
 0xf06   : > { %v6764_v2 = vpop.trf.xlu0 }
 0xf07   : > { %7319 = vst.msk [vmem:[%s12959_s9 + $0x50] sm:$0xff] %vm1960_vm3, %v6764_v2 }
 0xf0a   : > { %v6765_v25 = vpop.trf.xlu0 }
 0xf0b   : > { %7320 = vst.msk [vmem:[%s12959_s9 + $0x58] sm:$0xff] %vm1960_vm3, %v6765_v25 }
 0xf12   : > { %v6799_v31 = vpop.trf.xlu1 }
 0xf13   : > { %7321 = vst.msk [vmem:[%s12959_s9 + $0x60] sm:$0xff] %vm1960_vm3, %v6799_v31 }
 0xf16   : > { %v6800_v56 = vpop.trf.xlu1 }
 0xf17   : > { %7322 = vst.msk [vmem:[%s12959_s9 + $0x68] sm:$0xff] %vm1960_vm3, %v6800_v56 }
 0xf1a   : > { %v6801_v20 = vpop.trf.xlu1 }
 0xf1b   : > { %7323 = vst.msk [vmem:[%s12959_s9 + $0x70] sm:$0xff] %vm1960_vm3, %v6801_v20 }
 0xf1e   : > { %v6802_v12 = vpop.trf.xlu1 }
 0xf1f   : > { %7324 = vst.msk [vmem:[%s12959_s9 + $0x78] sm:$0xff] %vm1960_vm3, %v6802_v12 }
 0xf20   : > { %9875 = shalt.err (!%p9872_p1)
}
 0xf21   : > { %s9876_s15 = scalar_lea.hbm %s13021_s7, 2048  ;;  %s9880_s28 = scalar_lea.hbm %s13074_s5, 4096 }
 0xf22   : > { %p9877_p13 = scmp.ne.s32.totalorder %s13021_s7, %s9876_s15  ;;  %p9881_p4 = scmp.lt.u32.totalorder %s13021_s7, %s13074_s5 }
 0xf23   : > { %p9882_p5 = scmp.lt.u32.totalorder %s9880_s28, %s9876_s15  ;;  %p9884_p11 = scmp.lt.u32.totalorder %s9876_s15, %s13021_s7 }
 0xf24   : > { %p9878_p6 = pnand %p9877_p13, %p13380_p0 }
 0xf25   : > { %p9883_p8 = por %p9882_p5, %p9881_p4 }
 0xf26   : > { %p9879_p10 = pneg %p9878_p6 }
 0xf27   : > { %p9885_p2 = por %p9884_p11, %p9883_p8 }
 0xf29   : > { %p9886_p3 = pnand %p9885_p2, %p9879_p10 }
 0xf2b   : > { %9889 = shalt.err (!%p9886_p3)
}
 0xf2c   : > { %s9945_s6 = smov 128   ;;  %s9946_s11 = smov 8  }
 0xf2d   : > { %8921 = dma.vmem_to_hbm [thread:$0]  (%p13380_p0), %s13023_s30, 2048, %s13021_s7, %s6821_s8, %s9945_s6, %s9945_s6, %s9946_s11  }
 0xf2e PF: > { %s6850_s17 = sand.u32 1, %s9920_s18   ;;  %p13381_p7 = scmp.ne.s32.totalorder %s13179_s25, 0 }
 0xf2f   : > { %p13382_p9 = scmp.ge.s32.totalorder %s9932_s21, 2  ;;  %s6851_s12 = scalar_lea.sflag [#allocation4], %s6850_s17 }
 0xf31   : > { %p8935_p12 = pnand %p13382_p9, %p13381_p7 }
 0xf33   : > { %9915 = dma.done.wait (!%p8935_p12), %s6851_s12, 2048  }
 0xf34   : > { %9917 = vsyncadd (!%p8935_p12), %s6851_s12, 4294965248  ;;  %p19_p1 = scmp.ge.s32.totalorder %s10093_s29, 4   ;;  %s13383_s18 = smov %s9924_s19 }
 0xf35   : > { %s13384_s19 = smov %s9928_s20  ;;  %s13385_s20 = smov %s10109_s27 }
 0xf36   : > { %s13386_s21 = smov %s10093_s29  ;;  %21 = sbr.rel (!%p19_p1) target bundleno = 6 (0x6), region = 99 }
 0xf3d   :  { %6856 = vsyncpa [#allocation3], 1 }
 0xf3e   :  { %6858 = vsyncpa [#allocation3 + $0x1], 1 }
 0xf3f   :  { %6859 = vsyncpa [#allocation6], 1 }
 0xf40   :  { %6860 = vsyncpa [#allocation4], 1 }
 0xf41   :  { %6862 = vsyncpa [#allocation4 + $0x1], 1 }

</bundles_post_ra>
